<compile_context>
chip_gen: v7x
topology: tpu7x:2x2x1
jax: 0.10.0
libtpu: 0.0.40
codegen_flags: <defaults>
</compile_context>

<pallas_src>
import math

import jax
import jax.numpy as jnp
from jax.experimental import pallas as pl
from jax.experimental.pallas import tpu as pltpu


_LANES = 128       # every matmul operand / output lane dim is padded to 128
_NCLS = 10
_HH_PAD = 24       # half-row (parity-split) dim: 18 valid rows padded to 24
_P1 = 16           # pooled conv1 computed grid (valid 14x14), channel stride 8
_P2 = 6            # pooled conv2 computed grid (valid 5x5),  channel stride 16


# ---------------------------------------------------------------------------
# Fused whole-network kernel: one batch tile per grid step.
# ---------------------------------------------------------------------------
def _lenet5_kernel(x_ref, m1_ref, b1_ref, m2_ref, b2_ref,
                   fw1_ref, fb1_ref, fw2_ref, fb2_ref, fw3_ref, fb3_ref,
                   o_ref):
    bt = x_ref.shape[0]
    x = x_ref[...]                                   # (bt, 2, 24, 128) bf16

    # ---- conv1 + bias + 2x2 avg-pool: 6 banded matmuls, f32 MXU accumulation.
    #      LHS of term e: rows {2*oh' + e} of the padded 36x36x3 image, which is
    #      a *contiguous* band q:q+16 of parity plane r (e = 2q + r).
    acc1 = jnp.zeros((bt * _P1, _LANES), jnp.float32)
    for e in range(6):
        r, q = e % 2, e // 2
        lhs = x[:, r, q:q + _P1, :].reshape(bt * _P1, _LANES)
        acc1 = acc1 + jnp.dot(lhs, m1_ref[e], preferred_element_type=jnp.float32)
    p1 = (acc1 + b1_ref[...]).astype(jnp.bfloat16)   # (bt*16, 128), lane = 8*w1' + c1

    # ---- split pooled1 rows by parity so conv2's bands are contiguous slices.
    p1 = p1.reshape(bt, _P1 // 2, 2, _LANES)
    par = (p1[:, :, 0, :], p1[:, :, 1, :])           # each (bt, 8, 128)

    # ---- conv2 + bias + 2x2 avg-pool: same 6-term banded-matmul trick.
    acc2 = jnp.zeros((bt * _P2, _LANES), jnp.float32)
    for e in range(6):
        r, q = e % 2, e // 2
        lhs = par[r][:, q:q + _P2, :].reshape(bt * _P2, _LANES)
        acc2 = acc2 + jnp.dot(lhs, m2_ref[e], preferred_element_type=jnp.float32)
    p2 = acc2 + b2_ref[...]                          # (bt*6, 128) f32, lane = 16*w2' + c2

    # ---- flatten the valid 5x5x16 region -> (bt, 400) in (h, w, c) order
    #      (fc1's weight rows are pre-permuted to this exact order).
    f = p2.reshape(bt, _P2, _LANES)[:, :5, :80].astype(jnp.bfloat16).reshape(bt, 400)

    # ---- FC stack: bf16 MXU operands, f32 bias/ReLU, lane dims padded to 128.
    h = jnp.dot(f, fw1_ref[...], preferred_element_type=jnp.float32) + fb1_ref[...]
    h = jnp.maximum(h, 0.0).astype(jnp.bfloat16)
    h = jnp.dot(h, fw2_ref[...], preferred_element_type=jnp.float32) + fb2_ref[...]
    h = jnp.maximum(h, 0.0).astype(jnp.bfloat16)
    o_ref[...] = (jnp.dot(h, fw3_ref[...], preferred_element_type=jnp.float32)
                  + fb3_ref[...])


# ---------------------------------------------------------------------------
# Parameter prep: fold conv + 2x2 avg-pool (and the 0.25) into banded matmul
# RHS matrices; pad/permute everything once, outside the kernel.
# ---------------------------------------------------------------------------
def _prep_params(params):
    f32 = jnp.float32
    lane = jnp.arange(_LANES)

    # fold[e, d] = 1 iff pool offset a in {0,1} and conv offset d satisfy a + d == e.
    e_idx = jnp.arange(6)[:, None]
    d_idx = jnp.arange(5)[None, :]
    fold = ((d_idx == e_idx) | (d_idx == e_idx - 1)).astype(f32)          # (6, 5)

    def fused_conv_pool_rhs(w, c_in, in_stride, c_out, out_stride, n_cols):
        # w: (c_out, c_in, 5, 5) PyTorch conv weight.  Returns (6, 128, 128) bf16
        # RHS matrices such that, for input packed as lane = in_stride*w_in + c,
        #   pooled[oh', out_stride*ow' + co] = sum_e  in_row(2*oh' + e) @ rhs[e]
        # i.e. the 5x5 valid conv and the 2x2/stride-2 average pool (with its
        # 0.25 factor) are fully folded into the MXU matmul.
        weff = 0.25 * jnp.einsum("ed,gj,ocdj->egco", fold, fold, w.astype(f32))
        w_idx = jnp.arange(n_cols)
        lane_in = ((2 * in_stride) * w_idx[:, None, None]
                   + in_stride * jnp.arange(6)[None, :, None]
                   + jnp.arange(c_in)[None, None, :])                     # (n_cols, 6, c_in)
        lane_out = out_stride * w_idx[:, None] + jnp.arange(c_out)[None, :]
        sel_in = (lane[None, None, None, :] == lane_in[..., None]).astype(f32)
        sel_out = (lane[None, None, :] == lane_out[..., None]).astype(f32)
        rhs = jnp.einsum("wgcl,egco,won->eln", sel_in, weff, sel_out)     # (6,128,128)
        return rhs.astype(jnp.bfloat16)

    def pad2(a, rows, cols):
        return jnp.pad(a, ((0, rows - a.shape[0]), (0, cols - a.shape[1])))

    def bias_vec(b):
        return jnp.pad(b, (0, _LANES - b.shape[0])).reshape(1, _LANES).astype(f32)

    # fc1 rows: PyTorch flatten order c*25 + h*5 + w  ->  our order h*80 + w*16 + c.
    fc1 = params["fc1_w"].reshape(16, 5, 5, 120)
    fc1 = jnp.transpose(fc1, (1, 2, 0, 3)).reshape(400, 120)

    return dict(
        m1=fused_conv_pool_rhs(params["conv1_w"], 3, 3, 6, 8, _P1),
        b1=jnp.tile(jnp.pad(params["conv1_b"], (0, 2)), _P1).reshape(1, _LANES).astype(f32),
        m2=fused_conv_pool_rhs(params["conv2_w"], 6, 8, 16, 16, _P2),
        b2=jnp.pad(jnp.tile(params["conv2_b"], _P2), (0, 32)).reshape(1, _LANES).astype(f32),
        fw1=pad2(fc1, 400, _LANES).astype(jnp.bfloat16),
        fb1=bias_vec(params["fc1_b"]),
        fw2=pad2(params["fc2_w"], _LANES, _LANES).astype(jnp.bfloat16),
        fb2=bias_vec(params["fc2_b"]),
        fw3=pad2(params["fc3_w"], _LANES, _LANES).astype(jnp.bfloat16),
        fb3=bias_vec(params["fc3_b"]),
    )


# ---------------------------------------------------------------------------
# Forward pass (matches Lenet5.forward)
# ---------------------------------------------------------------------------
def lenet5_forward(x_nchw, params):
    B = x_nchw.shape[0]
    p = _prep_params(params)

    # Batch tile: bigger tiles amortize the ~0.35us/step overhead; always keep
    # >= 2 grid steps so both v7x TensorCores get work even for tiny batches.
    if B >= 128:
        bt = 32
    elif B >= 32:
        bt = 16
    else:
        bt = 8
    n_steps = max(2, pl.cdiv(B, bt))
    b_pad = n_steps * bt

    # Lane-dense, parity-split input packing:
    #   xp[b, r, hh, 3*w + c] = x[b, c, 2*hh + r, w]   (zero pad 32 -> 36 spatial)
    x = jnp.transpose(x_nchw, (0, 2, 3, 1))                          # NCHW -> NHWC
    x = jnp.pad(x, ((0, b_pad - B), (0, 4), (0, 4), (0, 0)))         # (b_pad, 36, 36, 3)
    x = x.reshape(b_pad, 18, 2, 36 * 3)                              # split H parity, merge W,C
    x = jnp.transpose(x, (0, 2, 1, 3))                               # (b_pad, 2, 18, 108)
    x = jnp.pad(x, ((0, 0), (0, 0), (0, _HH_PAD - 18), (0, _LANES - 108)))
    x = x.astype(jnp.bfloat16)

    full = lambda a: pl.BlockSpec(a.shape, lambda i: (0,) * a.ndim)  # VMEM-resident weights

    out = pl.pallas_call(
        _lenet5_kernel,
        out_shape=jax.ShapeDtypeStruct((b_pad, _LANES), jnp.float32),
        grid=(n_steps,),
        in_specs=[
            pl.BlockSpec((bt, 2, _HH_PAD, _LANES), lambda i: (i, 0, 0, 0)),
            full(p["m1"]), full(p["b1"]), full(p["m2"]), full(p["b2"]),
            full(p["fw1"]), full(p["fb1"]), full(p["fw2"]), full(p["fb2"]),
            full(p["fw3"]), full(p["fb3"]),
        ],
        out_specs=pl.BlockSpec((bt, _LANES), lambda i: (i, 0)),
        compiler_params=pltpu.CompilerParams(
            dimension_semantics=("parallel",),
            vmem_limit_bytes=32 * 1024 * 1024),
    )(x, p["m1"], p["b1"], p["m2"], p["b2"],
      p["fw1"], p["fb1"], p["fw2"], p["fb2"], p["fw3"], p["fb3"])

    # TODO(synk): nn.CrossEntropyLoss (self.criteon) is defined in __init__ but
    # never used in forward(), so it is not implemented here.
    return out[:B, :_NCLS]                                           # slice padded logits -> 10


# ---------------------------------------------------------------------------
# Deterministic parameter init (PyTorch-default style: U(-1/sqrt(fan_in), +))
# ---------------------------------------------------------------------------
def _uniform(key, shape, fan_in):
    bound = 1.0 / math.sqrt(fan_in)
    return jax.random.uniform(key, shape, jnp.float32, -bound, bound)


def init_params(key):
    ks = jax.random.split(key, 10)
    return {
        # Conv2d(3, 6, 5)
        "conv1_w": _uniform(ks[0], (6, 3, 5, 5), 3 * 5 * 5),
        "conv1_b": _uniform(ks[1], (6,), 3 * 5 * 5),
        # Conv2d(6, 16, 5)
        "conv2_w": _uniform(ks[2], (16, 6, 5, 5), 6 * 5 * 5),
        "conv2_b": _uniform(ks[3], (16,), 6 * 5 * 5),
        # Linear(400,120), Linear(120,84), Linear(84,10)  (stored as (in, out))
        "fc1_w": _uniform(ks[4], (400, 120), 400),
        "fc1_b": _uniform(ks[5], (120,), 400),
        "fc2_w": _uniform(ks[6], (120, 84), 120),
        "fc2_b": _uniform(ks[7], (84,), 120),
        "fc3_w": _uniform(ks[8], (84, 10), 84),
        "fc3_b": _uniform(ks[9], (10,), 84),
    }


if __name__ == "__main__":
    key = jax.random.PRNGKey(0)
    k_params, k_x = jax.random.split(key)
    params = init_params(k_params)
    # The LeNet-5 conv stack requires 32x32 spatial input with 3 channels
    # (the PyTorch module self-tests with torch.randn(2, 3, 32, 32)).
    x = jax.random.normal(k_x, (2, 3, 32, 32), jnp.float32)
    logits = jax.jit(lenet5_forward)(x, params)
    jax.block_until_ready(logits)
    assert logits.shape == (2, _NCLS), logits.shape
    print("KERNEL_OK")
</pallas_src>

<mosaic_0001>
module attributes {stable_mosaic.version = 11 : i64} {
  func.func @_lenet5_kernel(%arg0: i32, %arg1: memref<8x2x24x128xbf16, #tpu.memory_space<vmem>>, %arg2: memref<6x128x128xbf16, #tpu.memory_space<vmem>>, %arg3: memref<1x128xf32, #tpu.memory_space<vmem>>, %arg4: memref<6x128x128xbf16, #tpu.memory_space<vmem>>, %arg5: memref<1x128xf32, #tpu.memory_space<vmem>>, %arg6: memref<400x128xbf16, #tpu.memory_space<vmem>>, %arg7: memref<1x128xf32, #tpu.memory_space<vmem>>, %arg8: memref<128x128xbf16, #tpu.memory_space<vmem>>, %arg9: memref<1x128xf32, #tpu.memory_space<vmem>>, %arg10: memref<128x128xbf16, #tpu.memory_space<vmem>>, %arg11: memref<1x128xf32, #tpu.memory_space<vmem>>, %arg12: memref<8x128xf32, #tpu.memory_space<vmem>>) attributes {dimension_semantics = [#tpu.dimension_semantics<parallel>], iteration_bounds = array<i64: 2>, scalar_prefetch = 0 : i64, scratch_operands = 0 : i64, tpu.core_type = #tpu.core_type<tc>, window_params = [{transform_indices = @transform_0, window_bounds = array<i64: 8, 2, 24, 128>}, {pipeline_mode = #tpu.pipeline_mode<synchronous>, transform_indices = @transform_1, window_bounds = array<i64: 6, 128, 128>}, {pipeline_mode = #tpu.pipeline_mode<synchronous>, transform_indices = @transform_2, window_bounds = array<i64: 1, 128>}, {pipeline_mode = #tpu.pipeline_mode<synchronous>, transform_indices = @transform_3, window_bounds = array<i64: 6, 128, 128>}, {pipeline_mode = #tpu.pipeline_mode<synchronous>, transform_indices = @transform_4, window_bounds = array<i64: 1, 128>}, {pipeline_mode = #tpu.pipeline_mode<synchronous>, transform_indices = @transform_5, window_bounds = array<i64: 400, 128>}, {pipeline_mode = #tpu.pipeline_mode<synchronous>, transform_indices = @transform_6, window_bounds = array<i64: 1, 128>}, {pipeline_mode = #tpu.pipeline_mode<synchronous>, transform_indices = @transform_7, window_bounds = array<i64: 128, 128>}, {pipeline_mode = #tpu.pipeline_mode<synchronous>, transform_indices = @transform_8, window_bounds = array<i64: 1, 128>}, {pipeline_mode = #tpu.pipeline_mode<synchronous>, transform_indices = @transform_9, window_bounds = array<i64: 128, 128>}, {pipeline_mode = #tpu.pipeline_mode<synchronous>, transform_indices = @transform_10, window_bounds = array<i64: 1, 128>}, {transform_indices = @transform_11, window_bounds = array<i64: 8, 128>}]} {
    %c0 = arith.constant 0 : index
    %c0_0 = arith.constant 0 : index
    %c0_1 = arith.constant 0 : index
    %c0_2 = arith.constant 0 : index
    %0 = vector.load %arg1[%c0, %c0_0, %c0_1, %c0_2] : memref<8x2x24x128xbf16, #tpu.memory_space<vmem>>, vector<8x2x24x128xbf16>
    %cst = arith.constant 0.000000e+00 : f32
    %1 = vector.broadcast %cst : f32 to vector<128x128xf32>
    %2 = vector.extract_strided_slice %0 {offsets = [0, 0, 0, 0], sizes = [8, 1, 16, 128], strides = [1, 1, 1, 1]} : vector<8x2x24x128xbf16> to vector<8x1x16x128xbf16>
    %3 = vector.shape_cast %2 : vector<8x1x16x128xbf16> to vector<8x16x128xbf16>
    %4 = vector.shape_cast %3 : vector<8x16x128xbf16> to vector<128x128xbf16>
    %c0_3 = arith.constant 0 : index
    %c0_4 = arith.constant 0 : index
    %c0_5 = arith.constant 0 : index
    %5 = vector.load %arg2[%c0_3, %c0_4, %c0_5] : memref<6x128x128xbf16, #tpu.memory_space<vmem>>, vector<1x128x128xbf16>
    %6 = vector.shape_cast %5 : vector<1x128x128xbf16> to vector<128x128xbf16>
    %cst_6 = arith.constant dense<0.000000e+00> : vector<128x128xf32>
    %7 = tpu.matmul %4, %6, %cst_6 {dimension_numbers = #tpu.dot_dimension_numbers<[1], [0], [0], [1], [0, 0, 1, 1], [], []>} : vector<128x128xbf16>, vector<128x128xbf16>, vector<128x128xf32> -> vector<128x128xf32>
    %8 = arith.addf %1, %7 : vector<128x128xf32>
    %9 = vector.extract_strided_slice %0 {offsets = [0, 1, 0, 0], sizes = [8, 1, 16, 128], strides = [1, 1, 1, 1]} : vector<8x2x24x128xbf16> to vector<8x1x16x128xbf16>
    %10 = vector.shape_cast %9 : vector<8x1x16x128xbf16> to vector<8x16x128xbf16>
    %11 = vector.shape_cast %10 : vector<8x16x128xbf16> to vector<128x128xbf16>
    %c1 = arith.constant 1 : index
    %c0_7 = arith.constant 0 : index
    %c0_8 = arith.constant 0 : index
    %12 = vector.load %arg2[%c1, %c0_7, %c0_8] : memref<6x128x128xbf16, #tpu.memory_space<vmem>>, vector<1x128x128xbf16>
    %13 = vector.shape_cast %12 : vector<1x128x128xbf16> to vector<128x128xbf16>
    %cst_9 = arith.constant dense<0.000000e+00> : vector<128x128xf32>
    %14 = tpu.matmul %11, %13, %cst_9 {dimension_numbers = #tpu.dot_dimension_numbers<[1], [0], [0], [1], [0, 0, 1, 1], [], []>} : vector<128x128xbf16>, vector<128x128xbf16>, vector<128x128xf32> -> vector<128x128xf32>
    %15 = arith.addf %8, %14 : vector<128x128xf32>
    %16 = vector.extract_strided_slice %0 {offsets = [0, 0, 1, 0], sizes = [8, 1, 16, 128], strides = [1, 1, 1, 1]} : vector<8x2x24x128xbf16> to vector<8x1x16x128xbf16>
    %17 = vector.shape_cast %16 : vector<8x1x16x128xbf16> to vector<8x16x128xbf16>
    %18 = vector.shape_cast %17 : vector<8x16x128xbf16> to vector<128x128xbf16>
    %c2 = arith.constant 2 : index
    %c0_10 = arith.constant 0 : index
    %c0_11 = arith.constant 0 : index
    %19 = vector.load %arg2[%c2, %c0_10, %c0_11] : memref<6x128x128xbf16, #tpu.memory_space<vmem>>, vector<1x128x128xbf16>
    %20 = vector.shape_cast %19 : vector<1x128x128xbf16> to vector<128x128xbf16>
    %cst_12 = arith.constant dense<0.000000e+00> : vector<128x128xf32>
    %21 = tpu.matmul %18, %20, %cst_12 {dimension_numbers = #tpu.dot_dimension_numbers<[1], [0], [0], [1], [0, 0, 1, 1], [], []>} : vector<128x128xbf16>, vector<128x128xbf16>, vector<128x128xf32> -> vector<128x128xf32>
    %22 = arith.addf %15, %21 : vector<128x128xf32>
    %23 = vector.extract_strided_slice %0 {offsets = [0, 1, 1, 0], sizes = [8, 1, 16, 128], strides = [1, 1, 1, 1]} : vector<8x2x24x128xbf16> to vector<8x1x16x128xbf16>
    %24 = vector.shape_cast %23 : vector<8x1x16x128xbf16> to vector<8x16x128xbf16>
    %25 = vector.shape_cast %24 : vector<8x16x128xbf16> to vector<128x128xbf16>
    %c3 = arith.constant 3 : index
    %c0_13 = arith.constant 0 : index
    %c0_14 = arith.constant 0 : index
    %26 = vector.load %arg2[%c3, %c0_13, %c0_14] : memref<6x128x128xbf16, #tpu.memory_space<vmem>>, vector<1x128x128xbf16>
    %27 = vector.shape_cast %26 : vector<1x128x128xbf16> to vector<128x128xbf16>
    %cst_15 = arith.constant dense<0.000000e+00> : vector<128x128xf32>
    %28 = tpu.matmul %25, %27, %cst_15 {dimension_numbers = #tpu.dot_dimension_numbers<[1], [0], [0], [1], [0, 0, 1, 1], [], []>} : vector<128x128xbf16>, vector<128x128xbf16>, vector<128x128xf32> -> vector<128x128xf32>
    %29 = arith.addf %22, %28 : vector<128x128xf32>
    %30 = vector.extract_strided_slice %0 {offsets = [0, 0, 2, 0], sizes = [8, 1, 16, 128], strides = [1, 1, 1, 1]} : vector<8x2x24x128xbf16> to vector<8x1x16x128xbf16>
    %31 = vector.shape_cast %30 : vector<8x1x16x128xbf16> to vector<8x16x128xbf16>
    %32 = vector.shape_cast %31 : vector<8x16x128xbf16> to vector<128x128xbf16>
    %c4 = arith.constant 4 : index
    %c0_16 = arith.constant 0 : index
    %c0_17 = arith.constant 0 : index
    %33 = vector.load %arg2[%c4, %c0_16, %c0_17] : memref<6x128x128xbf16, #tpu.memory_space<vmem>>, vector<1x128x128xbf16>
    %34 = vector.shape_cast %33 : vector<1x128x128xbf16> to vector<128x128xbf16>
    %cst_18 = arith.constant dense<0.000000e+00> : vector<128x128xf32>
    %35 = tpu.matmul %32, %34, %cst_18 {dimension_numbers = #tpu.dot_dimension_numbers<[1], [0], [0], [1], [0, 0, 1, 1], [], []>} : vector<128x128xbf16>, vector<128x128xbf16>, vector<128x128xf32> -> vector<128x128xf32>
    %36 = arith.addf %29, %35 : vector<128x128xf32>
    %37 = vector.extract_strided_slice %0 {offsets = [0, 1, 2, 0], sizes = [8, 1, 16, 128], strides = [1, 1, 1, 1]} : vector<8x2x24x128xbf16> to vector<8x1x16x128xbf16>
    %38 = vector.shape_cast %37 : vector<8x1x16x128xbf16> to vector<8x16x128xbf16>
    %39 = vector.shape_cast %38 : vector<8x16x128xbf16> to vector<128x128xbf16>
    %c5 = arith.constant 5 : index
    %c0_19 = arith.constant 0 : index
    %c0_20 = arith.constant 0 : index
    %40 = vector.load %arg2[%c5, %c0_19, %c0_20] : memref<6x128x128xbf16, #tpu.memory_space<vmem>>, vector<1x128x128xbf16>
    %41 = vector.shape_cast %40 : vector<1x128x128xbf16> to vector<128x128xbf16>
    %cst_21 = arith.constant dense<0.000000e+00> : vector<128x128xf32>
    %42 = tpu.matmul %39, %41, %cst_21 {dimension_numbers = #tpu.dot_dimension_numbers<[1], [0], [0], [1], [0, 0, 1, 1], [], []>} : vector<128x128xbf16>, vector<128x128xbf16>, vector<128x128xf32> -> vector<128x128xf32>
    %43 = arith.addf %36, %42 : vector<128x128xf32>
    %c0_22 = arith.constant 0 : index
    %c0_23 = arith.constant 0 : index
    %44 = vector.load %arg3[%c0_22, %c0_23] : memref<1x128xf32, #tpu.memory_space<vmem>>, vector<1x128xf32>
    %45 = vector.broadcast %44 : vector<1x128xf32> to vector<128x128xf32>
    %46 = arith.addf %43, %45 : vector<128x128xf32>
    %47 = arith.truncf %46 : vector<128x128xf32> to vector<128x128xbf16>
    %48 = vector.shape_cast %47 : vector<128x128xbf16> to vector<8x8x2x128xbf16>
    %49 = vector.extract_strided_slice %48 {offsets = [0, 0, 0, 0], sizes = [8, 8, 1, 128], strides = [1, 1, 1, 1]} : vector<8x8x2x128xbf16> to vector<8x8x1x128xbf16>
    %50 = vector.shape_cast %49 : vector<8x8x1x128xbf16> to vector<8x8x128xbf16>
    %51 = vector.extract_strided_slice %48 {offsets = [0, 0, 1, 0], sizes = [8, 8, 1, 128], strides = [1, 1, 1, 1]} : vector<8x8x2x128xbf16> to vector<8x8x1x128xbf16>
    %52 = vector.shape_cast %51 : vector<8x8x1x128xbf16> to vector<8x8x128xbf16>
    %cst_24 = arith.constant 0.000000e+00 : f32
    %53 = vector.broadcast %cst_24 : f32 to vector<48x128xf32>
    %54 = vector.extract_strided_slice %50 {offsets = [0, 0, 0], sizes = [8, 6, 128], strides = [1, 1, 1]} : vector<8x8x128xbf16> to vector<8x6x128xbf16>
    %55 = vector.shape_cast %54 : vector<8x6x128xbf16> to vector<48x128xbf16>
    %c0_25 = arith.constant 0 : index
    %c0_26 = arith.constant 0 : index
    %c0_27 = arith.constant 0 : index
    %56 = vector.load %arg4[%c0_25, %c0_26, %c0_27] : memref<6x128x128xbf16, #tpu.memory_space<vmem>>, vector<1x128x128xbf16>
    %57 = vector.shape_cast %56 : vector<1x128x128xbf16> to vector<128x128xbf16>
    %cst_28 = arith.constant dense<0.000000e+00> : vector<48x128xf32>
    %58 = tpu.matmul %55, %57, %cst_28 {dimension_numbers = #tpu.dot_dimension_numbers<[1], [0], [0], [1], [0, 0, 1, 1], [], []>} : vector<48x128xbf16>, vector<128x128xbf16>, vector<48x128xf32> -> vector<48x128xf32>
    %59 = arith.addf %53, %58 : vector<48x128xf32>
    %60 = vector.extract_strided_slice %52 {offsets = [0, 0, 0], sizes = [8, 6, 128], strides = [1, 1, 1]} : vector<8x8x128xbf16> to vector<8x6x128xbf16>
    %61 = vector.shape_cast %60 : vector<8x6x128xbf16> to vector<48x128xbf16>
    %c1_29 = arith.constant 1 : index
    %c0_30 = arith.constant 0 : index
    %c0_31 = arith.constant 0 : index
    %62 = vector.load %arg4[%c1_29, %c0_30, %c0_31] : memref<6x128x128xbf16, #tpu.memory_space<vmem>>, vector<1x128x128xbf16>
    %63 = vector.shape_cast %62 : vector<1x128x128xbf16> to vector<128x128xbf16>
    %cst_32 = arith.constant dense<0.000000e+00> : vector<48x128xf32>
    %64 = tpu.matmul %61, %63, %cst_32 {dimension_numbers = #tpu.dot_dimension_numbers<[1], [0], [0], [1], [0, 0, 1, 1], [], []>} : vector<48x128xbf16>, vector<128x128xbf16>, vector<48x128xf32> -> vector<48x128xf32>
    %65 = arith.addf %59, %64 : vector<48x128xf32>
    %66 = vector.extract_strided_slice %50 {offsets = [0, 1, 0], sizes = [8, 6, 128], strides = [1, 1, 1]} : vector<8x8x128xbf16> to vector<8x6x128xbf16>
    %67 = vector.shape_cast %66 : vector<8x6x128xbf16> to vector<48x128xbf16>
    %c2_33 = arith.constant 2 : index
    %c0_34 = arith.constant 0 : index
    %c0_35 = arith.constant 0 : index
    %68 = vector.load %arg4[%c2_33, %c0_34, %c0_35] : memref<6x128x128xbf16, #tpu.memory_space<vmem>>, vector<1x128x128xbf16>
    %69 = vector.shape_cast %68 : vector<1x128x128xbf16> to vector<128x128xbf16>
    %cst_36 = arith.constant dense<0.000000e+00> : vector<48x128xf32>
    %70 = tpu.matmul %67, %69, %cst_36 {dimension_numbers = #tpu.dot_dimension_numbers<[1], [0], [0], [1], [0, 0, 1, 1], [], []>} : vector<48x128xbf16>, vector<128x128xbf16>, vector<48x128xf32> -> vector<48x128xf32>
    %71 = arith.addf %65, %70 : vector<48x128xf32>
    %72 = vector.extract_strided_slice %52 {offsets = [0, 1, 0], sizes = [8, 6, 128], strides = [1, 1, 1]} : vector<8x8x128xbf16> to vector<8x6x128xbf16>
    %73 = vector.shape_cast %72 : vector<8x6x128xbf16> to vector<48x128xbf16>
    %c3_37 = arith.constant 3 : index
    %c0_38 = arith.constant 0 : index
    %c0_39 = arith.constant 0 : index
    %74 = vector.load %arg4[%c3_37, %c0_38, %c0_39] : memref<6x128x128xbf16, #tpu.memory_space<vmem>>, vector<1x128x128xbf16>
    %75 = vector.shape_cast %74 : vector<1x128x128xbf16> to vector<128x128xbf16>
    %cst_40 = arith.constant dense<0.000000e+00> : vector<48x128xf32>
    %76 = tpu.matmul %73, %75, %cst_40 {dimension_numbers = #tpu.dot_dimension_numbers<[1], [0], [0], [1], [0, 0, 1, 1], [], []>} : vector<48x128xbf16>, vector<128x128xbf16>, vector<48x128xf32> -> vector<48x128xf32>
    %77 = arith.addf %71, %76 : vector<48x128xf32>
    %78 = vector.extract_strided_slice %50 {offsets = [0, 2, 0], sizes = [8, 6, 128], strides = [1, 1, 1]} : vector<8x8x128xbf16> to vector<8x6x128xbf16>
    %79 = vector.shape_cast %78 : vector<8x6x128xbf16> to vector<48x128xbf16>
    %c4_41 = arith.constant 4 : index
    %c0_42 = arith.constant 0 : index
    %c0_43 = arith.constant 0 : index
    %80 = vector.load %arg4[%c4_41, %c0_42, %c0_43] : memref<6x128x128xbf16, #tpu.memory_space<vmem>>, vector<1x128x128xbf16>
    %81 = vector.shape_cast %80 : vector<1x128x128xbf16> to vector<128x128xbf16>
    %cst_44 = arith.constant dense<0.000000e+00> : vector<48x128xf32>
    %82 = tpu.matmul %79, %81, %cst_44 {dimension_numbers = #tpu.dot_dimension_numbers<[1], [0], [0], [1], [0, 0, 1, 1], [], []>} : vector<48x128xbf16>, vector<128x128xbf16>, vector<48x128xf32> -> vector<48x128xf32>
    %83 = arith.addf %77, %82 : vector<48x128xf32>
    %84 = vector.extract_strided_slice %52 {offsets = [0, 2, 0], sizes = [8, 6, 128], strides = [1, 1, 1]} : vector<8x8x128xbf16> to vector<8x6x128xbf16>
    %85 = vector.shape_cast %84 : vector<8x6x128xbf16> to vector<48x128xbf16>
    %c5_45 = arith.constant 5 : index
    %c0_46 = arith.constant 0 : index
    %c0_47 = arith.constant 0 : index
    %86 = vector.load %arg4[%c5_45, %c0_46, %c0_47] : memref<6x128x128xbf16, #tpu.memory_space<vmem>>, vector<1x128x128xbf16>
    %87 = vector.shape_cast %86 : vector<1x128x128xbf16> to vector<128x128xbf16>
    %cst_48 = arith.constant dense<0.000000e+00> : vector<48x128xf32>
    %88 = tpu.matmul %85, %87, %cst_48 {dimension_numbers = #tpu.dot_dimension_numbers<[1], [0], [0], [1], [0, 0, 1, 1], [], []>} : vector<48x128xbf16>, vector<128x128xbf16>, vector<48x128xf32> -> vector<48x128xf32>
    %89 = arith.addf %83, %88 : vector<48x128xf32>
    %c0_49 = arith.constant 0 : index
    %c0_50 = arith.constant 0 : index
    %90 = vector.load %arg5[%c0_49, %c0_50] : memref<1x128xf32, #tpu.memory_space<vmem>>, vector<1x128xf32>
    %91 = vector.broadcast %90 : vector<1x128xf32> to vector<48x128xf32>
    %92 = arith.addf %89, %91 : vector<48x128xf32>
    %93 = vector.shape_cast %92 : vector<48x128xf32> to vector<8x6x128xf32>
    %94 = vector.extract_strided_slice %93 {offsets = [0, 0, 0], sizes = [8, 5, 80], strides = [1, 1, 1]} : vector<8x6x128xf32> to vector<8x5x80xf32>
    %95 = arith.truncf %94 : vector<8x5x80xf32> to vector<8x5x80xbf16>
    %96 = vector.shape_cast %95 : vector<8x5x80xbf16> to vector<8x400xbf16>
    %c0_51 = arith.constant 0 : index
    %c0_52 = arith.constant 0 : index
    %97 = vector.load %arg6[%c0_51, %c0_52] : memref<400x128xbf16, #tpu.memory_space<vmem>>, vector<400x128xbf16>
    %cst_53 = arith.constant dense<0.000000e+00> : vector<8x128xf32>
    %98 = tpu.matmul %96, %97, %cst_53 {dimension_numbers = #tpu.dot_dimension_numbers<[1], [0], [0], [1], [0, 0, 1, 1], [], []>} : vector<8x400xbf16>, vector<400x128xbf16>, vector<8x128xf32> -> vector<8x128xf32>
    %c0_54 = arith.constant 0 : index
    %c0_55 = arith.constant 0 : index
    %99 = vector.load %arg7[%c0_54, %c0_55] : memref<1x128xf32, #tpu.memory_space<vmem>>, vector<1x128xf32>
    %100 = vector.broadcast %99 : vector<1x128xf32> to vector<8x128xf32>
    %101 = arith.addf %98, %100 : vector<8x128xf32>
    %cst_56 = arith.constant 0.000000e+00 : f32
    %102 = vector.broadcast %cst_56 : f32 to vector<8x128xf32>
    %103 = arith.maximumf %101, %102 : vector<8x128xf32>
    %104 = arith.truncf %103 : vector<8x128xf32> to vector<8x128xbf16>
    %c0_57 = arith.constant 0 : index
    %c0_58 = arith.constant 0 : index
    %105 = vector.load %arg8[%c0_57, %c0_58] : memref<128x128xbf16, #tpu.memory_space<vmem>>, vector<128x128xbf16>
    %cst_59 = arith.constant dense<0.000000e+00> : vector<8x128xf32>
    %106 = tpu.matmul %104, %105, %cst_59 {dimension_numbers = #tpu.dot_dimension_numbers<[1], [0], [0], [1], [0, 0, 1, 1], [], []>} : vector<8x128xbf16>, vector<128x128xbf16>, vector<8x128xf32> -> vector<8x128xf32>
    %c0_60 = arith.constant 0 : index
    %c0_61 = arith.constant 0 : index
    %107 = vector.load %arg9[%c0_60, %c0_61] : memref<1x128xf32, #tpu.memory_space<vmem>>, vector<1x128xf32>
    %108 = vector.broadcast %107 : vector<1x128xf32> to vector<8x128xf32>
    %109 = arith.addf %106, %108 : vector<8x128xf32>
    %cst_62 = arith.constant 0.000000e+00 : f32
    %110 = vector.broadcast %cst_62 : f32 to vector<8x128xf32>
    %111 = arith.maximumf %109, %110 : vector<8x128xf32>
    %112 = arith.truncf %111 : vector<8x128xf32> to vector<8x128xbf16>
    %c0_63 = arith.constant 0 : index
    %c0_64 = arith.constant 0 : index
    %113 = vector.load %arg10[%c0_63, %c0_64] : memref<128x128xbf16, #tpu.memory_space<vmem>>, vector<128x128xbf16>
    %cst_65 = arith.constant dense<0.000000e+00> : vector<8x128xf32>
    %114 = tpu.matmul %112, %113, %cst_65 {dimension_numbers = #tpu.dot_dimension_numbers<[1], [0], [0], [1], [0, 0, 1, 1], [], []>} : vector<8x128xbf16>, vector<128x128xbf16>, vector<8x128xf32> -> vector<8x128xf32>
    %c0_66 = arith.constant 0 : index
    %c0_67 = arith.constant 0 : index
    %115 = vector.load %arg11[%c0_66, %c0_67] : memref<1x128xf32, #tpu.memory_space<vmem>>, vector<1x128xf32>
    %116 = vector.broadcast %115 : vector<1x128xf32> to vector<8x128xf32>
    %117 = arith.addf %114, %116 : vector<8x128xf32>
    %c0_68 = arith.constant 0 : index
    %c0_69 = arith.constant 0 : index
    %118 = vector.load %arg12[%c0_68, %c0_69] : memref<8x128xf32, #tpu.memory_space<vmem>>, vector<8x128xf32>
    tpu.vector_store %arg12[%c0_68, %c0_69], %117 {strides = array<i32>} : memref<8x128xf32, #tpu.memory_space<vmem>>, vector<8x128xf32>,
    return
  }
  func.func @transform_0(%arg0: i32) -> (i32, i32, i32, i32) {
    %c0_i32 = arith.constant 0 : i32
    %c0_i32_0 = arith.constant 0 : i32
    %c0_i32_1 = arith.constant 0 : i32
    %c0_i32_2 = arith.constant 0 : i32
    return %arg0, %c0_i32, %c0_i32_0, %c0_i32_1 : i32, i32, i32, i32
  }
  func.func @transform_1(%arg0: i32) -> (i32, i32, i32) {
    %c0_i32 = arith.constant 0 : i32
    %c0_i32_0 = arith.constant 0 : i32
    %c0_i32_1 = arith.constant 0 : i32
    %c0_i32_2 = arith.constant 0 : i32
    return %c0_i32, %c0_i32_0, %c0_i32_1 : i32, i32, i32
  }
  func.func @transform_2(%arg0: i32) -> (i32, i32) {
    %c0_i32 = arith.constant 0 : i32
    %c0_i32_0 = arith.constant 0 : i32
    %c0_i32_1 = arith.constant 0 : i32
    return %c0_i32, %c0_i32_0 : i32, i32
  }
  func.func @transform_3(%arg0: i32) -> (i32, i32, i32) {
    %c0_i32 = arith.constant 0 : i32
    %c0_i32_0 = arith.constant 0 : i32
    %c0_i32_1 = arith.constant 0 : i32
    %c0_i32_2 = arith.constant 0 : i32
    return %c0_i32, %c0_i32_0, %c0_i32_1 : i32, i32, i32
  }
  func.func @transform_4(%arg0: i32) -> (i32, i32) {
    %c0_i32 = arith.constant 0 : i32
    %c0_i32_0 = arith.constant 0 : i32
    %c0_i32_1 = arith.constant 0 : i32
    return %c0_i32, %c0_i32_0 : i32, i32
  }
  func.func @transform_5(%arg0: i32) -> (i32, i32) {
    %c0_i32 = arith.constant 0 : i32
    %c0_i32_0 = arith.constant 0 : i32
    %c0_i32_1 = arith.constant 0 : i32
    return %c0_i32, %c0_i32_0 : i32, i32
  }
  func.func @transform_6(%arg0: i32) -> (i32, i32) {
    %c0_i32 = arith.constant 0 : i32
    %c0_i32_0 = arith.constant 0 : i32
    %c0_i32_1 = arith.constant 0 : i32
    return %c0_i32, %c0_i32_0 : i32, i32
  }
  func.func @transform_7(%arg0: i32) -> (i32, i32) {
    %c0_i32 = arith.constant 0 : i32
    %c0_i32_0 = arith.constant 0 : i32
    %c0_i32_1 = arith.constant 0 : i32
    return %c0_i32, %c0_i32_0 : i32, i32
  }
  func.func @transform_8(%arg0: i32) -> (i32, i32) {
    %c0_i32 = arith.constant 0 : i32
    %c0_i32_0 = arith.constant 0 : i32
    %c0_i32_1 = arith.constant 0 : i32
    return %c0_i32, %c0_i32_0 : i32, i32
  }
  func.func @transform_9(%arg0: i32) -> (i32, i32) {
    %c0_i32 = arith.constant 0 : i32
    %c0_i32_0 = arith.constant 0 : i32
    %c0_i32_1 = arith.constant 0 : i32
    return %c0_i32, %c0_i32_0 : i32, i32
  }
  func.func @transform_10(%arg0: i32) -> (i32, i32) {
    %c0_i32 = arith.constant 0 : i32
    %c0_i32_0 = arith.constant 0 : i32
    %c0_i32_1 = arith.constant 0 : i32
    return %c0_i32, %c0_i32_0 : i32, i32
  }
  func.func @transform_11(%arg0: i32) -> (i32, i32) {
    %c0_i32 = arith.constant 0 : i32
    %c0_i32_0 = arith.constant 0 : i32
    return %arg0, %c0_i32 : i32, i32
  }
}

</mosaic_0001>

<bundles_post_ra>
// kernel: tile.13
= control target key start
LH: loop header
LB: loop body
LE: loop exit
PB: predicated region body
PF: predicated region fallthrough
CT: control target
= control target key end

     0   :  { %s28_s0 = inlined_call_operand.vmem [shape: f32[8], index: 0, kind: input, shape index: {}]   ;;  %s29_s1 = inlined_call_operand.vmem [shape: f32[16,8], index: 1, kind: output, shape index: {}]  }
   0x1   :  { %v4_v0 = vld [vmem:[%s28_s0] ss:$0 sm:$0xff] }
   0x2   :  { %5 = vst [vmem:[%s29_s1] sm:$0xff] %v4_v0  ;;  %8 = vst [vmem:[%s29_s1 + $0x8] sm:$0xff] %v4_v0 }

// kernel: tile.14
= control target key start
LH: loop header
LB: loop body
LE: loop exit
PB: predicated region body
PF: predicated region fallthrough
CT: control target
= control target key end

     0   :  { %s131_s10 = smov 120   ;;  %s132_s11 = smov 104   ;;  %vm3_vm0 = vcmask 64512   ;;  %vm9_vm1 = vcmask 1048512   ;;  %vm15_vm2 = vcmask 982912   ;;  %vm21_vm3 = vcmask 917312   ;;  %s207_s0 = inlined_call_operand.vmem [shape: f32[16,8], index: 0, kind: input, shape index: {}]   ;;  %s208_s1 = inlined_call_operand.vmem [shape: f32[1,128], index: 1, kind: output, shape index: {}]  }
   0x1   :  { %v101_v0 = vld [vmem:[%s207_s0 + $0xf] sm:$0x1]   ;;  %v103_v1 = vld [vmem:[%s207_s0 + $0xd] sm:$0x1]   ;;  %v102_v2 = vld [vmem:[%s207_s0 + $0xe] sm:$0x1]  }
   0x2   :  { %7 = vrot.lane.b32.xlu0 %v101_v0, %s131_s10  ;;  %19 = vrot.lane.b32.xlu1 %v103_v1, %s132_s11  ;;  %v104_v3 = vld [vmem:[%s207_s0 + $0xc] sm:$0x1]   ;;  %s133_s16 = smov 112   ;;  %s134_s17 = smov 96   ;;  %v105_v4 = vld [vmem:[%s207_s0 + $0xb] sm:$0x1]  }
   0x3   :  { %v106_v5 = vld [vmem:[%s207_s0 + $0xa] sm:$0x1]   ;;  %v2_v6 = vld [vmem:[%s207_s0] sm:$0x1]   ;;  %s135_s24 = smov 88   ;;  %s136_s25 = smov 80  }
   0x4   :  { %4 = vst.msk [vmem:[#allocation0] sm:$0x1] %vm3_vm0, %v2_v6   ;;  %v107_v7 = vld [vmem:[%s207_s0 + $0x9] sm:$0x1]   ;;  %v108_v8 = vld [vmem:[%s207_s0 + $0x8] sm:$0x1]  }
   0x5   :  { %s137_s30 = smov 72   ;;  %s138_s2 = smov 64   ;;  %v109_v9 = vld [vmem:[%s207_s0 + $0x7] sm:$0x1]   ;;  %v110_v10 = vld [vmem:[%s207_s0 + $0x6] sm:$0x1]  }
   0x6   :  { %13 = vrot.lane.b32.xlu0 %v102_v2, %s133_s16  ;;  %25 = vrot.lane.b32.xlu1 %v104_v3, %s134_s17  ;;  %s139_s7 = smov 56   ;;  %s140_s8 = smov 48   ;;  %v111_v11 = vld [vmem:[%s207_s0 + $0x5] sm:$0x1]   ;;  %v112_v12 = vld [vmem:[%s207_s0 + $0x4] sm:$0x1]  }
   0x7   :  { %s141_s13 = smov 40   ;;  %s142_s14 = smov 32   ;;  %v113_v13 = vld [vmem:[%s207_s0 + $0x3] sm:$0x1]   ;;  %v114_v14 = vld [vmem:[%s207_s0 + $0x2] sm:$0x1]  }
   0x8   :  { %s143_s19 = smov 24   ;;  %s144_s20 = smov 16   ;;  %v115_v15 = vld [vmem:[%s207_s0 + $0x1] sm:$0x1]   ;;  %vm27_vm4 = vcmask 851712   ;;  %vm33_vm5 = vcmask 786112  }
   0x9   :  { %s145_s0 = smov 8   ;;  %vm39_vm6 = vcmask 720512   ;;  %vm45_vm7 = vcmask 654912   ;;  %vm51_vm8 = vcmask 589312   ;;  %vm57_vm9 = vcmask 523712  }
   0xa   :  { %31 = vrot.lane.b32.xlu0 %v105_v4, %s135_s24  ;;  %37 = vrot.lane.b32.xlu1 %v106_v5, %s136_s25  ;;  %vm63_vm10 = vcmask 458112   ;;  %vm69_vm11 = vcmask 392512   ;;  %vm75_vm12 = vcmask 326912   ;;  %vm81_vm13 = vcmask 261312  }
   0xb   :  { %vm87_vm14 = vcmask 195712   ;;  %vm93_vm15 = vcmask 130112  }
   0xe   :  { %43 = vrot.lane.b32.xlu0 %v107_v7, %s137_s30  ;;  %49 = vrot.lane.b32.xlu1 %v108_v8, %s138_s2 }
  0x12   :  { %55 = vrot.lane.b32.xlu0 %v109_v9, %s139_s7  ;;  %61 = vrot.lane.b32.xlu1 %v110_v10, %s140_s8 }
  0x16   :  { %67 = vrot.lane.b32.xlu0 %v111_v11, %s141_s13  ;;  %73 = vrot.lane.b32.xlu1 %v112_v12, %s142_s14 }
  0x1a   :  { %79 = vrot.lane.b32.xlu0 %v113_v13, %s143_s19  ;;  %85 = vrot.lane.b32.xlu1 %v114_v14, %s144_s20 }
  0x1e   :  { %91 = vrot.lane.b32.xlu0 %v115_v15, %s145_s0 }
  0x74   :  { %v8_v16 = vpop.permute.xlu0 %7   ;;  %v20_v17 = vpop.permute.xlu1 %19  }
  0x75   :  { %10 = vst.msk [vmem:[#allocation0] sm:$0x1] %vm9_vm1, %v8_v16  }
  0x78   :  { %v14_v18 = vpop.permute.xlu0 %13   ;;  %v26_v19 = vpop.permute.xlu1 %25  }
  0x79   :  { %16 = vst.msk [vmem:[#allocation0] sm:$0x1] %vm15_vm2, %v14_v18  }
  0x7a   :  { %22 = vst.msk [vmem:[#allocation0] sm:$0x1] %vm21_vm3, %v20_v17  }
  0x7b   :  { %28 = vst.msk [vmem:[#allocation0] sm:$0x1] %vm27_vm4, %v26_v19  }
  0x7c   :  { %v32_v20 = vpop.permute.xlu0 %31   ;;  %v38_v21 = vpop.permute.xlu1 %37  }
  0x7d   :  { %34 = vst.msk [vmem:[#allocation0] sm:$0x1] %vm33_vm5, %v32_v20  }
  0x7e   :  { %40 = vst.msk [vmem:[#allocation0] sm:$0x1] %vm39_vm6, %v38_v21  }
  0x80   :  { %v44_v22 = vpop.permute.xlu0 %43   ;;  %v50_v23 = vpop.permute.xlu1 %49  }
  0x81   :  { %46 = vst.msk [vmem:[#allocation0] sm:$0x1] %vm45_vm7, %v44_v22  }
  0x82   :  { %52 = vst.msk [vmem:[#allocation0] sm:$0x1] %vm51_vm8, %v50_v23  }
  0x84   :  { %v56_v24 = vpop.permute.xlu0 %55   ;;  %v62_v25 = vpop.permute.xlu1 %61  }
  0x85   :  { %58 = vst.msk [vmem:[#allocation0] sm:$0x1] %vm57_vm9, %v56_v24  }
  0x86   :  { %64 = vst.msk [vmem:[#allocation0] sm:$0x1] %vm63_vm10, %v62_v25  }
  0x88   :  { %v68_v26 = vpop.permute.xlu0 %67   ;;  %v74_v27 = vpop.permute.xlu1 %73  }
  0x89   :  { %70 = vst.msk [vmem:[#allocation0] sm:$0x1] %vm69_vm11, %v68_v26  }
  0x8a   :  { %76 = vst.msk [vmem:[#allocation0] sm:$0x1] %vm75_vm12, %v74_v27  }
  0x8c   :  { %v80_v28 = vpop.permute.xlu0 %79   ;;  %v86_v29 = vpop.permute.xlu1 %85  }
  0x8d   :  { %82 = vst.msk [vmem:[#allocation0] sm:$0x1] %vm81_vm13, %v80_v28  }
  0x8e   :  { %88 = vst.msk [vmem:[#allocation0] sm:$0x1] %vm87_vm14, %v86_v29  }
  0x90   :  { %v92_v30 = vpop.permute.xlu0 %91  }
  0x91   :  { %94 = vst.msk [vmem:[#allocation0] sm:$0x1] %vm93_vm15, %v92_v30  }
  0x98   :  { %v98_v31 = vld [vmem:[#allocation0] sm:$0x1] }
  0x99   :  { %100 = vst [vmem:[%s208_s1] sm:$0x1] %v98_v31 }

// kernel: tile.18
= control target key start
LH: loop header
LB: loop body
LE: loop exit
PB: predicated region body
PF: predicated region fallthrough
CT: control target
= control target key end

     0   :  { %s22_s0 = inlined_call_operand.vmem [shape: f32[16], index: 0, kind: input, shape index: {}]   ;;  %s23_s1 = inlined_call_operand.vmem [shape: f32[6,16], index: 1, kind: output, shape index: {}]  }
   0x1   :  { %v4_v0 = vld [vmem:[%s22_s0] ss:$0 sm:$0xff] }
   0x2   :  { %5 = vst [vmem:[%s23_s1] sm:$0xff] %v4_v0 }

// kernel: tile.19
= control target key start
LH: loop header
LB: loop body
LE: loop exit
PB: predicated region body
PF: predicated region fallthrough
CT: control target
= control target key end

     0   :  { %s51_s10 = smov 80   ;;  %s52_s11 = smov 48   ;;  %vm3_vm0 = vcmask 130048   ;;  %vm9_vm1 = vcmask 786048   ;;  %vm15_vm2 = vcmask 654848   ;;  %vm21_vm3 = vcmask 523648   ;;  %s87_s0 = inlined_call_operand.vmem [shape: f32[6,16], index: 0, kind: input, shape index: {}]   ;;  %s88_s1 = inlined_call_operand.vmem [shape: f32[96], index: 1, kind: output, shape index: {}]  }
   0x1   :  { %v41_v0 = vld [vmem:[%s87_s0 + $0x5] sm:$0x1]   ;;  %v43_v1 = vld [vmem:[%s87_s0 + $0x3] sm:$0x1]   ;;  %v42_v2 = vld [vmem:[%s87_s0 + $0x4] sm:$0x1]  }
   0x2   :  { %7 = vrot.lane.b32.xlu0 %v41_v0, %s51_s10  ;;  %19 = vrot.lane.b32.xlu1 %v43_v1, %s52_s11  ;;  %v44_v3 = vld [vmem:[%s87_s0 + $0x2] sm:$0x1]   ;;  %v2_v4 = vld [vmem:[%s87_s0] sm:$0x1]   ;;  %s53_s18 = smov 64   ;;  %s54_s19 = smov 32  }
   0x3   :  { %4 = vst.msk [vmem:[#allocation0] sm:$0x1] %vm3_vm0, %v2_v4   ;;  %v45_v5 = vld [vmem:[%s87_s0 + $0x1] sm:$0x1]   ;;  %s55_s0 = smov 16   ;;  %vm27_vm4 = vcmask 392448  }
   0x4   :  { %vm33_vm5 = vcmask 261248  }
   0x6   :  { %13 = vrot.lane.b32.xlu0 %v42_v2, %s53_s18  ;;  %25 = vrot.lane.b32.xlu1 %v44_v3, %s54_s19 }
   0xa   :  { %31 = vrot.lane.b32.xlu0 %v45_v5, %s55_s0 }
  0x74   :  { %v8_v6 = vpop.permute.xlu0 %7   ;;  %v20_v7 = vpop.permute.xlu1 %19  }
  0x75   :  { %10 = vst.msk [vmem:[#allocation0] sm:$0x1] %vm9_vm1, %v8_v6  }
  0x78   :  { %v14_v8 = vpop.permute.xlu0 %13   ;;  %v26_v9 = vpop.permute.xlu1 %25  }
  0x79   :  { %16 = vst.msk [vmem:[#allocation0] sm:$0x1] %vm15_vm2, %v14_v8  }
  0x7a   :  { %22 = vst.msk [vmem:[#allocation0] sm:$0x1] %vm21_vm3, %v20_v7  }
  0x7b   :  { %28 = vst.msk [vmem:[#allocation0] sm:$0x1] %vm27_vm4, %v26_v9  }
  0x7c   :  { %v32_v10 = vpop.permute.xlu0 %31  }
  0x7d   :  { %34 = vst.msk [vmem:[#allocation0] sm:$0x1] %vm33_vm5, %v32_v10  }
  0x84   :  { %v38_v11 = vld [vmem:[#allocation0] sm:$0x1] }
  0x85   :  { %40 = vst [vmem:[%s88_s1] sm:$0x1] %v38_v11 }

// kernel: lenet5_forward.1
= control target key start
LH: loop header
LB: loop body
LE: loop exit
PB: predicated region body
PF: predicated region fallthrough
CT: control target
= control target key end

     0   :  { %s7117_s17 = smov 0   ;;  %s9942_s0 = inlined_call_operand.vmem [shape: bf16[16,2,24,128], index: 0, kind: input, shape index: {}]   ;;  %s9943_s1 = inlined_call_operand.vmem [shape: bf16[6,128,128], index: 1, kind: input, shape index: {}]   ;;  %s9944_s2 = inlined_call_operand.vmem [shape: f32[1,128], index: 2, kind: input, shape index: {}]   ;;  %s9945_s3 = inlined_call_operand.vmem [shape: bf16[6,128,128], index: 3, kind: input, shape index: {}]   ;;  %s9946_s4 = inlined_call_operand.vmem [shape: f32[1,128], index: 4, kind: input, shape index: {}]   ;;  %s9947_s5 = inlined_call_operand.vmem [shape: bf16[400,128], index: 5, kind: input, shape index: {}]   ;;  %s9948_s6 = inlined_call_operand.vmem [shape: f32[1,128], index: 6, kind: input, shape index: {}]   ;;  %s9949_s7 = inlined_call_operand.vmem [shape: bf16[128,128], index: 7, kind: input, shape index: {}]   ;;  %s9950_s8 = inlined_call_operand.vmem [shape: f32[1,128], index: 8, kind: input, shape index: {}]   ;;  %s9951_s9 = inlined_call_operand.vmem [shape: bf16[128,128], index: 9, kind: input, shape index: {}]   ;;  %s9952_s10 = inlined_call_operand.vmem [shape: f32[1,128], index: 10, kind: input, shape index: {}]   ;;  %s9953_s11 = inlined_call_operand.vmem [shape: f32[16,128], index: 11, kind: output, shape index: {}]  }
   0x1 LB: > { %s7123_s18 = sadd.s32 4294967295, %s7045_s17   ;;  %p5785_p0 = scmp.ge.s32.totalorder %s7045_s17, 1  ;;  %s7045_s17 = sphi %s7117_s17, %s21_s17  }
   0x2   : > { %p339_p1 = scmp.lt.s32.totalorder %s7045_s17, 3 }
   0x4   : > { %p340_p2 = pnand %p5785_p0, %p339_p1 }
   0x6   : > { %343 = sbr.rel (%p340_p2) target bundleno = 1751 (0x6d7), region = 64 }
   0xd   : > { %v6871_v0 = vld [vmem:[%s9943_s1 + $0x40] sm:$0xff]   ;;  %s5786_s21 = sshll.u32 %s7123_s18, 3  ;;  %v6872_v1 = vld [vmem:[%s9943_s1 + $0x48] sm:$0xff]   ;;  %v6873_v2 = vld [vmem:[%s9943_s1 + $0x50] sm:$0xff]   ;;  %vm858_vm0 = vsmask.f32 3328 }
   0xe   : > { %p380_p3 = scmp.lt.s32.totalorder %s5786_s21, 15  ;;  %6372 = vmatprep.subr.bf16.mxu0 %v6871_v0  ;;  %v6874_v3 = vld [vmem:[%s9943_s1 + $0x58] sm:$0xff]   ;;  %v6875_v7 = vld [vmem:[%s9943_s1 + $0x60] sm:$0xff]   ;;  %v6876_v8 = vld [vmem:[%s9943_s1 + $0x68] sm:$0xff]   ;;  %vm859_vm1 = vsmask.f32 7440 }
   0xf   : > { %6373 = vmatpush3.bf16.msra.mxu0 %v6871_v0  ;;  %v6877_v9 = vld [vmem:[%s9943_s1 + $0x70] sm:$0xff]   ;;  %v6878_v10 = vld [vmem:[%s9943_s1 + $0x78] sm:$0xff]   ;;  %v6881_v17 = vld [vmem:[%s9943_s1] sm:$0xff]   ;;  %vm1673_vm3 = vcmask 1042432   ;;  %vm1674_vm4 = vcmask 1046532   ;;  %vm7048_vm6 = vmmov 0  }
  0x10   : > { %s10415_s21 = smov (!%p380_p3, %s5786_s21), 15  ;;  %6374 = vmatprep.subr.bf16.mxu0 %v6872_v1  ;;  %v6882_v31 = vld [vmem:[%s9943_s1 + $0x8] sm:$0xff]   ;;  %v6885_v43 = vld [vmem:[%s9943_s1 + $0x10] sm:$0xff]   ;;  %v6886_v56 = vld [vmem:[%s9943_s1 + $0x18] sm:$0xff]   ;;  %vm3401_vm7 = vcmask 1041409   ;;  %vm3404_vm8 = vcmask 1042434  }
  0x11   : > { %s6852_s26 = smul.u32 24, %s10415_s21  ;;  %vm7286_vm2 = vmor %vm858_vm0, %vm859_vm1  ;;  %v6897_v49 = vld [vmem:[%s9943_s1 + $0x80] sm:$0xff]   ;;  %vm3407_vm9 = vcmask 1043459   ;;  %vm3410_vm10 = vcmask 1044484   ;;  %vm3413_vm11 = vcmask 1045509   ;;  %vm3416_vm12 = vcmask 1046534  }
  0x12   : > { %vm7761_vm5 = vmor %vm1673_vm3, %vm1674_vm4  ;;  %vm3419_vm13 = vcmask 1047559   ;;  %s7053_s20 = smov 80   ;;  %s7054_s21 = smov 112   ;;  %vm5200_vm14 = vcmask 261120   ;;  %vm5203_vm15 = vcmask 916480   ;;  %vm5195_vm0 = vcmask 654336  }
  0x13   : > { %6375 = vmatpush3.bf16.msra.mxu0 %v6872_v1  ;;  %s7140_s29 = scalar_lea.vmem %s9942_s0, %s6852_s26  ;;  %s7055_s22 = smov 32   ;;  %vm5207_vm1 = vcmask 523264  }
  0x14   : > { %6376 = vmatprep.subr.bf16.mxu0 %v6873_v2  ;;  %v7146_v4 = vld [vmem:[%s7140_s29 + $0xc] sm:$0xf]  ;;  %v7149_v5 = vld [vmem:[%s7140_s29 + $0x10] sm:$0xf]  ;;  %v7166_v11 = vld [vmem:[%s7140_s29 + $0x24] sm:$0xf] }
  0x15   : > { %10086 = vst [vmem:[#allocation2_spill] sm:$0xff] %v7146_v4  ;;  %v5805_v6 = vcombine.low %v7146_v4, %v7149_v5  ;;  %10087 = vst [vmem:[#allocation3_spill] sm:$0xff] %v7166_v11  ;;  %v7169_v12 = vld [vmem:[%s7140_s29 + $0x28] sm:$0xf]  ;;  %v1288_v13 = vshrl.u32 %v7166_v11, 16  ;;  %v1291_v14 = vshll.u32 %v7166_v11, 16 }
  0x16   : > { %10088 = vst [vmem:[#allocation4_spill] sm:$0xff] %v7169_v12  ;;  %v1297_v15 = vshll.u32 %v7169_v12, 16  ;;  %v1301_v16 = vshrl.u32 %v7169_v12, 16  ;;  %v7179_v18 = vld [vmem:[%s7140_s29 + $0x3c] sm:$0xf]  ;;  %v1264_v20 = vshrl.u32 %v7146_v4, 16  ;;  %v5806_v24 = vcombine.low %v7166_v11, %v7169_v12 }
  0x17   : > { %6377 = vmatpush3.bf16.msra.mxu0 %v6873_v2  ;;  %6388 = vmatprep.mubr.bf16.mxu0 %v5805_v6  ;;  %v7182_v19 = vld [vmem:[%s7140_s29 + $0x40] sm:$0xf]  ;;  %v1267_v21 = vshll.u32 %v7146_v4, 16  ;;  %v1273_v22 = vshll.u32 %v7149_v5, 16  ;;  %v1277_v23 = vshrl.u32 %v7149_v5, 16  ;;  %v1290_v25 = vrot.slane %v1288_v13, 4 }
  0x18   : > { %6378 = vmatprep.subr.bf16.mxu0 %v6874_v3  ;;  %v1293_v26 = vrot.slane %v1291_v14, 5  ;;  %v7190_v27 = vrot.slane %v1297_v15, 5  ;;  %v1303_v28 = vrot.slane %v1301_v16, 4  ;;  %v5807_v29 = vcombine.low %v7179_v18, %v7182_v19  ;;  %v7210_v40 = vld [vmem:[%s7140_s29 + $0x54] sm:$0xf]  ;;  %v6889_v6 = vld [vmem:[%s9943_s1 + $0x20] sm:$0xff]  }
  0x19   : > { %v7198_v32 = vrot.slane %v1264_v20, 4  ;;  %v7200_v33 = vrot.slane %v1267_v21, 5  ;;  %v9954_v35 = vrot.slane %v7169_v12, 5  ;;  %v7204_v36 = vrot.slane %v1273_v22, 5  ;;  %v7213_v41 = vld [vmem:[%s7140_s29 + $0x58] sm:$0xf] }
  0x1a   : > { %v7206_v37 = vrot.slane %v1277_v23, 4  ;;  %v1294_v38 = vor.u32 %v1293_v26, %v1290_v25  ;;  %v1304_v39 = vor.u32 %v1303_v28, %v7190_v27  ;;  %v7220_v44 = vld [vmem:[%s7140_s29 + $0x6c] sm:$0xf]  ;;  %v7223_v45 = vld [vmem:[%s7140_s29 + $0x70] sm:$0xf]  ;;  %v5808_v50 = vcombine.low %v7210_v40, %v7213_v41  ;;  %v6926_v21 = vld [vmem:[%s9943_s1 + $0x138] sm:$0xff]  }
  0x1b   : > { %6379 = vmatpush3.bf16.msra.mxu0 %v6874_v3  ;;  %v7227_v46 = vrot.slane %v9954_v35, 4  ;;  %v5809_v57 = vcombine.low %v7220_v44, %v7223_v45  ;;  %v7249_v60 = vld [vmem:[%s7140_s29 + $0x84] sm:$0xf]  ;;  %v7252_v61 = vld [vmem:[%s7140_s29 + $0x88] sm:$0xf]  ;;  %s7056_s23 = smov 64  }
  0x1c   : > { %6380 = vmatprep.subr.bf16.mxu0 %v6875_v7  ;;  %v7236_v53 = vrot.slane %v1294_v38, 4  ;;  %v7238_v54 = vrot.slane %v1304_v39, 4  ;;  %v7259_v2 = vld [vmem:[%s7140_s29 + $0x9c] sm:$0xf]  ;;  %v7262_v3 = vld [vmem:[%s7140_s29 + $0xa0] sm:$0xf]  ;;  %v5810_v14 = vcombine.low %v7249_v60, %v7252_v61 }
  0x1d   : > { %10089 = vst [vmem:[#allocation5_spill] sm:$0xff] %v7227_v46  ;;  %v7274_v13 = vld [vmem:[%s7140_s29 + $0xb8] sm:$0xf]  ;;  %v6890_v15 = vld [vmem:[%s9943_s1 + $0x28] sm:$0xff]   ;;  %v7284_v20 = vld [vmem:[%s7140_s29] sm:$0xf]  ;;  %v5811_v22 = vcombine.low %v7259_v2, %v7262_v3 }
  0x1e   : > { %10090 = vst [vmem:[#allocation6_spill] sm:$0xff] %v7284_v20  ;;  %v7293_v23 = vld [vmem:[%s7140_s29 + $0x4] sm:$0xf]  ;;  %v862_v26 = vshrl.u32 %v7284_v20, 16  ;;  %v865_v28 = vshll.u32 %v7284_v20, 16  ;;  %p386_p4 = scmp.lt.s32.totalorder %s7123_s18, 1 }
  0x1f   : > { %6381 = vmatpush3.bf16.msra.mxu0 %v6875_v7  ;;  %10093 = vst [vmem:[#allocation7_spill] sm:$0xff] %v7293_v23  ;;  %v7307_v38 = vld [vmem:[%s7140_s29 + $0x1c] sm:$0xf]  ;;  %v7319_v42 = vld [vmem:[%s7140_s29 + $0x34] sm:$0xf]  ;;  %v5821_v0 = vcombine.low %v7284_v20, %v7293_v23  ;;  %v871_v47 = vshll.u32 %v7293_v23, 16 }
  0x20   : > { %6382 = vmatprep.subr.bf16.mxu0 %v6876_v8  ;;  %10095 = vst [vmem:[#allocation9_spill] sm:$0xff] %v7307_v38  ;;  %10097 = vst [vmem:[#allocation11_spill] sm:$0xff] %v7319_v42  ;;  %v7325_v25 = vld [vmem:[%s7140_s29 + $0x48] sm:$0xf]  ;;  %v7350_v59 = vld [vmem:[%s7140_s29 + $0x78] sm:$0xf] }
  0x21   : > { %10098 = vst [vmem:[#allocation12_spill] sm:$0xff] %v7325_v25  ;;  %v7353_v58 = vld [vmem:[%s7140_s29 + $0x7c] sm:$0xf]  ;;  %v864_v55 = vrot.slane %v862_v26, 4  ;;  %v867_v52 = vrot.slane %v865_v28, 5  ;;  %v895_v28 = vshll.u32 %v7307_v38, 16 }
  0x22   : > { %10102 = vst [vmem:[#allocation16_spill] sm:$0xff] %v7353_v58  ;;  %v7359_v48 = vld [vmem:[%s7140_s29 + $0x8] sm:$0xf]  ;;  %v7366_v62 = vld [vmem:[%s7140_s29 + $0x20] sm:$0xf]  ;;  %s10417_s18 = smov (!%p386_p4, %s7123_s18), 1 }
  0x23   : > { %6383 = vmatpush3.bf16.msra.mxu0 %v6876_v8  ;;  %v7336_v8 = vld [vmem:[%s7140_s29 + $0x64] sm:$0xf]  ;;  %10103 = vst [vmem:[#allocation17_spill] sm:$0xff] %v7359_v48  ;;  %10104 = vst [vmem:[#allocation18_spill] sm:$0xff] %v7366_v62  ;;  %v7369_v63 = vld [vmem:[%s7140_s29 + $0x94] sm:$0xf] }
  0x24   : > { %6384 = vmatprep.subr.bf16.mxu0 %v6877_v9  ;;  %10101 = vst [vmem:[#allocation15_spill] sm:$0xff] %v7336_v8  ;;  %v905_v26 = vshll.u32 %v7366_v62, 16  ;;  %v7398_v34 = vrot.slane %v895_v28, 5  ;;  %s5788_s25 = sshll.u32 %s10417_s18, 3 }
  0x25   : > { %s389_s12 = scalar_lea.vmem %s9953_s11, %s5788_s25 }
  0x27   : > { %6385 = vmatpush3.bf16.msra.mxu0 %v6877_v9  ;;  %v7333_v9 = vld [vmem:[%s7140_s29 + $0x60] sm:$0xf] }
  0x28   : > { %6386 = vmatprep.subr.bf16.mxu0 %v6878_v10  ;;  %10100 = vst [vmem:[#allocation14_spill] sm:$0xff] %v7333_v9  ;;  %v10114_v11 = vshrl.u32 %v7333_v9, 16  ;;  %v10115_v12 = vshll.u32 %v7333_v9, 16 }
  0x2b   : > { %6387 = vmatpush3.bf16.msra.mxu0 %v6878_v10  ;;  %v7271_v10 = vld [vmem:[%s7140_s29 + $0xb4] sm:$0xf] }
  0x2c   : > { %6404 = vmatprep.subr.bf16.mxu0 %v6881_v17 }
  0x2e   : > { %6389 = vmatmul.mubr.bf16.vlgmr.msra.gmra.mrb[0].mxu0 %v5806_v24  ;;  %v7363_v24 = vld [vmem:[%s7140_s29 + $0x90] sm:$0xf] }
  0x2f   : > { %6405 = vmatpush3.bf16.msra.mxu0 %v6881_v17  ;;  %6392 = vmatprep.mubr.bf16.mxu0 %v5807_v29  ;;  %v875_v29 = vshrl.u32 %v7293_v23, 16  ;;  %v6898_v17 = vld [vmem:[%s9943_s1 + $0x88] sm:$0xff]  }
  0x30   : > { %6406 = vmatprep.subr.bf16.mxu0 %v6882_v31 }
  0x31   : > { %v877_v51 = vrot.slane %v875_v29, 4  ;;  %v919_v29 = vshll.u32 %v7319_v42, 16 }
  0x33   : > { %6407 = vmatpush3.bf16.msra.mxu0 %v6882_v31  ;;  %v7304_v31 = vld [vmem:[%s7140_s29 + $0x18] sm:$0xf] }
  0x34   : > { %6408 = vmatprep.subr.bf16.mxu0 %v6885_v43  ;;  %10094 = vst [vmem:[#allocation8_spill] sm:$0xff] %v7304_v31  ;;  %v886_v39 = vshrl.u32 %v7304_v31, 16  ;;  %v5822_v16 = vcombine.low %v7304_v31, %v7307_v38 }
  0x36   : > { %6393 = vmatmul.mubr.bf16.gmra.mrb[4].mxu0 %v5808_v50  ;;  %v7312_v50 = vld [vmem:[%s7140_s29 + $0x30] sm:$0xf]  ;;  %v888_v1 = vrot.slane %v886_v39, 4 }
  0x37   : > { %6409 = vmatpush3.bf16.msra.mxu0 %v6885_v43  ;;  %6396 = vmatprep.mubr.bf16.mxu0 %v5809_v57  ;;  %v889_v43 = vshll.u32 %v7304_v31, 16  ;;  %10096 = vst [vmem:[#allocation10_spill] sm:$0xff] %v7312_v50  ;;  %v899_v57 = vshrl.u32 %v7307_v38, 16 }
  0x38   : > { %6410 = vmatprep.subr.bf16.mxu0 %v6886_v56 }
  0x39   : > { %v891_v7 = vrot.slane %v889_v43, 5  ;;  %v901_v30 = vrot.slane %v899_v57, 4  ;;  %v7410_v43 = vrot.slane %v905_v26, 5  ;;  %v6901_v57 = vld [vmem:[%s9943_s1 + $0x90] sm:$0xff]   ;;  %v7433_v26 = vld [vmem:[%s7140_s29 + $0x2c] sm:$0xf] }
  0x3a   : > { %10110 = vst [vmem:[#allocation21_spill] sm:$0xff] %v7433_v26 }
  0x3b   : > { %6411 = vmatpush3.bf16.msra.mxu0 %v6886_v56  ;;  %v6893_v56 = vld [vmem:[%s9943_s1 + $0x30] sm:$0xff]   ;;  %v892_v28 = vor.u32 %v891_v7, %v888_v1  ;;  %v902_v7 = vor.u32 %v901_v30, %v7398_v34 }
  0x3c   : > { %6412 = vmatprep.subr.bf16.mxu0 %v6889_v6 }
  0x3e   : > { %6397 = vmatmul.mubr.bf16.gmra.mrb[8].mxu0 %v5810_v14  ;;  %v7328_v14 = vld [vmem:[%s7140_s29 + $0x4c] sm:$0xf] }
  0x3f   : > { %6413 = vmatpush3.bf16.msra.mxu0 %v6889_v6  ;;  %6400 = vmatprep.mubr.bf16.mxu0 %v5811_v22  ;;  %10099 = vst [vmem:[#allocation13_spill] sm:$0xff] %v7328_v14  ;;  %v5812_v6 = vcombine.low %v7271_v10, %v7274_v13  ;;  %v6894_v22 = vld [vmem:[%s9943_s1 + $0x38] sm:$0xff]  }
  0x40   : > { %6414 = vmatprep.subr.bf16.mxu0 %v6890_v15 }
  0x43   : > { %6415 = vmatpush3.bf16.msra.mxu0 %v6890_v15  ;;  %v868_v15 = vor.u32 %v867_v52, %v864_v55  ;;  %v7390_v55 = vld [vmem:[%s7140_s29 + $0xa8] sm:$0xf]  ;;  %v1270_v52 = vor.u32 %v7200_v33, %v7198_v32  ;;  %v10106_v32 = vshrl.u32 %v7312_v50, 16 }
  0x44   : > { %6416 = vmatprep.subr.bf16.mxu0 %v6893_v56 }
  0x45   : > { %v7401_v62 = vrot.slane %v868_v15, 4  ;;  %v7416_v15 = vld [vmem:[%s7140_s29 + $0x38] sm:$0xf]  ;;  %v912_v33 = vrot.slane %v10106_v32, 4  ;;  %v943_v32 = vshll.u32 %v7328_v14, 16 }
  0x46   : > { %6401 = vmatmul.mubr.bf16.gmra.mrb[12].mxu0 %v5812_v6  ;;  %v5823_v6 = vcombine.low %v7312_v50, %v7319_v42  ;;  %10105 = vst [vmem:[#allocation19_spill] sm:$0xff] %v7416_v15  ;;  %v929_v30 = vshll.u32 %v7416_v15, 16  ;;  %v7457_v15 = vld [vmem:[%s7140_s29 + $0x50] sm:$0xf] }
  0x47   : > { %6417 = vmatpush3.bf16.msra.mxu0 %v6893_v56  ;;  %6420 = vmatprep.mubr.bf16.mxu0 %v5821_v0  ;;  %v881_v56 = vshll.u32 %v7359_v48, 16  ;;  %v7378_v0 = vrot.slane %v871_v47, 5  ;;  %v7393_v47 = vld [vmem:[%s7140_s29 + $0xac] sm:$0xf]  ;;  %v7422_v48 = vrot.slane %v919_v29, 5  ;;  %v5825_v29 = vcombine.low %v7333_v9, %v7336_v8 }
  0x48   : > { %6418 = vmatprep.subr.bf16.mxu0 %v6894_v22  ;;  %v7467_v46 = vrot.slane %v943_v32, 5 }
  0x49   : > { %v878_v39 = vor.u32 %v877_v51, %v7378_v0  ;;  %v7408_v31 = vrot.slane %v881_v56, 5  ;;  %v10108_v51 = vshrl.u32 %v7319_v42, 16  ;;  %v5824_v56 = vcombine.low %v7325_v25, %v7328_v14 }
  0x4a   : > { %v967_v42 = vshll.u32 %v7336_v8, 16 }
  0x4b   : > { %6419 = vmatpush3.bf16.msra.mxu0 %v6894_v22  ;;  %v1280_v22 = vor.u32 %v7206_v37, %v7204_v36  ;;  %v10107_v37 = vshll.u32 %v7312_v50, 16  ;;  %v7426_v1 = vrot.slane %v10108_v51, 4  ;;  %v7440_v51 = vrot.slane %v878_v39, 4 }
  0x4c   : > { %6436 = vmatprep.subr.bf16.mxu0 %v6897_v49  ;;  %v7454_v39 = vrot.slane %v902_v7, 4  ;;  %v7481_v32 = vrot.slane %v967_v42, 5 }
  0x4d   : > { %v915_v35 = vrot.slane %v10107_v37, 5  ;;  %v1271_v37 = vrot.slane %v1270_v52, 4  ;;  %v1281_v38 = vrot.slane %v1280_v22, 4  ;;  %v5826_v52 = vcombine.low %v7350_v59, %v7353_v58 }
  0x4e   : > { %6421 = vmatmul.mubr.bf16.vlgmr.msra.gmra.mrb[0].mxu0 %v5822_v16  ;;  %v7430_v16 = vld [vmem:[%s7140_s29 + $0x14] sm:$0xf]  ;;  %v926_v22 = vor.u32 %v7426_v1, %v7422_v48  ;;  %v6905_v1 = vld [vmem:[%s9943_s1 + $0xa0] sm:$0xff]  }
  0x4f   : > { %6437 = vmatpush3.bf16.msra.mxu0 %v6897_v49  ;;  %6424 = vmatprep.mubr.bf16.mxu0 %v5823_v6  ;;  %10109 = vst [vmem:[#allocation20_spill] sm:$0xff] %v7430_v16  ;;  %v7442_v49 = vrot.slane %v892_v28, 4  ;;  %v10111_v6 = vshrl.u32 %v7325_v25, 16  ;;  %v1276_v20 = vsel %vm7286_vm2, %v1271_v37, %v7204_v36  ;;  %v1283_v23 = vshll.u32 %v7430_v16, 16  ;;  %v6902_v36 = vld [vmem:[%s9943_s1 + $0x98] sm:$0xff]  }
  0x50   : > { %6438 = vmatprep.subr.bf16.mxu0 %v6898_v17  ;;  %v916_v28 = vor.u32 %v915_v35, %v912_v33  ;;  %v10113_v35 = vshrl.u32 %v7328_v14, 16  ;;  %v963_v16 = vrot.slane %v10115_v12, 5  ;;  %v10117_v12 = vshrl.u32 %v7350_v59, 16 }
  0x51   : > { %v936_v50 = vrot.slane %v10111_v6, 4  ;;  %v1307_v6 = vshll.u32 %v7433_v26, 16  ;;  %v1285_v7 = vrot.slane %v1283_v23, 5  ;;  %v960_v26 = vrot.slane %v10114_v11, 4 }
  0x52   : > { %v949_v33 = vrot.slane %v10113_v35, 4  ;;  %v10116_v23 = vshrl.u32 %v7336_v8, 16  ;;  %v991_v35 = vshll.u32 %v7353_v58, 16 }
  0x53   : > { %6439 = vmatpush3.bf16.msra.mxu0 %v6898_v17  ;;  %v10112_v17 = vshll.u32 %v7325_v25, 16  ;;  %v1309_v4 = vrot.slane %v1307_v6, 5  ;;  %v7479_v25 = vld [vmem:[%s7140_s29 + $0x68] sm:$0xf]  ;;  %v1286_v11 = vsel %vm7286_vm2, %v1281_v38, %v1285_v7  ;;  %v10118_v6 = vshll.u32 %v7350_v59, 16 }
  0x54   : > { %6440 = vmatprep.subr.bf16.mxu0 %v6901_v57  ;;  %v7492_v14 = vcombine.low %v1276_v20, %v1286_v11  ;;  %v953_v38 = vshll.u32 %v7457_v15, 16  ;;  %v5827_v59 = vcombine.low %v7363_v24, %v7369_v63  ;;  %v7509_v20 = vrot.slane %v916_v28, 4  ;;  %v6906_v28 = vld [vmem:[%s9943_s1 + $0xa8] sm:$0xff]  }
  0x55   : > { %v939_v37 = vrot.slane %v10112_v17, 5  ;;  %v973_v17 = vrot.slane %v10116_v23, 4  ;;  %v987_v9 = vrot.slane %v10118_v6, 5  ;;  %v1310_v42 = vsel %vm7286_vm2, %v7238_v54, %v1309_v4 }
  0x56   : > { %6425 = vmatmul.mubr.bf16.gmra.mrb[4].mxu0 %v5824_v56  ;;  %v984_v56 = vrot.slane %v10117_v12, 4  ;;  %v7497_v23 = vrot.slane %v929_v30, 5  ;;  %v950_v4 = vor.u32 %v949_v33, %v7467_v46  ;;  %v977_v54 = vshll.u32 %v7479_v25, 16  ;;  %v7514_v30 = vld [vmem:[%s7140_s29 + $0x80] sm:$0xf] }
  0x57   : > { %6441 = vmatpush3.bf16.msra.mxu0 %v6901_v57  ;;  %6428 = vmatprep.mubr.bf16.mxu0 %v5825_v29  ;;  %v940_v8 = vor.u32 %v939_v37, %v936_v50  ;;  %v10119_v57 = vsel %vm7286_vm2, %v7236_v53, %v7190_v27  ;;  %10121 = vst [vmem:[#allocation23_spill] sm:$0xff] %v7514_v30  ;;  %v7516_v50 = vrot.slane %v991_v35, 5  ;;  %v10122_v37 = vshrl.u32 %v7353_v58, 16  ;;  %v7609_v58 = vld [vmem:[%s7140_s29 + $0x5c] sm:$0xf] }
  0x58   : > { %6442 = vmatprep.subr.bf16.mxu0 %v6902_v36  ;;  %v7505_v29 = vcombine.low %v10119_v57, %v1310_v42  ;;  %v10123_v27 = vshrl.u32 %v7363_v24, 16  ;;  %v10124_v11 = vshll.u32 %v7363_v24, 16  ;;  %v927_v33 = vrot.slane %v926_v22, 4  ;;  %v6909_v22 = vld [vmem:[%s9943_s1 + $0xb0] sm:$0xff]   ;;  %10130 = vst [vmem:[#allocation24_spill] sm:$0xff] %v7609_v58 }
  0x59   : > { %v997_v7 = vrot.slane %v10122_v37, 4  ;;  %v964_v6 = vor.u32 %v963_v16, %v960_v26  ;;  %v974_v35 = vor.u32 %v973_v17, %v7481_v32  ;;  %v988_v42 = vor.u32 %v987_v9, %v984_v56  ;;  %v7549_v26 = vld [vmem:[%s7140_s29 + $0x98] sm:$0xf] }
  0x5a   : > { %10120 = vst [vmem:[#allocation22_spill] sm:$0xff] %v7505_v29  ;;  %v1008_v53 = vrot.slane %v10123_v27, 4  ;;  %v1011_v12 = vrot.slane %v10124_v11, 5  ;;  %v7528_v57 = vrot.slane %v940_v8, 4  ;;  %v7530_v37 = vrot.slane %v953_v38, 5 }
  0x5b   : > { %6443 = vmatpush3.bf16.msra.mxu0 %v6902_v36  ;;  %v1001_v27 = vshll.u32 %v7514_v30, 16  ;;  %v1015_v11 = vshll.u32 %v7369_v63, 16  ;;  %v5828_v36 = vcombine.low %v7390_v55, %v7393_v47  ;;  %v874_v16 = vsel %vm7286_vm2, %v7401_v62, %v7378_v0 }
  0x5c   : > { %6444 = vmatprep.subr.bf16.mxu0 %v6905_v1  ;;  %v884_v8 = vsel %vm7286_vm2, %v7440_v51, %v7408_v31  ;;  %v898_v9 = vsel %vm7286_vm2, %v7442_v49, %v7398_v34  ;;  %v7554_v17 = vrot.slane %v950_v4, 4  ;;  %v7556_v62 = vrot.slane %v977_v54, 5 }
  0x5d   : > { %v998_v0 = vor.u32 %v997_v7, %v7516_v50  ;;  %v1012_v31 = vor.u32 %v1011_v12, %v1008_v53  ;;  %v7559_v51 = vrot.slane %v964_v6, 4  ;;  %v7561_v34 = vrot.slane %v974_v35, 4  ;;  %v7578_v53 = vld [vmem:[%s7140_s29 + $0xb0] sm:$0xf] }
  0x5e   : > { %6429 = vmatmul.mubr.bf16.gmra.mrb[8].mxu0 %v5826_v52  ;;  %v7563_v49 = vrot.slane %v988_v42, 4  ;;  %v1039_v52 = vshll.u32 %v7393_v47, 16  ;;  %v7566_v56 = vrot.slane %v1001_v27, 5  ;;  %v7568_v38 = vrot.slane %v1015_v11, 5  ;;  %v6910_v42 = vld [vmem:[%s9943_s1 + $0xb8] sm:$0xff]  }
  0x5f   : > { %6445 = vmatpush3.bf16.msra.mxu0 %v6905_v1  ;;  %6432 = vmatprep.mubr.bf16.mxu0 %v5827_v59  ;;  %v10125_v4 = vshrl.u32 %v7369_v63, 16  ;;  %v1025_v1 = vshll.u32 %v7549_v26, 16  ;;  %v5853_v59 = vcombine.low %v874_v16, %v884_v8  ;;  %v908_v7 = vsel %vm7286_vm2, %v7454_v39, %v7410_v43  ;;  %v7598_v16 = vld [vmem:[%s7140_s29 + $0x44] sm:$0xf] }
  0x60   : > { %6446 = vmatprep.subr.bf16.mxu0 %v6906_v28  ;;  %v10126_v12 = vshrl.u32 %v7390_v55, 16  ;;  %v1321_v35 = vshll.u32 %v7182_v19, 16  ;;  %v922_v27 = vsel %vm7286_vm2, %v7509_v20, %v7422_v48  ;;  %v932_v43 = vsel %vm7286_vm2, %v927_v33, %v7497_v23 }
  0x61   : > { %v1021_v54 = vrot.slane %v10125_v4, 4  ;;  %v7593_v39 = vrot.slane %v998_v0, 4  ;;  %v7595_v11 = vrot.slane %v1012_v31, 4  ;;  %v10127_v8 = vshll.u32 %v7390_v55, 16 }
  0x62   : > { %v1032_v6 = vrot.slane %v10126_v12, 4  ;;  %v7602_v12 = vrot.slane %v1039_v52, 5  ;;  %v10128_v30 = vshrl.u32 %v7393_v47, 16  ;;  %v10129_v48 = vshrl.u32 %v7179_v18, 16 }
  0x63   : > { %6447 = vmatpush3.bf16.msra.mxu0 %v6906_v28  ;;  %v1035_v4 = vrot.slane %v10127_v8, 5  ;;  %v10131_v23 = vshll.u32 %v7179_v18, 16  ;;  %v1345_v0 = vshll.u32 %v7213_v41, 16  ;;  %v5854_v28 = vcombine.low %v898_v9, %v908_v7 }
  0x64   : > { %v1045_v29 = vrot.slane %v10128_v30, 4  ;;  %v1314_v20 = vrot.slane %v10129_v48, 4  ;;  %6448 = vmatprep.subr.bf16.mxu0 %v6909_v22  ;;  %v5855_v55 = vcombine.low %v922_v27, %v932_v43  ;;  %v7614_v31 = vrot.slane %v1321_v35, 5  ;;  %v6911_v30 = vld [vmem:[%s9943_s1 + $0xc0] sm:$0xff]  }
  0x65   : > { %v1317_v33 = vrot.slane %v10131_v23, 5  ;;  %v10132_v52 = vshrl.u32 %v7182_v19, 16  ;;  %v1022_v8 = vor.u32 %v1021_v54, %v7568_v38  ;;  %v1049_v18 = vshll.u32 %v7578_v53, 16 }
  0x66   : > { %6433 = vmatmul.mubr.bf16.gmra.mrb[12].mxu0 %v5828_v36  ;;  %v10133_v48 = vshrl.u32 %v7210_v40, 16  ;;  %v10134_v9 = vshll.u32 %v7210_v40, 16  ;;  %v1036_v35 = vor.u32 %v1035_v4, %v1032_v6  ;;  %v1046_v19 = vor.u32 %v1045_v29, %v7602_v12 }
  0x67   : > { %v1327_v47 = vrot.slane %v10132_v52, 4  ;;  %6449 = vmatpush3.bf16.msra.mxu0 %v6909_v22  ;;  %6452 = vmatprep.mubr.bf16.mxu0 %v5853_v59  ;;  %v1331_v36 = vshll.u32 %v7598_v16, 16  ;;  %v10135_v27 = vshrl.u32 %v7213_v41, 16  ;;  %v7632_v52 = vld [vmem:[%s7140_s29 + $0x74] sm:$0xf]  ;;  %v946_v54 = vsel %vm7286_vm2, %v7528_v57, %v7467_v46  ;;  %v6912_v46 = vld [vmem:[%s9943_s1 + $0xc8] sm:$0xff]  }
  0x68   : > { %v1338_v23 = vrot.slane %v10133_v48, 4  ;;  %v1341_v7 = vrot.slane %v10134_v9, 5  ;;  %10136 = vst [vmem:[#allocation25_spill] sm:$0xff] %v7632_v52  ;;  %6450 = vmatprep.subr.bf16.mxu0 %v6910_v42  ;;  %v1318_v40 = vor.u32 %v1317_v33, %v1314_v20  ;;  %v7638_v48 = vrot.slane %v1345_v0, 5 }
  0x69   : > { %v1351_v43 = vrot.slane %v10135_v27, 4  ;;  %v1355_v22 = vshll.u32 %v7609_v58, 16  ;;  %v956_v29 = vsel %vm7286_vm2, %v7554_v17, %v7530_v37  ;;  %v1328_v41 = vor.u32 %v1327_v47, %v7614_v31 }
  0x6a   : > { %v10137_v59 = vshrl.u32 %v7220_v44, 16  ;;  %v10138_v4 = vshll.u32 %v7220_v44, 16  ;;  %v1023_v57 = vrot.slane %v1022_v8, 4  ;;  %v1027_v20 = vrot.slane %v1025_v1, 5  ;;  %v7667_v8 = vld [vmem:[%s7140_s29 + $0x8c] sm:$0xf] }
  0x6b   : > { %v7653_v33 = vrot.slane %v1049_v18, 5  ;;  %v1342_v0 = vor.u32 %v1341_v7, %v1338_v23  ;;  %6451 = vmatpush3.bf16.msra.mxu0 %v6910_v42  ;;  %v7655_v37 = vrot.slane %v1036_v35, 4  ;;  %v7657_v17 = vrot.slane %v1046_v19, 4  ;;  %10139 = vst [vmem:[#allocation26_spill] sm:$0xff] %v7667_v8  ;;  %v6913_v19 = vld [vmem:[%s9943_s1 + $0xd0] sm:$0xff]  }
  0x6c   : > { %v1362_v6 = vrot.slane %v10137_v59, 4  ;;  %v1365_v9 = vrot.slane %v10138_v4, 5  ;;  %v1369_v47 = vshll.u32 %v7223_v45, 16  ;;  %v1379_v44 = vshll.u32 %v7632_v52, 16  ;;  %6468 = vmatprep.subr.bf16.mxu0 %v6911_v30  ;;  %v6921_v52 = vld [vmem:[%s9943_s1 + $0x110] sm:$0xff]  }
  0x6d   : > { %v5856_v27 = vcombine.low %v946_v54, %v956_v29  ;;  %v7661_v59 = vrot.slane %v1318_v40, 4  ;;  %v7663_v4 = vrot.slane %v1331_v36, 5  ;;  %v1352_v1 = vor.u32 %v1351_v43, %v7638_v48 }
  0x6e   : > { %v7669_v18 = vrot.slane %v1328_v41, 4  ;;  %v7671_v42 = vrot.slane %v1355_v22, 5  ;;  %v1366_v23 = vor.u32 %v1365_v9, %v1362_v6  ;;  %v10140_v7 = vshrl.u32 %v7223_v45, 16  ;;  %6453 = vmatmul.mubr.bf16.vlgmr.msra.gmra.mrb[0].mxu0 %v5854_v28 }
  0x6f   : > { %v970_v36 = vsel %vm7286_vm2, %v7559_v51, %v7481_v32  ;;  %v980_v43 = vsel %vm7286_vm2, %v7561_v34, %v7556_v62  ;;  %v7688_v54 = vrot.slane %v1342_v0, 4  ;;  %v1393_v45 = vshll.u32 %v7252_v61, 16  ;;  %6469 = vmatpush3.bf16.msra.mxu0 %v6911_v30  ;;  %6456 = vmatprep.mubr.bf16.mxu0 %v5855_v55  ;;  %v7704_v62 = vld [vmem:[%s7140_s29 + $0xa4] sm:$0xf] }
  0x70   : > { %v7675_v35 = vrot.slane %v10140_v7, 4  ;;  %v994_v28 = vsel %vm7286_vm2, %v7563_v49, %v7516_v50  ;;  %v1004_v32 = vsel %vm7286_vm2, %v7593_v39, %v7566_v56  ;;  %v7699_v51 = vrot.slane %v1369_v47, 5  ;;  %10141 = vst [vmem:[#allocation27_spill] sm:$0xff] %v7704_v62  ;;  %6470 = vmatprep.subr.bf16.mxu0 %v6912_v46 }
  0x71   : > { %v7701_v40 = vrot.slane %v1379_v44, 5  ;;  %v1018_v34 = vsel %vm7286_vm2, %v7595_v11, %v7568_v38  ;;  %v1028_v50 = vsel %vm7286_vm2, %v1023_v57, %v1027_v20  ;;  %v7712_v49 = vrot.slane %v1352_v1, 4  ;;  %v6914_v38 = vld [vmem:[%s9943_s1 + $0xd8] sm:$0xff]  }
  0x72   : > { %v10142_v55 = vshrl.u32 %v7249_v60, 16  ;;  %v7716_v39 = vrot.slane %v1366_v23, 4  ;;  %v10143_v30 = vshll.u32 %v7249_v60, 16  ;;  %v10144_v29 = vshrl.u32 %v7252_v61, 16 }
  0x73   : > { %v1403_v6 = vshll.u32 %v7667_v8, 16  ;;  %v7726_v11 = vrot.slane %v1393_v45, 5  ;;  %v10145_v9 = vshrl.u32 %v7259_v2, 16  ;;  %v10146_v20 = vshll.u32 %v7259_v2, 16  ;;  %6471 = vmatpush3.bf16.msra.mxu0 %v6912_v46 }
  0x74   : > { %v1386_v56 = vrot.slane %v10142_v55, 4  ;;  %v1389_v22 = vrot.slane %v10143_v30, 5  ;;  %v1399_v41 = vrot.slane %v10144_v29, 4  ;;  %v1417_v60 = vshll.u32 %v7262_v3, 16  ;;  %6472 = vmatprep.subr.bf16.mxu0 %v6913_v19 }
  0x75   : > { %v1410_v57 = vrot.slane %v10145_v9, 4  ;;  %v1413_v0 = vrot.slane %v10146_v20, 5  ;;  %v5857_v47 = vcombine.low %v970_v36, %v980_v43  ;;  %v5858_v61 = vcombine.low %v994_v28, %v1004_v32 }
  0x76   : > { %v10147_v44 = vshrl.u32 %v7262_v3, 16  ;;  %v1427_v23 = vshll.u32 %v7704_v62, 16  ;;  %v1441_v7 = vshll.u32 %v7274_v13, 16  ;;  %v5907_v45 = vrot.slane %v7363_v24, 9  ;;  %6457 = vmatmul.mubr.bf16.gmra.mrb[4].mxu0 %v5856_v27  ;;  %v6915_v3 = vld [vmem:[%s9943_s1 + $0xe0] sm:$0xff]  }
  0x77   : > { %v5859_v2 = vcombine.low %v1018_v34, %v1028_v50  ;;  %v1042_v46 = vsel %vm7286_vm2, %v7655_v37, %v7602_v12  ;;  %v10148_v36 = vshrl.u32 %v7271_v10, 16  ;;  %v1720_v28 = vrot.slane %v7369_v63, 5  ;;  %v7757_v12 = vld [vmem:[%s7140_s29 + $0xbc] sm:$0xf]  ;;  %6473 = vmatpush3.bf16.msra.mxu0 %v6913_v19  ;;  %6460 = vmatprep.mubr.bf16.mxu0 %v5857_v47  ;;  %v10155_v19 = vld [vmem:[#allocation2_spill] sm:$0xff]  ;;  %v6937_v63 = vld [vmem:[%s9945_s3 + $0x50] sm:$0xff]  }
  0x78   : > { %v1423_v1 = vrot.slane %v10147_v44, 4  ;;  %v1052_v24 = vsel %vm7286_vm2, %v7657_v17, %v7653_v33  ;;  %v1376_v32 = vor.u32 %v7675_v35, %v7699_v51  ;;  %v7754_v34 = vrot.slane %v1417_v60, 5  ;;  %10149 = vst [vmem:[#allocation28_spill] sm:$0xff] %v7757_v12  ;;  %6474 = vmatprep.subr.bf16.mxu0 %v6914_v38  ;;  %v10158_v60 = vld [vmem:[#allocation20_spill] sm:$0xff] }
  0x79   : > { %v1434_v43 = vrot.slane %v10148_v36, 4  ;;  %v1723_v37 = vrot.slane %v7549_v26, 5  ;;  %v1390_v27 = vor.u32 %v1389_v22, %v1386_v56  ;;  %v10152_v33 = vshll.u32 %v7271_v10, 16  ;;  %v10159_v44 = vld [vmem:[#allocation4_spill] sm:$0xff] }
  0x7a   : > { %v7770_v35 = vsel %vm7761_vm5, %v5907_v45, %v1720_v28  ;;  %v1722_v50 = vrot.slane %v1720_v28, 4  ;;  %v1400_v55 = vor.u32 %v1399_v41, %v7726_v11  ;;  %v7773_v30 = vrot.slane %v1441_v7, 5  ;;  %v10161_v7 = vld [vmem:[#allocation3_spill] sm:$0xff] }
  0x7b   : > { %v1437_v17 = vrot.slane %v10152_v33, 5  ;;  %v10153_v29 = vshrl.u32 %v7274_v13, 16  ;;  %v10154_v26 = vrot.slane %v7149_v5, 5  ;;  %v10156_v56 = vrot.slane %v10155_v19, 9  ;;  %6475 = vmatpush3.bf16.msra.mxu0 %v6914_v38  ;;  %v6916_v5 = vld [vmem:[%s9943_s1 + $0xe8] sm:$0xff]   ;;  %v10176_v38 = vld [vmem:[#allocation10_spill] sm:$0xff] }
  0x7c   : > { %v7787_v22 = vsel %vm7761_vm5, %v1722_v50, %v1723_v37  ;;  %v1955_v47 = vrot.slane %v10158_v60, 5  ;;  %v10160_v13 = vrot.slane %v10159_v44, 5  ;;  %v10162_v45 = vrot.slane %v10161_v7, 9  ;;  %v10164_v50 = vld [vmem:[#allocation21_spill] sm:$0xff]  ;;  %6476 = vmatprep.subr.bf16.mxu0 %v6915_v3  ;;  %v10167_v60 = vld [vmem:[#allocation7_spill] sm:$0xff] }
  0x7d   : > { %v1447_v9 = vrot.slane %v10153_v29, 4  ;;  %v7783_v10 = vsel %vm7761_vm5, %v10156_v56, %v10154_v26  ;;  %v10157_v20 = vmov %v10154_v26  ;;  %v1414_v28 = vor.u32 %v1413_v0, %v1410_v57  ;;  %v10180_v7 = vld [vmem:[#allocation15_spill] sm:$0xff] }
  0x7e   : > { %v1954_v41 = vrot.slane %v10157_v20, 4  ;;  %v7798_v36 = vsel %vm7761_vm5, %v10162_v45, %v10160_v13  ;;  %v1424_v33 = vor.u32 %v1423_v1, %v7754_v34  ;;  %v1962_v29 = vrot.slane %v10164_v50, 5  ;;  %v10165_v20 = vld [vmem:[#allocation5_spill] sm:$0xff]  ;;  %6461 = vmatmul.mubr.bf16.gmra.mrb[8].mxu0 %v5858_v61  ;;  %v10169_v50 = vld [vmem:[#allocation6_spill] sm:$0xff] }
  0x7f   : > { %10163 = vst [vmem:[#allocation2_spill] sm:$0xff] %v7798_v36  ;;  %v7807_v26 = vrot.slane %v1376_v32, 4  ;;  %v1438_v19 = vor.u32 %v1437_v17, %v1434_v43  ;;  %v1451_v56 = vshll.u32 %v7757_v12, 16  ;;  %v7814_v0 = vrot.slane %v1390_v27, 4  ;;  %6477 = vmatpush3.bf16.msra.mxu0 %v6915_v3  ;;  %6464 = vmatprep.mubr.bf16.mxu0 %v5859_v2  ;;  %v10173_v2 = vld [vmem:[#allocation18_spill] sm:$0xff]  ;;  %v6918_v61 = vld [vmem:[%s9943_s1 + $0xf8] sm:$0xff]  }
  0x80   : > { %v7812_v57 = vsel %vm7761_vm5, %v1954_v41, %v1955_v47  ;;  %v7816_v1 = vrot.slane %v1403_v6, 5  ;;  %v7823_v32 = vsel %vm7761_vm5, %v10165_v20, %v1962_v29  ;;  %v7825_v43 = vrot.slane %v1400_v55, 4  ;;  %v6917_v6 = vld [vmem:[%s9943_s1 + $0xf0] sm:$0xff]   ;;  %v10168_v55 = vld [vmem:[#allocation9_spill] sm:$0xff]  ;;  %v10170_v29 = vld [vmem:[#allocation11_spill] sm:$0xff]  ;;  %6478 = vmatprep.subr.bf16.mxu0 %v6916_v5 }
  0x81   : > { %10166 = vst [vmem:[#allocation20_spill] sm:$0xff] %v7823_v32  ;;  %v1448_v17 = vor.u32 %v1447_v9, %v7773_v30  ;;  %v9991_v41 = vrot.slane %v10167_v60, 5  ;;  %v7834_v47 = vrot.slane %v1414_v28, 4  ;;  %v7836_v44 = vrot.slane %v1424_v33, 4  ;;  %v10171_v28 = vld [vmem:[#allocation17_spill] sm:$0xff]  ;;  %v10172_v33 = vld [vmem:[#allocation8_spill] sm:$0xff] }
  0x82   : > { %v7838_v13 = vrot.slane %v1427_v23, 5  ;;  %v7841_v9 = vrot.slane %v1438_v19, 4  ;;  %v7843_v45 = vrot.slane %v1451_v56, 5  ;;  %v5860_v27 = vcombine.low %v1042_v46, %v1052_v24  ;;  %v10174_v56 = vld [vmem:[#allocation13_spill] sm:$0xff]  ;;  %v10178_v12 = vld [vmem:[#allocation12_spill] sm:$0xff]  ;;  %v10181_v36 = vld [vmem:[#allocation14_spill] sm:$0xff] }
  0x83   : > { %v7849_v23 = vrot.slane %v1448_v17, 4  ;;  %v7853_v3 = vrot.slane %v9991_v41, 4  ;;  %v10175_v46 = vrot.slane %v10168_v55, 5  ;;  %v5903_v37 = vrot.slane %v10176_v38, 9  ;;  %v10177_v17 = vld [vmem:[#allocation19_spill] sm:$0xff]  ;;  %6479 = vmatpush3.bf16.msra.mxu0 %v6916_v5  ;;  %v6919_v5 = vld [vmem:[%s9943_s1 + $0x100] sm:$0xff]  }
  0x84   : > { %v5904_v62 = vrot.slane %v10178_v12, 9  ;;  %v10179_v41 = vrot.slane %v10170_v29, 5  ;;  %v1706_v8 = vrot.slane %v10180_v7, 5  ;;  %6480 = vmatprep.subr.bf16.mxu0 %v6917_v6  ;;  %v10183_v32 = vld [vmem:[#allocation16_spill] sm:$0xff]  ;;  %v10184_v20 = vld [vmem:[#allocation22_spill] sm:$0xff] }
  0x85   : > { %v7862_v24 = vrot.slane %v10175_v46, 4  ;;  %v10182_v46 = vrot.slane %v10174_v56, 5 }
  0x86   : > { %v7869_v19 = vrot.slane %v10179_v41, 4  ;;  %6465 = vmatmul.mubr.bf16.gmra.mrb[12].mxu0 %v5860_v27  ;;  %v7885_v41 = vrot.slane %v1706_v8, 4  ;;  %v1334_v27 = vsel %vm7286_vm2, %v7669_v18, %v7663_v4  ;;  %v1372_v4 = vsel %vm7286_vm2, %v7716_v39, %v7699_v51 }
  0x87   : > { %v7876_v58 = vrot.slane %v10182_v46, 4  ;;  %6481 = vmatpush3.bf16.msra.mxu0 %v6917_v6  ;;  %6484 = vmatprep.mubr.bf16.mxu0 %v7492_v14  ;;  %v1324_v46 = vsel %vm7286_vm2, %v7661_v59, %v7614_v31  ;;  %v6920_v14 = vld [vmem:[%s9943_s1 + $0x108] sm:$0xff]   ;;  %v1348_v31 = vsel %vm7286_vm2, %v7688_v54, %v7638_v48  ;;  %v1358_v59 = vsel %vm7286_vm2, %v7712_v49, %v7671_v42  ;;  %v6922_v48 = vld [vmem:[%s9943_s1 + $0x118] sm:$0xff]   ;;  %v6923_v42 = vld [vmem:[%s9943_s1 + $0x120] sm:$0xff]  }
  0x88   : > { %6482 = vmatprep.subr.bf16.mxu0 %v6918_v61  ;;  %v5887_v6 = vcombine.low %v1324_v46, %v1334_v27  ;;  %v1382_v18 = vsel %vm7286_vm2, %v7807_v26, %v7701_v40  ;;  %v1396_v51 = vsel %vm7286_vm2, %v7814_v0, %v7726_v11  ;;  %v1406_v40 = vsel %vm7286_vm2, %v7825_v43, %v7816_v1  ;;  %v6924_v11 = vld [vmem:[%s9943_s1 + $0x128] sm:$0xff]   ;;  %v6925_v0 = vld [vmem:[%s9943_s1 + $0x130] sm:$0xff]  }
  0x89   : > { %v5889_v54 = vcombine.low %v1372_v4, %v1382_v18  ;;  %v1420_v49 = vsel %vm7286_vm2, %v7834_v47, %v7754_v34  ;;  %v5890_v39 = vcombine.low %v1396_v51, %v1406_v40  ;;  %v1444_v34 = vsel %vm7286_vm2, %v7841_v9, %v7773_v30  ;;  %v7026_v51 = vld [vmem:[%s7140_s29 + $0xa8] sm:$0xf] }
  0x8a   : > { %v1454_v1 = vsel %vm7286_vm2, %v7849_v23, %v7843_v45  ;;  %v10185_v43 = vrot.slane %v10167_v60, 5  ;;  %v10186_v47 = vrot.slane %v10169_v50, 9  ;;  %v6927_v60 = vld [vmem:[%s9943_s1 + $0x140] sm:$0xff]   ;;  %v10188_v45 = vrot.slane %v10168_v55, 5 }
  0x8b   : > { %6483 = vmatpush3.bf16.msra.mxu0 %v6918_v61  ;;  %v5888_v61 = vcombine.low %v1348_v31, %v1358_v59  ;;  %v5892_v30 = vcombine.low %v1444_v34, %v1454_v1  ;;  %v10189_v50 = vrot.slane %v10172_v33, 9  ;;  %v10190_v23 = vrot.slane %v10173_v2, 5  ;;  %v6928_v2 = vld [vmem:[%s9943_s1 + $0x148] sm:$0xff]  }
  0x8c   : > { %6500 = vmatprep.subr.bf16.mxu0 %v6919_v5  ;;  %v10192_v55 = vrot.slane %v10177_v17, 5  ;;  %v6929_v17 = vld [vmem:[%s9943_s1 + $0x150] sm:$0xff]   ;;  %v10197_v59 = vrot.slane %v10183_v32, 5  ;;  %v5908_v40 = vrot.slane %v7026_v51, 9  ;;  %v1730_v32 = vrot.slane %v7578_v53, 5 }
  0x8d   : > { %v6933_v53 = vld [vmem:[%s9943_s1 + $0x170] sm:$0xff]  }
  0x8e   : > { %6485 = vmatmul.mubr.bf16.vlgmr.msra.gmra.mrb[0].mxu0 %v10184_v20  ;;  %v1696_v33 = vsel %vm7761_vm5, %v7869_v19, %v10192_v55  ;;  %v1715_v7 = vrot.slane %v10197_v59, 4  ;;  %v10203_v55 = vld [vmem:[#allocation25_spill] sm:$0xff] }
  0x8f   : > { %6501 = vmatpush3.bf16.msra.mxu0 %v6919_v5  ;;  %6488 = vmatprep.mubr.bf16.mxu0 %v5887_v6  ;;  %v10191_v5 = vrot.slane %v10170_v29, 5  ;;  %v10194_v29 = vrot.slane %v7457_v15, 5  ;;  %v7024_v6 = vld [vmem:[%s7140_s29 + $0x78] sm:$0xf] }
  0x90   : > { %6502 = vmatprep.subr.bf16.mxu0 %v6920_v14  ;;  %v5906_v31 = vrot.slane %v7024_v6, 9 }
  0x91   : > { %v1693_v46 = vsel %vm7761_vm5, %v5903_v37, %v10191_v5  ;;  %v10193_v37 = vrot.slane %v10174_v56, 5  ;;  %v1703_v19 = vsel %vm7761_vm5, %v7876_v58, %v10194_v29  ;;  %v10195_v56 = vrot.slane %v10181_v36, 9  ;;  %v10198_v36 = vld [vmem:[#allocation23_spill] sm:$0xff] }
  0x92   : > { %v1716_v4 = vrot.slane %v10198_v36, 5  ;;  %v7033_v29 = vld [vmem:[%s7140_s29 + $0x88] sm:$0xf]  ;;  %v7036_v36 = vld [vmem:[%s7140_s29 + $0x9c] sm:$0xf] }
  0x93   : > { %6503 = vmatpush3.bf16.msra.mxu0 %v6920_v14  ;;  %v1700_v38 = vsel %vm7761_vm5, %v5904_v62, %v10193_v37  ;;  %v1707_v12 = vsel %vm7761_vm5, %v10195_v56, %v1706_v8  ;;  %v10196_v62 = vrot.slane %v7479_v25, 5  ;;  %v6930_v25 = vld [vmem:[%s9943_s1 + $0x158] sm:$0xff]   ;;  %v10199_v8 = vmov %v10197_v59  ;;  %v10207_v59 = vld [vmem:[#allocation26_spill] sm:$0xff] }
  0x94   : > { %6504 = vmatprep.subr.bf16.mxu0 %v6921_v52  ;;  %v5928_v58 = vcombine.low %v1700_v38, %v1703_v19  ;;  %v1717_v18 = vsel %vm7761_vm5, %v1715_v7, %v1716_v4  ;;  %v1987_v19 = vrot.slane %v7033_v29, 5  ;;  %v1990_v7 = vrot.slane %v10207_v59, 5 }
  0x95   : > { %v1710_v15 = vsel %vm7761_vm5, %v7885_v41, %v10196_v62  ;;  %v1714_v41 = vsel %vm7761_vm5, %v5906_v31, %v10199_v8  ;;  %v5947_v4 = vrot.slane %v7036_v36, 9  ;;  %v10208_v8 = vld [vmem:[#allocation27_spill] sm:$0xff] }
  0x96   : > { %6489 = vmatmul.mubr.bf16.gmra.mrb[4].mxu0 %v5888_v61  ;;  %v5929_v14 = vcombine.low %v1707_v12, %v1710_v15  ;;  %v7025_v61 = vld [vmem:[%s7140_s29 + $0xac] sm:$0xf]  ;;  %v7034_v12 = vld [vmem:[%s7140_s29 + $0xa0] sm:$0xf]  ;;  %v1989_v31 = vrot.slane %v1987_v19, 4 }
  0x97   : > { %6505 = vmatpush3.bf16.msra.mxu0 %v6921_v52  ;;  %6492 = vmatprep.mubr.bf16.mxu0 %v5889_v54  ;;  %v1430_v52 = vsel %vm7286_vm2, %v7836_v44, %v7838_v13  ;;  %v1679_v44 = vsel %vm7761_vm5, %v10186_v47, %v10185_v43  ;;  %v10187_v13 = vrot.slane %v10171_v28, 5  ;;  %v1686_v28 = vsel %vm7761_vm5, %v10189_v50, %v10188_v45  ;;  %v6931_v54 = vld [vmem:[%s9943_s1 + $0x160] sm:$0xff]   ;;  %v7031_v50 = vld [vmem:[%s7140_s29 + $0x54] sm:$0xf] }
  0x98   : > { %6506 = vmatprep.subr.bf16.mxu0 %v6922_v48  ;;  %v5891_v26 = vcombine.low %v1420_v49, %v1430_v52  ;;  %v6932_v52 = vld [vmem:[%s9943_s1 + $0x168] sm:$0xff]   ;;  %v1994_v62 = vrot.slane %v7034_v12, 5  ;;  %vm5418_vm2 = vcmask 130048  }
  0x99   : > { %v1682_v20 = vsel %vm7761_vm5, %v7853_v3, %v10187_v13  ;;  %v1689_v3 = vsel %vm7761_vm5, %v7862_v24, %v10190_v23  ;;  %v5927_v24 = vcombine.low %v1693_v46, %v1696_v33  ;;  %v10201_v13 = vcombine.low %v7783_v10, %v7812_v57  ;;  %v10202_v10 = vld [vmem:[#allocation24_spill] sm:$0xff] }
  0x9a   : > { %v5925_v9 = vcombine.low %v1679_v44, %v1682_v20  ;;  %v5926_v27 = vcombine.low %v1686_v28, %v1689_v3  ;;  %v1969_v44 = vrot.slane %v7598_v16, 5  ;;  %v7029_v20 = vld [vmem:[%s7140_s29 + $0x58] sm:$0xf]  ;;  %v5944_v28 = vrot.slane %v7031_v50, 9  ;;  %v7032_v3 = vld [vmem:[%s7140_s29 + $0x6c] sm:$0xf] }
  0x9b   : > { %6507 = vmatpush3.bf16.msra.mxu0 %v6922_v48  ;;  %v1727_v48 = vrot.slane %v7025_v61, 5  ;;  %v1976_v57 = vrot.slane %v10202_v10, 5  ;;  %v5945_v5 = vrot.slane %v7032_v3, 9  ;;  %v1983_v33 = vrot.slane %v10203_v55, 5  ;;  %v8145_v50 = vld [vmem:[%s9944_s2] ss:$0 sm:$0xff] }
  0x9c   : > { %6508 = vmatprep.subr.bf16.mxu0 %v6923_v42  ;;  %v1991_v61 = vsel %vm7761_vm5, %v1989_v31, %v1990_v7 }
  0x9d   : > { %v1729_v49 = vrot.slane %v1727_v48, 4 }
  0x9e   : > { %6493 = vmatmul.mubr.bf16.gmra.mrb[8].mxu0 %v5890_v39  ;;  %v10200_v39 = vcombine.low %v7770_v35, %v7787_v22  ;;  %v6934_v35 = vld [vmem:[%s9943_s1 + $0x178] sm:$0xff]  }
  0x9f   : > { %6509 = vmatpush3.bf16.msra.mxu0 %v6923_v42  ;;  %6496 = vmatprep.mubr.bf16.mxu0 %v5891_v26  ;;  %v5930_v42 = vcombine.low %v1714_v41, %v1717_v18  ;;  %v1731_v26 = vsel %vm7761_vm5, %v1729_v49, %v1730_v32  ;;  %v7028_v22 = vld [vmem:[%s7140_s29 + $0x3c] sm:$0xf]  ;;  %v1997_v41 = vrot.slane %v10208_v8, 5  ;;  %v7038_v32 = vld [vmem:[%s7140_s29 + $0xb4] sm:$0xf] }
  0xa0   : > { %6510 = vmatprep.subr.bf16.mxu0 %v6924_v11  ;;  %v5943_v43 = vrot.slane %v7028_v22, 9  ;;  %v6936_v22 = vld [vmem:[%s9945_s3 + $0x48] sm:$0xff]  }
  0xa3   : > { %6511 = vmatpush3.bf16.msra.mxu0 %v6924_v11  ;;  %v1728_v11 = vsel %vm7761_vm5, %v5908_v40, %v1727_v48  ;;  %v7037_v48 = vld [vmem:[%s7140_s29 + $0xb8] sm:$0xf] }
  0xa4   : > { %6512 = vmatprep.subr.bf16.mxu0 %v6925_v0  ;;  %v5932_v1 = vcombine.low %v1728_v11, %v1731_v26  ;;  %v10209_v11 = vld [vmem:[#allocation28_spill] sm:$0xff] }
  0xa5   : > { %v2004_v26 = vrot.slane %v10209_v11, 5 }
  0xa6   : > { %6497 = vmatmul.mubr.bf16.gmra.mrb[12].mxu0 %v5892_v30  ;;  %v1973_v30 = vrot.slane %v7029_v20, 5  ;;  %v6942_v20 = vld [vmem:[%s9945_s3 + $0x78] sm:$0xff]  }
  0xa7   : > { %6513 = vmatpush3.bf16.msra.mxu0 %v6925_v0  ;;  %6516 = vmatprep.mubr.bf16.mxu0 %v5925_v9  ;;  %v7027_v0 = vld [vmem:[%s7140_s29 + $0x40] sm:$0xf] }
  0xa8   : > { %6514 = vmatprep.subr.bf16.mxu0 %v6926_v21  ;;  %v1966_v34 = vrot.slane %v7027_v0, 5  ;;  %v1975_v23 = vrot.slane %v1973_v30, 4  ;;  %v1974_v37 = vsel %vm7761_vm5, %v5944_v28, %v1973_v30  ;;  %v7049_v30 = vmov 1966171168  }
  0xaa   : > { %v1968_v47 = vrot.slane %v1966_v34, 4  ;;  %v1977_v38 = vsel %vm7761_vm5, %v1975_v23, %v1976_v57 }
  0xab   : > { %6515 = vmatpush3.bf16.msra.mxu0 %v6926_v21  ;;  %v1967_v21 = vsel %vm7761_vm5, %v5943_v43, %v1966_v34  ;;  %v5968_v15 = vcombine.low %v1974_v37, %v1977_v38  ;;  %v6938_v43 = vld [vmem:[%s9945_s3 + $0x58] sm:$0xff]  }
  0xac   : > { %6532 = vmatprep.subr.bf16.mxu0 %v6927_v60  ;;  %v1970_v9 = vsel %vm7761_vm5, %v1968_v47, %v1969_v44  ;;  %v6939_v47 = vld [vmem:[%s9945_s3 + $0x60] sm:$0xff]   ;;  %v6940_v44 = vld [vmem:[%s9945_s3 + $0x68] sm:$0xff]  }
  0xad   : > { %v5967_v16 = vcombine.low %v1967_v21, %v1970_v9  ;;  %v2257_v21 = vunpack.c.l.s4 %v7049_v30  ;;  %v2259_v9 = vlaneseq }
  0xae   : > { %6517 = vmatmul.mubr.bf16.vlgmr.msra.gmra.mrb[0].mxu0 %v5926_v27  ;;  %v10204_v27 = vld [vmem:[#allocation2_spill] sm:$0xff] }
  0xaf   : > { %6533 = vmatpush3.bf16.msra.mxu0 %v6927_v60  ;;  %6520 = vmatprep.mubr.bf16.mxu0 %v5927_v24  ;;  %v7030_v60 = vld [vmem:[%s7140_s29 + $0x70] sm:$0xf] }
  0xb0   : > { %6534 = vmatprep.subr.bf16.mxu0 %v6928_v2  ;;  %v1980_v45 = vrot.slane %v7030_v60, 5  ;;  %v2258_v60 = vunpack.c.0.s8 %v2257_v21 }
  0xb2   : > { %v1982_v46 = vrot.slane %v1980_v45, 4 }
  0xb3   : > { %6535 = vmatpush3.bf16.msra.mxu0 %v6928_v2  ;;  %v10205_v2 = vld [vmem:[#allocation20_spill] sm:$0xff] }
  0xb4   : > { %6536 = vmatprep.subr.bf16.mxu0 %v6929_v17  ;;  %v10206_v24 = vcombine.low %v10204_v27, %v10205_v2  ;;  %v1984_v56 = vsel %vm7761_vm5, %v1982_v46, %v1983_v33 }
  0xb6   : > { %6521 = vmatmul.mubr.bf16.gmra.mrb[4].mxu0 %v5928_v58 }
  0xb7   : > { %6537 = vmatpush3.bf16.msra.mxu0 %v6929_v17  ;;  %6524 = vmatprep.mubr.bf16.mxu0 %v5929_v14  ;;  %v1981_v17 = vsel %vm7761_vm5, %v5945_v5, %v1980_v45  ;;  %v7035_v14 = vld [vmem:[%s7140_s29 + $0x84] sm:$0xf]  ;;  %v8140_v45 = vshrl.u32 %v2259_v9, 7 }
  0xb8   : > { %6538 = vmatprep.subr.bf16.mxu0 %v6930_v25  ;;  %v5969_v58 = vcombine.low %v1981_v17, %v1984_v56  ;;  %v5946_v6 = vrot.slane %v7035_v14, 9 }
  0xb9   : > { %10210 = vst [vmem:[#allocation4_spill] sm:$0xff] %v8140_v45  ;;  %v8150_v3 = vsub.s32 %v2258_v60, %v8140_v45 }
  0xba   : > { %v1988_v18 = vsel %vm7761_vm5, %v5946_v6, %v1987_v19 }
  0xbb   : > { %6539 = vmatpush3.bf16.msra.mxu0 %v6930_v25  ;;  %v1996_v25 = vrot.slane %v1994_v62, 4  ;;  %v5970_v40 = vcombine.low %v1988_v18, %v1991_v61  ;;  %10211 = vst [vmem:[#allocation3_spill] sm:$0xff] %v8150_v3 }
  0xbc   : > { %6540 = vmatprep.subr.bf16.mxu0 %v6931_v54 }
  0xbd   : > { %v1998_v51 = vsel %vm7761_vm5, %v1996_v25, %v1997_v41 }
  0xbe   : > { %6525 = vmatmul.mubr.bf16.gmra.mrb[8].mxu0 %v5930_v42  ;;  %v1995_v42 = vsel %vm7761_vm5, %v5947_v4, %v1994_v62 }
  0xbf   : > { %6541 = vmatpush3.bf16.msra.mxu0 %v6931_v54  ;;  %6528 = vmatprep.mubr.bf16.mxu0 %v10200_v39  ;;  %v2001_v54 = vrot.slane %v7037_v48, 5  ;;  %v5971_v49 = vcombine.low %v1995_v42, %v1998_v51 }
  0xc0   : > { %6542 = vmatprep.subr.bf16.mxu0 %v6932_v52 }
  0xc1   : > { %v2003_v39 = vrot.slane %v2001_v54, 4 }
  0xc3   : > { %6543 = vmatpush3.bf16.msra.mxu0 %v6932_v52  ;;  %v5948_v52 = vrot.slane %v7038_v32, 9  ;;  %v2005_v0 = vsel %vm7761_vm5, %v2003_v39, %v2004_v26 }
  0xc4   : > { %6544 = vmatprep.subr.bf16.mxu0 %v6933_v53 }
  0xc6   : > { %6529 = vmatmul.mubr.bf16.gmra.mrb[12].mxu0 %v5932_v1  ;;  %v10002_v1 = vmov 0.0  }
  0xc7   : > { %6545 = vmatpush3.bf16.msra.mxu0 %v6933_v53  ;;  %6548 = vmatprep.mubr.bf16.mxu0 %v10201_v13  ;;  %v2002_v53 = vsel %vm7761_vm5, %v5948_v52, %v2001_v54  ;;  %v6941_v13 = vld [vmem:[%s9945_s3 + $0x70] sm:$0xff]  }
  0xc8   : > { %6546 = vmatprep.subr.bf16.mxu0 %v6934_v35  ;;  %v5972_v34 = vcombine.low %v2002_v53, %v2005_v0  ;;  %6564 = vmatprep.subr.bf16.mxu1 %v10002_v1 }
  0xc9   : > { %6580 = vmatprep.mubr.msk.bf16.mxu1 %vm7048_vm6, %v10002_v1 }
  0xcb   : > { %6547 = vmatpush3.bf16.msra.mxu0 %v6934_v35  ;;  %v6935_v35 = vld [vmem:[%s9945_s3 + $0x40] sm:$0xff]  }
  0xcc   : > { %6565 = vmatpush3.bf16.msra.mxu1 %v6935_v35 }
  0xcd   : > { %6566 = vmatprep.subr.bf16.mxu1 %v10002_v1 }
  0xce   : > { %6549 = vmatmul.mubr.bf16.vlgmr.msra.gmra.mrb[0].mxu0 %v10206_v24 }
  0xcf   : > { %6552 = vmatprep.mubr.bf16.mxu0 %v5967_v16 }
  0xd0   : > { %6567 = vmatpush3.bf16.msra.mxu1 %v6936_v22 }
  0xd1   : > { %6568 = vmatprep.subr.bf16.mxu1 %v10002_v1 }
  0xd4   : > { %6569 = vmatpush3.bf16.msra.mxu1 %v6937_v63 }
  0xd5   : > { %6570 = vmatprep.subr.bf16.mxu1 %v10002_v1 }
  0xd6   : > { %6553 = vmatmul.mubr.bf16.gmra.mrb[4].mxu0 %v5968_v15 }
  0xd7   : > { %6556 = vmatprep.mubr.bf16.mxu0 %v5969_v58 }
  0xd8   : > { %6571 = vmatpush3.bf16.msra.mxu1 %v6938_v43 }
  0xd9   : > { %6572 = vmatprep.subr.bf16.mxu1 %v10002_v1 }
  0xdc   : > { %6573 = vmatpush3.bf16.msra.mxu1 %v6939_v47 }
  0xdd   : > { %6574 = vmatprep.subr.bf16.mxu1 %v10002_v1 }
  0xde   : > { %6557 = vmatmul.mubr.bf16.gmra.mrb[8].mxu0 %v5970_v40 }
  0xdf   : > { %6560 = vmatprep.mubr.bf16.mxu0 %v5971_v49 }
  0xe0   : > { %6575 = vmatpush3.bf16.msra.mxu1 %v6940_v44 }
  0xe1   : > { %6576 = vmatprep.subr.bf16.mxu1 %v10002_v1 }
  0xe4   : > { %6577 = vmatpush3.bf16.msra.mxu1 %v6941_v13 }
  0xe5   : > { %6578 = vmatprep.subr.bf16.mxu1 %v10002_v1 }
  0xe6   : > { %6561 = vmatmul.mubr.bf16.gmra.mrb[12].mxu0 %v5972_v34 }
  0xe8   : > { %6579 = vmatpush3.bf16.msra.mxu1 %v6942_v20 }
  0xe9   : > { %6592 = vmatprep.subr.bf16.mxu1 %v10002_v1 }
 0x1a1   : > { %v6550_v16 = vpop.f32.mrb[0].mxu0 }
 0x1a2   : > { %v2137_v28 = vpop.f32.mrb[1].mxu0  ;;  %v2225_v10 = vadd.f32 %v6550_v16, %v8145_v50 }
 0x1a3   : > { %v6551_v23 = vpop.f32.mrb[2].mxu0  ;;  %v2223_v46 = vadd.f32 %v8145_v50, %v2137_v28 }
 0x1a4   : > { %v2226_v57 = vadd.f32 %v6551_v23, %v8145_v50  ;;  %v2140_v5 = vpop.f32.mrb[3].mxu0 }
 0x1a5   : > { %v2224_v55 = vadd.f32 %v8145_v50, %v2140_v5 }
 0x1a6   : > { %v2240_v33 = vpack.c.bf16 %v2226_v57, %v2225_v10  ;;  %v5983_v27 = vpack.c.bf16 %v2226_v57, %v2226_v57 }
 0x1a7   : > { %v2239_v2 = vpack.c.bf16 %v2224_v55, %v2223_v46  ;;  %v5982_v24 = vpack.c.bf16 %v2224_v55, %v2224_v55 }
 0x1a8   : > { %v2311_v37 = vrot.slane %v2240_v33, %v8150_v3  ;;  %v2318_v38 = vrot.slane %v5983_v27, %v8150_v3 }
 0x1a9   : > { %v2262_v29 = vrot.slane %v2239_v2, %v8150_v3  ;;  %v2269_v19 = vrot.slane %v5982_v24, %v8150_v3  ;;  %v8158_v17 = vpop.f32.mrb[4].mxu0 }
 0x1aa   : > { %v2319_v56 = vcombine.high %v2311_v37, %v2311_v37  ;;  %v2320_v12 = vcombine.high %v2318_v38, %v2318_v38  ;;  %v2327_v62 = vrot.slane %v2311_v37, %v8150_v3  ;;  %v2334_v15 = vrot.slane %v2318_v38, %v8150_v3  ;;  %v8162_v58 = vpop.f32.mrb[5].mxu0 }
 0x1ab   : > { %v2270_v14 = vcombine.high %v2262_v29, %v2262_v29  ;;  %v2271_v6 = vcombine.high %v2269_v19, %v2269_v19  ;;  %v8164_v31 = vpop.f32.mrb[6].mxu0  ;;  %v8173_v18 = vrot.slane %v2262_v29, %v8150_v3  ;;  %v8176_v61 = vrot.slane %v2269_v19, %v8150_v3 }
 0x1ac   : > { %v2341_v59 = vrot.slane %v2319_v56, %v8150_v3  ;;  %v2348_v7 = vrot.slane %v2320_v12, %v8150_v3  ;;  %v2349_v36 = vcombine.high %v2327_v62, %v2327_v62  ;;  %v2350_v4 = vcombine.high %v2334_v15, %v2334_v15  ;;  %v8168_v25 = vpop.f32.mrb[7].mxu0 }
 0x1ad   : > { %v2770_v8 = vrot.slane %v2327_v62, %v8150_v3  ;;  %v2826_v41 = vrot.slane %v2334_v15, %v8150_v3  ;;  %v2292_v9 = vrot.slane %v2270_v14, %v8150_v3  ;;  %v2299_v60 = vrot.slane %v2271_v6, %v8150_v3 }
 0x1ae   : > { %v2351_v48 = vcombine.high %v2341_v59, %v2341_v59  ;;  %v2352_v54 = vcombine.high %v2348_v7, %v2348_v7  ;;  %v2784_v42 = vrot.slane %v2341_v59, %v8150_v3  ;;  %v2798_v51 = vrot.slane %v2349_v36, %v8150_v3 }
 0x1af   : > { %v8181_v40 = vrot.slane %v2770_v8, %v8150_v3  ;;  %v2833_v49 = vrot.slane %v2826_v41, %v8150_v3  ;;  %v2840_v32 = vrot.slane %v2348_v7, %v8150_v3  ;;  %v3834_v52 = vrot.slane %v2350_v4, %v8150_v3 }
 0x1b0   : > { %v2791_v39 = vrot.slane %v2784_v42, %v8150_v3  ;;  %v2805_v11 = vrot.slane %v2798_v51, %v8150_v3  ;;  %v2812_v26 = vrot.slane %v2351_v48, %v8150_v3  ;;  %v4356_v53 = vrot.slane %v2352_v54, %v8150_v3 }
 0x1b1   : > { %v2847_v0 = vrot.slane %v2840_v32, %v8150_v3  ;;  %v10004_v34 = vunpack.c.l.b16 %v8181_v40  ;;  %v8192_v35 = vunpack.c.l.b16 %v2833_v49  ;;  %v3841_v22 = vrot.slane %v3834_v52, %v8150_v3  ;;  %v8195_v63 = vpop.f32.mrb[8].mxu0 }
 0x1b2   : > { %v2819_v43 = vrot.slane %v2812_v26, %v8150_v3  ;;  %v8198_v47 = vunpack.c.l.b16 %v2791_v39  ;;  %v8200_v44 = vunpack.c.l.b16 %v2805_v11  ;;  %v4363_v13 = vrot.slane %v4356_v53, %v8150_v3  ;;  %v8203_v20 = vpop.f32.mrb[9].mxu0 }
 0x1b3   : > { %v8205_v30 = vunpack.c.l.b16 %v2847_v0  ;;  %v8207_v21 = vunpack.c.l.b16 %v3841_v22  ;;  %v8211_v16 = vpop.f32.mrb[10].mxu0  ;;  %v8217_v23 = vrot.slane %v10004_v34, 2  ;;  %v3618_v10 = vrot.slane %v8192_v35, 6 }
 0x1b4   : > { %10212 = vst [vmem:[#allocation21_spill] sm:$0xff] %v8200_v44  ;;  %v8213_v28 = vunpack.c.l.b16 %v2819_v43  ;;  %v4449_v57 = vunpack.c.l.b16 %v4363_v13  ;;  %v8220_v5 = vpop.f32.mrb[11].mxu0  ;;  %v4654_v38 = vrot.slane %v8192_v35, 1  ;;  %v2300_v12 = vcombine.high %v8173_v18, %v8173_v18 }
 0x1b5   : > { %10214 = vst [vmem:[#allocation7_spill] sm:$0xff] %v8217_v23  ;;  %v9999_v33 = vrot.slane %v8205_v30, 7  ;;  %v9998_v27 = vrot.slane %v8207_v21, 6  ;;  %v3620_v2 = vrot.slane %v8205_v30, 5  ;;  %v4656_v19 = vrot.slane %v8207_v21, 7 }
 0x1b6   : > { %10213 = vst [vmem:[#allocation5_spill] sm:$0xff] %v8213_v28  ;;  %v4466_v37 = vrot.slane %v4449_v57, 5  ;;  %v4658_v56 = vrot.slane %v4449_v57, 6  ;;  %v3616_v62 = vrot.slane %v8213_v28, 7  ;;  %v9997_v15 = vrot.slane %v8213_v28, 1 }
 0x1b7   : > { %v4464_v29 = vsel %vm3401_vm7, %v9999_v33, %v8192_v35  ;;  %v4655_v6 = vsel %vm3401_vm7, %v8205_v30, %v4654_v38  ;;  %v2301_v36 = vcombine.high %v8176_v61, %v8176_v61  ;;  %v2302_v4 = vcombine.high %v2292_v9, %v2292_v9 }
 0x1b8   : > { %v4465_v14 = vsel %vm3404_vm8, %v9998_v27, %v4464_v29  ;;  %v4657_v7 = vsel %vm3404_vm8, %v4656_v19, %v4655_v6  ;;  %v2303_v48 = vcombine.high %v2299_v60, %v2299_v60  ;;  %v2686_v54 = vrot.slane %v8173_v18, %v8150_v3 }
 0x1b9   : > { %v8244_v59 = vsel %vm3407_vm9, %v4466_v37, %v4465_v14  ;;  %v8249_v8 = vpop.f32.mrb[12].mxu0  ;;  %v8252_v41 = vsel %vm3407_vm9, %v4658_v56, %v4657_v7  ;;  %v2700_v42 = vrot.slane %v2292_v9, %v8150_v3  ;;  %v2714_v49 = vrot.slane %v2300_v12, %v8150_v3 }
 0x1ba   : > { %10215 = vst [vmem:[#allocation9_spill] sm:$0xff] %v8244_v59  ;;  %10216 = vst [vmem:[#allocation6_spill] sm:$0xff] %v8252_v41  ;;  %v8257_v51 = vpop.f32.mrb[13].mxu0  ;;  %v2728_v32 = vrot.slane %v2302_v4, %v8150_v3  ;;  %v2742_v52 = vrot.slane %v8176_v61, %v8150_v3  ;;  %v2756_v39 = vrot.slane %v2299_v60, %v8150_v3 }
 0x1bb   : > { %v8264_v11 = vpop.f32.mrb[14].mxu0  ;;  %v2693_v26 = vrot.slane %v2686_v54, %v8150_v3  ;;  %v2707_v53 = vrot.slane %v2700_v42, %v8150_v3  ;;  %v3820_v18 = vrot.slane %v2301_v36, %v8150_v3  ;;  %v4342_v0 = vrot.slane %v2303_v48, %v8150_v3 }
 0x1bc   : > { %v8270_v22 = vpop.f32.mrb[15].mxu0  ;;  %v2721_v43 = vrot.slane %v2714_v49, %v8150_v3  ;;  %v2735_v13 = vrot.slane %v2728_v32, %v8150_v3  ;;  %v2749_v61 = vrot.slane %v2742_v52, %v8150_v3  ;;  %v2763_v9 = vrot.slane %v2756_v39, %v8150_v3 }
 0x1bd   : > { %v3352_v60 = vunpack.c.l.b16 %v2693_v26  ;;  %v8276_v57 = vunpack.c.l.b16 %v2707_v53  ;;  %v3827_v37 = vrot.slane %v3820_v18, %v8150_v3  ;;  %v4349_v38 = vrot.slane %v4342_v0, %v8150_v3 }
 0x1be   : > { %v8280_v29 = vunpack.c.l.b16 %v2721_v43  ;;  %v8282_v19 = vunpack.c.l.b16 %v2735_v13  ;;  %v8284_v56 = vunpack.c.l.b16 %v2749_v61  ;;  %v8286_v12 = vunpack.c.l.b16 %v2763_v9 }
 0x1bf   : > { %v3400_v14 = vrot.slane %v3352_v60, 1  ;;  %v3602_v6 = vrot.slane %v8276_v57, 7  ;;  %v8289_v7 = vunpack.c.l.b16 %v3827_v37  ;;  %v4118_v36 = vrot.slane %v8276_v57, 1 }
 0x1c0   : > { %v3617_v4 = vsel %vm3401_vm7, %v3616_v62, %v8200_v44  ;;  %v8298_v48 = vsel %vm3401_vm7, %v8192_v35, %v9997_v15  ;;  %v3604_v54 = vrot.slane %v8280_v29, 6  ;;  %v3606_v42 = vrot.slane %v8282_v19, 5 }
 0x1c1   : > { %10217 = vst [vmem:[#allocation11_spill] sm:$0xff] %v8298_v48  ;;  %v8304_v49 = vsel %vm3401_vm7, %v8276_v57, %v3400_v14  ;;  %v3603_v32 = vsel %vm3401_vm7, %v3602_v6, %v3352_v60  ;;  %v8313_v53 = vsel %vm3401_vm7, %v8280_v29, %v4118_v36  ;;  %v10001_v18 = vrot.slane %v8282_v19, 7 }
 0x1c2   : > { %v3605_v39 = vsel %vm3404_vm8, %v3604_v54, %v3603_v32  ;;  %10218 = vst [vmem:[#allocation17_spill] sm:$0xff] %v8313_v53  ;;  %v10000_v0 = vrot.slane %v8284_v56, 6  ;;  %v8318_v13 = vunpack.c.l.b16 %v4349_v38  ;;  %v4640_v61 = vrot.slane %v8280_v29, 1 }
 0x1c3   : > { %v8322_v9 = vsel %vm3407_vm9, %v3606_v42, %v3605_v39  ;;  %v4456_v37 = vsel %vm3401_vm7, %v10001_v18, %v8280_v29  ;;  %v4642_v14 = vrot.slane %v8284_v56, 7  ;;  %v2229_v39 = vadd.f32 %v8158_v17, %v8145_v50 }
 0x1c4   : > { %10219 = vst [vmem:[#allocation8_spill] sm:$0xff] %v8318_v13  ;;  %v8333_v6 = vsel %vm3404_vm8, %v10000_v0, %v4456_v37  ;;  %v4641_v38 = vsel %vm3401_vm7, %v8282_v19, %v4640_v61  ;;  %v2230_v15 = vadd.f32 %v8164_v31, %v8145_v50  ;;  %v2227_v61 = vadd.f32 %v8145_v50, %v8162_v58 }
 0x1c5   : > { %10220 = vst [vmem:[#allocation18_spill] sm:$0xff] %v8333_v6  ;;  %v8341_v32 = vsel %vm3404_vm8, %v4642_v14, %v4641_v38  ;;  %v2228_v36 = vadd.f32 %v8145_v50, %v8168_v25  ;;  %v3619_v54 = vsel %vm3404_vm8, %v3618_v10, %v3617_v4  ;;  %v8357_v17 = vadd.f32 %v8195_v63, %v8145_v50 }
 0x1c6   : > { %10221 = vst [vmem:[#allocation13_spill] sm:$0xff] %v8341_v32  ;;  %v2242_v14 = vpack.c.bf16 %v2230_v15, %v2229_v39  ;;  %v5985_v38 = vpack.c.bf16 %v2230_v15, %v2230_v15  ;;  %v8361_v31 = vadd.f32 %v8211_v16, %v8145_v50  ;;  %v8365_v58 = vadd.f32 %v8145_v50, %v8203_v20 }
 0x1c7   : > { %v2241_v37 = vpack.c.bf16 %v2228_v36, %v2227_v61  ;;  %v5984_v42 = vpack.c.bf16 %v2228_v36, %v2228_v36  ;;  %v8369_v25 = vadd.f32 %v8145_v50, %v8220_v5  ;;  %v8376_v63 = vsel %vm3407_vm9, %v3620_v2, %v3619_v54 }
 0x1c8   : > { %v2409_v10 = vrot.slane %v2242_v14, %v8150_v3  ;;  %v2416_v15 = vrot.slane %v5985_v38, %v8150_v3  ;;  %v8386_v36 = vadd.f32 %v8249_v8, %v8145_v50 }
 0x1c9   : > { %v2360_v4 = vrot.slane %v2241_v37, %v8150_v3  ;;  %v2367_v20 = vrot.slane %v5984_v42, %v8150_v3 }
 0x1ca   : > { %v2417_v39 = vcombine.high %v2409_v10, %v2409_v10  ;;  %v2418_v61 = vcombine.high %v2416_v15, %v2416_v15  ;;  %v2425_v14 = vrot.slane %v2409_v10, %v8150_v3  ;;  %v2432_v2 = vrot.slane %v2416_v15, %v8150_v3 }
 0x1cb   : > { %v2368_v54 = vcombine.high %v2360_v4, %v2360_v4  ;;  %v2369_v38 = vcombine.high %v2367_v20, %v2367_v20  ;;  %v2376_v15 = vrot.slane %v2360_v4, %v8150_v3  ;;  %v2383_v33 = vrot.slane %v2367_v20, %v8150_v3 }
 0x1cc   : > { %v2439_v55 = vrot.slane %v2417_v39, %v8150_v3  ;;  %v2446_v60 = vrot.slane %v2418_v61, %v8150_v3  ;;  %v2447_v8 = vcombine.high %v2425_v14, %v2425_v14  ;;  %v2448_v27 = vcombine.high %v2432_v2, %v2432_v2 }
 0x1cd   : > { %v2938_v43 = vrot.slane %v2425_v14, %v8150_v3  ;;  %v2994_v10 = vrot.slane %v2432_v2, %v8150_v3  ;;  %v2390_v26 = vrot.slane %v2368_v54, %v8150_v3  ;;  %v2910_v34 = vrot.slane %v2383_v33, %v8150_v3 }
 0x1ce   : > { %v2449_v0 = vcombine.high %v2439_v55, %v2439_v55  ;;  %v2450_v18 = vcombine.high %v2446_v60, %v2446_v60  ;;  %v2952_v62 = vrot.slane %v2439_v55, %v8150_v3  ;;  %v2966_v52 = vrot.slane %v2447_v8, %v8150_v3 }
 0x1cf   : > { %v2945_v39 = vrot.slane %v2938_v43, %v8150_v3  ;;  %v3001_v61 = vrot.slane %v2994_v10, %v8150_v3  ;;  %v3008_v1 = vrot.slane %v2446_v60, %v8150_v3  ;;  %v3862_v14 = vrot.slane %v2448_v27, %v8150_v3 }
 0x1d0   : > { %v2959_v2 = vrot.slane %v2952_v62, %v8150_v3  ;;  %v2973_v4 = vrot.slane %v2966_v52, %v8150_v3  ;;  %v2980_v20 = vrot.slane %v2449_v0, %v8150_v3  ;;  %v2397_v43 = vrot.slane %v2369_v38, %v8150_v3 }
 0x1d1   : > { %v3015_v55 = vrot.slane %v3008_v1, %v8150_v3  ;;  %v3370_v24 = vunpack.c.l.b16 %v2945_v39  ;;  %v3869_v8 = vrot.slane %v3862_v14, %v8150_v3  ;;  %v8417_v27 = vrot.slane %v2450_v18, %v8150_v3 }
 0x1d2   : > { %v2987_v10 = vrot.slane %v2980_v20, %v8150_v3  ;;  %v8414_v60 = vunpack.c.l.b16 %v2959_v2  ;;  %v2398_v62 = vcombine.high %v2376_v15, %v2376_v15  ;;  %v8419_v52 = vunpack.c.l.b16 %v2973_v4 }
 0x1d3   : > { %10222 = vst [vmem:[#allocation10_spill] sm:$0xff] %v8417_v27  ;;  %v8421_v0 = vunpack.c.l.b16 %v3001_v61  ;;  %v8423_v54 = vunpack.c.l.b16 %v3015_v55  ;;  %v8425_v1 = vrot.slane %v3370_v24, 7  ;;  %v8430_v14 = vrot.slane %v3370_v24, 6 }
 0x1d4   : > { %v8427_v39 = vunpack.c.l.b16 %v2987_v10  ;;  %v8432_v2 = vunpack.c.l.b16 %v3869_v8  ;;  %v2399_v18 = vcombine.high %v2383_v33, %v2383_v33  ;;  %v2400_v20 = vcombine.high %v2390_v26, %v2390_v26 }
 0x1d5   : > { %10223 = vst [vmem:[#allocation19_spill] sm:$0xff] %v8430_v14  ;;  %v2401_v46 = vcombine.high %v2397_v43, %v2397_v43  ;;  %v2854_v4 = vrot.slane %v2376_v15, %v8150_v3  ;;  %v2868_v61 = vrot.slane %v2390_v26, %v8150_v3  ;;  %v2882_v55 = vrot.slane %v2398_v62, %v8150_v3 }
 0x1d6   : > { %10224 = vst [vmem:[#allocation12_spill] sm:$0xff] %v8432_v2  ;;  %v2924_v10 = vrot.slane %v2397_v43, %v8150_v3  ;;  %v2896_v24 = vrot.slane %v2400_v20, %v8150_v3  ;;  %v3848_v8 = vrot.slane %v2399_v18, %v8150_v3  ;;  %v2917_v26 = vrot.slane %v2910_v34, %v8150_v3 }
 0x1d7   : > { %v2861_v38 = vrot.slane %v2854_v4, %v8150_v3  ;;  %v4370_v42 = vrot.slane %v2401_v46, %v8150_v3  ;;  %v2875_v5 = vrot.slane %v2868_v61, %v8150_v3  ;;  %v2889_v15 = vrot.slane %v2882_v55, %v8150_v3 }
 0x1d8   : > { %v2931_v62 = vrot.slane %v2924_v10, %v8150_v3  ;;  %v2903_v33 = vrot.slane %v2896_v24, %v8150_v3  ;;  %v3855_v43 = vrot.slane %v3848_v8, %v8150_v3  ;;  %v8455_v61 = vunpack.c.l.b16 %v2917_v26 }
 0x1d9   : > { %v3364_v37 = vunpack.c.l.b16 %v2861_v38  ;;  %v4377_v4 = vrot.slane %v4370_v42, %v8150_v3  ;;  %v8451_v18 = vunpack.c.l.b16 %v2875_v5  ;;  %v8453_v46 = vunpack.c.l.b16 %v2889_v15 }
 0x1da   : > { %v8458_v34 = vunpack.c.l.b16 %v2931_v62  ;;  %v8460_v16 = vunpack.c.l.b16 %v3855_v43  ;;  %v8462_v38 = vunpack.c.l.b16 %v2903_v33  ;;  %v10232_v33 = vpack.c.bf16 %v8369_v25, %v8369_v25 }
 0x1db   : > { %10225 = vst [vmem:[#allocation15_spill] sm:$0xff] %v8453_v46  ;;  %v3622_v10 = vrot.slane %v3364_v37, 4  ;;  %v8464_v24 = vrot.slane %v3364_v37, 5  ;;  %v8474_v62 = vunpack.c.l.b16 %v4377_v4  ;;  %v10229_v37 = vpack.c.bf16 %v8361_v31, %v8357_v17 }
 0x1dc   : > { %10226 = vst [vmem:[#allocation14_spill] sm:$0xff] %v8460_v16  ;;  %v10231_v4 = vpack.c.bf16 %v8369_v25, %v8365_v58  ;;  %v2465_v17 = vrot.slane %v10232_v33, %v8150_v3 }
 0x1dd   : > { %v8470_v8 = vsel %vm3410_vm10, %v3622_v10, %v8376_v63  ;;  %10228 = vst [vmem:[#allocation22_spill] sm:$0xff] %v8474_v62  ;;  %v2507_v55 = vrot.slane %v10229_v37, %v8150_v3  ;;  %v10230_v63 = vpack.c.bf16 %v8361_v31, %v8361_v31 }
 0x1de   : > { %10227 = vst [vmem:[#allocation16_spill] sm:$0xff] %v8470_v8  ;;  %v2458_v43 = vrot.slane %v10231_v4, %v8150_v3  ;;  %v2467_v26 = vcombine.high %v2465_v17, %v2465_v17 }
 0x1df   : > { %v2514_v10 = vrot.slane %v10230_v63, %v8150_v3  ;;  %v2515_v37 = vcombine.high %v2507_v55, %v2507_v55  ;;  %v2523_v5 = vrot.slane %v2507_v55, %v8150_v3  ;;  %v2481_v55 = vrot.slane %v2465_v17, %v8150_v3 }
 0x1e0   : > { %v2466_v15 = vcombine.high %v2458_v43, %v2458_v43  ;;  %v2474_v42 = vrot.slane %v2458_v43, %v8150_v3 }
 0x1e1   : > { %v2516_v20 = vcombine.high %v2514_v10, %v2514_v10  ;;  %v2530_v31 = vrot.slane %v2514_v10, %v8150_v3  ;;  %v2537_v58 = vrot.slane %v2515_v37, %v8150_v3  ;;  %v2545_v45 = vcombine.high %v2523_v5, %v2523_v5 }
 0x1e2   : > { %v3106_v25 = vrot.slane %v2523_v5, %v8150_v3  ;;  %v2488_v10 = vrot.slane %v2466_v15, %v8150_v3  ;;  %v3078_v53 = vrot.slane %v2481_v55, %v8150_v3 }
 0x1e3   : > { %v2544_v4 = vrot.slane %v2516_v20, %v8150_v3  ;;  %v2546_v41 = vcombine.high %v2530_v31, %v2530_v31  ;;  %v3162_v33 = vrot.slane %v2530_v31, %v8150_v3  ;;  %v2547_v32 = vcombine.high %v2537_v58, %v2537_v58 }
 0x1e4   : > { %v3120_v62 = vrot.slane %v2537_v58, %v8150_v3  ;;  %v3134_v43 = vrot.slane %v2545_v45, %v8150_v3  ;;  %v8509_v37 = vrot.slane %v3106_v25, %v8150_v3  ;;  %v2495_v25 = vrot.slane %v2467_v26, %v8150_v3 }
 0x1e5   : > { %v2548_v63 = vcombine.high %v2544_v4, %v2544_v4  ;;  %v3169_v20 = vrot.slane %v3162_v33, %v8150_v3  ;;  %v3176_v27 = vrot.slane %v2544_v4, %v8150_v3  ;;  %v3890_v5 = vrot.slane %v2546_v41, %v8150_v3 }
 0x1e6   : > { %v3127_v31 = vrot.slane %v3120_v62, %v8150_v3  ;;  %v3141_v17 = vrot.slane %v3134_v43, %v8150_v3  ;;  %v3148_v15 = vrot.slane %v2547_v32, %v8150_v3  ;;  %v8523_v33 = vadd.f32 %v8145_v50, %v8257_v51 }
 0x1e7   : > { %v4412_v13 = vrot.slane %v2548_v63, %v8150_v3  ;;  %v3183_v58 = vrot.slane %v3176_v27, %v8150_v3  ;;  %v3897_v45 = vrot.slane %v3890_v5, %v8150_v3  ;;  %v8532_v63 = vunpack.c.l.b16 %v3169_v20 }
 0x1e8   : > { %v3155_v41 = vrot.slane %v3148_v15, %v8150_v3  ;;  %v8527_v4 = vunpack.c.l.b16 %v3141_v17  ;;  %v8530_v43 = vunpack.c.l.b16 %v3127_v31  ;;  %v2496_v5 = vcombine.high %v2474_v42, %v2474_v42 }
 0x1e9   : > { %v4419_v32 = vrot.slane %v4412_v13, %v8150_v3  ;;  %v8534_v27 = vunpack.c.l.b16 %v3897_v45  ;;  %v8538_v59 = vunpack.c.l.b16 %v3183_v58  ;;  %v2497_v51 = vcombine.high %v2481_v55, %v2481_v55 }
 0x1ea   : > { %v8536_v26 = vunpack.c.l.b16 %v3155_v41  ;;  %v2498_v6 = vcombine.high %v2488_v10, %v2488_v10  ;;  %v2499_v13 = vcombine.high %v2495_v25, %v2495_v25  ;;  %v3022_v45 = vrot.slane %v2474_v42, %v8150_v3 }
 0x1eb   : > { %10233 = vst [vmem:[#allocation23_spill] sm:$0xff] %v8534_v27  ;;  %v8542_v62 = vunpack.c.l.b16 %v4419_v32  ;;  %v3036_v41 = vrot.slane %v2488_v10, %v8150_v3  ;;  %v3050_v58 = vrot.slane %v2496_v5, %v8150_v3  ;;  %v3092_v15 = vrot.slane %v2495_v25, %v8150_v3 }
 0x1ec   : > { %v3064_v48 = vrot.slane %v2498_v6, %v8150_v3  ;;  %v3029_v32 = vrot.slane %v3022_v45, %v8150_v3  ;;  %v3876_v31 = vrot.slane %v2497_v51, %v8150_v3  ;;  %v4398_v20 = vrot.slane %v2499_v13, %v8150_v3 }
 0x1ed   : > { %10234 = vst [vmem:[#allocation24_spill] sm:$0xff] %v8542_v62  ;;  %v3043_v17 = vrot.slane %v3036_v41, %v8150_v3  ;;  %v3057_v42 = vrot.slane %v3050_v58, %v8150_v3  ;;  %v3085_v5 = vrot.slane %v3078_v53, %v8150_v3  ;;  %v3099_v6 = vrot.slane %v3092_v15, %v8150_v3 }
 0x1ee   : > { %v3071_v10 = vrot.slane %v3064_v48, %v8150_v3  ;;  %v3376_v27 = vunpack.c.l.b16 %v3029_v32  ;;  %v3883_v25 = vrot.slane %v3876_v31, %v8150_v3  ;;  %v4405_v45 = vrot.slane %v4398_v20, %v8150_v3 }
 0x1ef   : > { %v8560_v55 = vunpack.c.l.b16 %v3043_v17  ;;  %v8566_v13 = vunpack.c.l.b16 %v3057_v42  ;;  %v8570_v48 = vunpack.c.l.b16 %v3085_v5  ;;  %v8572_v53 = vunpack.c.l.b16 %v3099_v6 }
 0x1f0   : > { %v8568_v58 = vunpack.c.l.b16 %v3071_v10  ;;  %v3449_v15 = vrot.slane %v3376_v27, 1  ;;  %v8575_v32 = vunpack.c.l.b16 %v3883_v25  ;;  %v2238_v20 = vadd.f32 %v8264_v11, %v8145_v50 }
 0x1f1   : > { %10235 = vst [vmem:[#allocation25_spill] sm:$0xff] %v8560_v55  ;;  %v3644_v17 = vrot.slane %v8560_v55, 7  ;;  %v2236_v42 = vadd.f32 %v8145_v50, %v8270_v22  ;;  %v8586_v5 = vunpack.c.l.b16 %v4405_v45  ;;  %v10015_v6 = vrot.slane %v8280_v29, 7 }
 0x1f2   : > { %10236 = vst [vmem:[#allocation2_spill] sm:$0xff] %v8575_v32  ;;  %v8584_v10 = vsel %vm3401_vm7, %v8560_v55, %v3449_v15  ;;  %v10016_v51 = vrot.slane %v8282_v19, 6  ;;  %v2246_v25 = vpack.c.bf16 %v2238_v20, %v8386_v36  ;;  %v5989_v41 = vpack.c.bf16 %v2238_v20, %v2238_v20 }
 0x1f3   : > { %10237 = vst [vmem:[#allocation20_spill] sm:$0xff] %v8586_v5  ;;  %v2245_v31 = vpack.c.bf16 %v2236_v42, %v8523_v33  ;;  %v5988_v62 = vpack.c.bf16 %v2236_v42, %v2236_v42  ;;  %v8593_v11 = vsel %vm3401_vm7, %v3644_v17, %v3376_v27  ;;  %v3405_v50 = vsel %vm3404_vm8, %v10015_v6, %v8304_v49 }
 0x1f4   : > { %10238 = vst [vmem:[#allocation26_spill] sm:$0xff] %v8593_v11  ;;  %v2605_v15 = vrot.slane %v2246_v25, %v8150_v3  ;;  %v2612_v36 = vrot.slane %v5989_v41, %v8150_v3  ;;  %v8608_v27 = vsel %vm3407_vm9, %v10016_v51, %v3405_v50  ;;  %v10239_v17 = vunpack.c.l.b16 %v8181_v40 }
 0x1f5   : > { %v2556_v20 = vrot.slane %v2245_v31, %v8150_v3  ;;  %v2563_v33 = vrot.slane %v5988_v62, %v8150_v3  ;;  %v10240_v6 = vrot.slane %v8200_v44, 1 }
 0x1f6   : > { %v8612_v49 = vrot.slane %v10239_v17, 3  ;;  %v2613_v31 = vcombine.high %v2605_v15, %v2605_v15  ;;  %v2614_v25 = vcombine.high %v2612_v36, %v2612_v36  ;;  %v2621_v62 = vrot.slane %v2605_v15, %v8150_v3 }
 0x1f7   : > { %v8619_v41 = vsel %vm3401_vm7, %v8213_v28, %v10240_v6  ;;  %v2628_v45 = vrot.slane %v2612_v36, %v8150_v3  ;;  %v2564_v50 = vcombine.high %v2556_v20, %v2556_v20  ;;  %v2565_v51 = vcombine.high %v2563_v33, %v2563_v33 }
 0x1f8   : > { %v2572_v40 = vrot.slane %v2556_v20, %v8150_v3  ;;  %v2635_v42 = vrot.slane %v2613_v31, %v8150_v3  ;;  %v2642_v22 = vrot.slane %v2614_v25, %v8150_v3  ;;  %v2643_v5 = vcombine.high %v2621_v62, %v2621_v62 }
 0x1f9   : > { %v2644_v32 = vcombine.high %v2628_v45, %v2628_v45  ;;  %v3274_v6 = vrot.slane %v2621_v62, %v8150_v3  ;;  %v3330_v55 = vrot.slane %v2628_v45, %v8150_v3  ;;  %v2579_v15 = vrot.slane %v2563_v33, %v8150_v3 }
 0x1fa   : > { %v2586_v36 = vrot.slane %v2564_v50, %v8150_v3  ;;  %v2645_v2 = vcombine.high %v2635_v42, %v2635_v42  ;;  %v2646_v16 = vcombine.high %v2642_v22, %v2642_v22  ;;  %v3288_v20 = vrot.slane %v2635_v42, %v8150_v3 }
 0x1fb   : > { %v3302_v17 = vrot.slane %v2643_v5, %v8150_v3  ;;  %v3281_v31 = vrot.slane %v3274_v6, %v8150_v3  ;;  %v3337_v25 = vrot.slane %v3330_v55, %v8150_v3  ;;  %v3344_v44 = vrot.slane %v2642_v22, %v8150_v3 }
 0x1fc   : > { %v3918_v62 = vrot.slane %v2644_v32, %v8150_v3  ;;  %v3295_v45 = vrot.slane %v3288_v20, %v8150_v3  ;;  %v3316_v50 = vrot.slane %v2645_v2, %v8150_v3  ;;  %v2593_v11 = vrot.slane %v2565_v51, %v8150_v3 }
 0x1fd   : > { %v3309_v33 = vrot.slane %v3302_v17, %v8150_v3  ;;  %v3351_v42 = vrot.slane %v3344_v44, %v8150_v3  ;;  %v3394_v14 = vunpack.c.l.b16 %v3281_v31  ;;  %v8644_v6 = vrot.slane %v2646_v16, %v8150_v3 }
 0x1fe   : > { %v3925_v5 = vrot.slane %v3918_v62, %v8150_v3  ;;  %v3323_v55 = vrot.slane %v3316_v50, %v8150_v3  ;;  %v8647_v22 = vunpack.c.l.b16 %v3295_v45  ;;  %v8649_v32 = vunpack.c.l.b16 %v3337_v25 }
 0x1ff   : > { %10241 = vst [vmem:[#allocation27_spill] sm:$0xff] %v8644_v6  ;;  %v2594_v20 = vcombine.high %v2572_v40, %v2572_v40  ;;  %v8651_v17 = vunpack.c.l.b16 %v3309_v33  ;;  %v8653_v2 = vunpack.c.l.b16 %v3351_v42  ;;  %v8655_v51 = vrot.slane %v3394_v14, 7 }
 0x200   : > { %v8657_v44 = vrot.slane %v3394_v14, 6  ;;  %v8659_v31 = vunpack.c.l.b16 %v3323_v55  ;;  %v8663_v45 = vunpack.c.l.b16 %v3925_v5  ;;  %v2595_v25 = vcombine.high %v2579_v15, %v2579_v15 }
 0x201   : > { %v2596_v50 = vcombine.high %v2586_v36, %v2586_v36  ;;  %v2597_v33 = vcombine.high %v2593_v11, %v2593_v11  ;;  %v3190_v42 = vrot.slane %v2572_v40, %v8150_v3  ;;  %v3204_v6 = vrot.slane %v2586_v36, %v8150_v3 }
 0x202   : > { %10242 = vst [vmem:[#allocation28_spill] sm:$0xff] %v8657_v44  ;;  %10243 = vst [vmem:[#allocation29_spill] sm:$0xff] %v8663_v45  ;;  %v3218_v14 = vrot.slane %v2594_v20, %v8150_v3  ;;  %v3246_v44 = vrot.slane %v2579_v15, %v8150_v3  ;;  %v3260_v55 = vrot.slane %v2593_v11, %v8150_v3 }
 0x203   : > { %v3197_v16 = vrot.slane %v3190_v42, %v8150_v3  ;;  %v3232_v62 = vrot.slane %v2596_v50, %v8150_v3  ;;  %v3904_v5 = vrot.slane %v2595_v25, %v8150_v3  ;;  %v4426_v45 = vrot.slane %v2597_v33, %v8150_v3 }
 0x204   : > { %v3211_v23 = vrot.slane %v3204_v6, %v8150_v3  ;;  %v3225_v40 = vrot.slane %v3218_v14, %v8150_v3  ;;  %v3253_v36 = vrot.slane %v3246_v44, %v8150_v3  ;;  %v3267_v20 = vrot.slane %v3260_v55, %v8150_v3 }
 0x205   : > { %v3239_v15 = vrot.slane %v3232_v62, %v8150_v3  ;;  %v3388_v8 = vunpack.c.l.b16 %v3197_v16  ;;  %v3911_v11 = vrot.slane %v3904_v5, %v8150_v3  ;;  %v4433_v42 = vrot.slane %v4426_v45, %v8150_v3 }
 0x206   : > { %v8682_v25 = vunpack.c.l.b16 %v3211_v23  ;;  %v8684_v33 = vunpack.c.l.b16 %v3225_v40  ;;  %v8686_v6 = vunpack.c.l.b16 %v3253_v36  ;;  %v8690_v44 = vunpack.c.l.b16 %v3267_v20 }
 0x207   : > { %v8688_v14 = vunpack.c.l.b16 %v3239_v15  ;;  %v8692_v55 = vrot.slane %v3388_v8, 5  ;;  %v8694_v62 = vunpack.c.l.b16 %v3911_v11  ;;  %v8696_v16 = vrot.slane %v3388_v8, 4 }
 0x208   : > { %v8698_v5 = vunpack.c.l.b16 %v4433_v42  ;;  %v10245_v23 = vrot.slane %v8284_v56, 5  ;;  %v10246_v40 = vrot.slane %v8192_v35, 7  ;;  %v10247_v11 = vrot.slane %v8286_v12, 4 }
 0x209   : > { %v3425_v42 = vrot.slane %v8205_v30, 6  ;;  %v3431_v3 = vrot.slane %v8453_v46, 3  ;;  %v3433_v20 = vrot.slane %v8462_v38, 2 }
 0x20a   : > { %10244 = vst [vmem:[#allocation30_spill] sm:$0xff] %v8698_v5  ;;  %v3411_v45 = vsel %vm3410_vm10, %v10245_v23, %v8608_v27  ;;  %v3424_v36 = vsel %vm3404_vm8, %v10246_v40, %v8619_v41  ;;  %v3429_v23 = vrot.slane %v8451_v18, 4  ;;  %v10248_v41 = vrot.slane %v8198_v47, 2 }
 0x20b   : > { %v3414_v8 = vsel %vm3413_vm11, %v10247_v11, %v3411_v45  ;;  %v3426_v15 = vsel %vm3407_vm9, %v3425_v42, %v3424_v36  ;;  %v10249_v45 = vrot.slane %v8280_v29, 7  ;;  %v10251_v5 = vrot.slane %v8192_v35, 7 }
 0x20c   : > { %v3417_v27 = vsel %vm3416_vm12, %v8612_v49, %v3414_v8  ;;  %v3428_v49 = vsel %vm3410_vm10, %v8464_v24, %v3426_v15  ;;  %v10250_v8 = vrot.slane %v8282_v19, 6  ;;  %v10252_v36 = vrot.slane %v8455_v61, 1 }
 0x20d   : > { %v3420_v40 = vsel %vm3419_vm13, %v10248_v41, %v3417_v27  ;;  %v3934_v11 = vsel %vm3401_vm7, %v10249_v45, %v8276_v57  ;;  %v3942_v27 = vsel %vm3401_vm7, %v10251_v5, %v8213_v28  ;;  %v3430_v29 = vsel %vm3413_vm11, %v3429_v23, %v3428_v49 }
 0x20e   : > { %v3935_v50 = vsel %vm3404_vm8, %v10250_v8, %v3934_v11  ;;  %v3436_v41 = vsel %vm3401_vm7, %v8458_v34, %v10252_v36  ;;  %v10253_v57 = vrot.slane %v8284_v56, 5  ;;  %v3943_v15 = vsel %vm3404_vm8, %v3425_v42, %v3942_v27 }
 0x20f   : > { %v3438_v45 = vsel %vm3404_vm8, %v8425_v1, %v3436_v41  ;;  %v3432_v35 = vsel %vm3416_vm12, %v3431_v3, %v3430_v29  ;;  %v10254_v5 = vrot.slane %v8286_v12, 4  ;;  %v10255_v8 = vrot.slane %v8207_v21, 5  ;;  %v6943_v41 = vld [vmem:[%s9945_s3] sm:$0xff]  }
 0x210   : > { %v3936_v24 = vsel %vm3407_vm9, %v10253_v57, %v3935_v50  ;;  %v10256_v49 = vrot.slane %v8414_v60, 6  ;;  %v3434_v50 = vsel %vm3419_vm13, %v3433_v20, %v3432_v35  ;;  %v10257_v42 = vrot.slane %v8289_v7, 3 }
 0x211   : > { %v3937_v11 = vsel %vm3410_vm10, %v10254_v5, %v3936_v24  ;;  %v3945_v36 = vsel %vm3407_vm9, %v10255_v8, %v3943_v15  ;;  %v10040_v29 = vrot.slane %v8419_v52, 5  ;;  %v3491_v57 = vpack.c.b16 %v3434_v50, %v3420_v40 }
 0x212   : > { %v3440_v28 = vsel %vm3407_vm9, %v10256_v49, %v3438_v45  ;;  %v3939_v1 = vsel %vm3413_vm11, %v10257_v42, %v3937_v11  ;;  %v3946_v27 = vsel %vm3410_vm10, %v3429_v23, %v3945_v36  ;;  %v10258_v24 = vrot.slane %v8198_v47, 2 }
 0x213   : > { %v3947_v45 = vsel %vm3413_vm11, %v3431_v3, %v3946_v27  ;;  %v10035_v35 = vrot.slane %v8427_v39, 4  ;;  %v3442_v23 = vsel %vm3410_vm10, %v10040_v29, %v3440_v28  ;;  %v10033_v11 = vrot.slane %v8421_v0, 3  ;;  %6581 = vmatmul.mubr.bf16.vlgmr.msra.gmra.mrb[0].mxu1 %v3491_v57  ;;  %v6944_v28 = vld [vmem:[%s9945_s3 + $0x8] sm:$0xff]  }
 0x214   : > { %v8770_v15 = vsel %vm3416_vm12, %v10258_v24, %v3939_v1  ;;  %v8775_v5 = vsel %vm3416_vm12, %v3433_v20, %v3947_v45  ;;  %v10034_v40 = vrot.slane %v8423_v54, 2  ;;  %v10036_v3 = vrot.slane %v8566_v13, 7  ;;  %6593 = vmatpush3.bf16.msra.mxu1 %v6943_v41 }
 0x215   : > { %v3444_v8 = vsel %vm3413_vm11, %v10035_v35, %v3442_v23  ;;  %v10037_v36 = vrot.slane %v8568_v58, 6  ;;  %v10038_v20 = vrot.slane %v8570_v48, 5  ;;  %v10259_v49 = vmov 0.0  }
 0x216   : > { %6584 = vmatprep.mubr.msk.bf16.mxu1 %vm7048_vm6, %v10259_v49  ;;  %v3446_v50 = vsel %vm3416_vm12, %v10033_v11, %v3444_v8  ;;  %v10041_v42 = vrot.slane %v8572_v53, 4  ;;  %v10260_v1 = vunpack.c.l.b16 %v8509_v37  ;;  %v10048_v57 = vrot.slane %v8530_v43, 2  ;;  %6594 = vmatprep.subr.bf16.mxu1 %v10259_v49 }
 0x217   : > { %v3448_v41 = vsel %vm3419_vm13, %v10034_v40, %v3446_v50  ;;  %v3452_v24 = vsel %vm3404_vm8, %v10036_v3, %v8584_v10  ;;  %v10261_v45 = vrot.slane %v8527_v4, 1  ;;  %v10039_v8 = vrot.slane %v8532_v63, 7 }
 0x218   : > { %v3459_v27 = vrot.slane %v10260_v1, 3  ;;  %v3454_v1 = vsel %vm3407_vm9, %v10037_v36, %v3452_v24  ;;  %v10050_v11 = vrot.slane %v8538_v59, 6  ;;  %v10049_v50 = vrot.slane %v8682_v25, 4  ;;  %6595 = vmatpush3.bf16.msra.mxu1 %v6944_v28  ;;  %v6945_v36 = vld [vmem:[%s9945_s3 + $0x10] sm:$0xff]  }
 0x219   : > { %v3464_v23 = vsel %vm3401_vm7, %v8536_v26, %v10261_v45  ;;  %v10047_v40 = vrot.slane %v8684_v33, 3  ;;  %v3456_v10 = vsel %vm3410_vm10, %v10038_v20, %v3454_v1  ;;  %v10046_v35 = vrot.slane %v8688_v14, 2  ;;  %6596 = vmatprep.subr.bf16.mxu1 %v10259_v49 }
 0x21a   : > { %v3466_v45 = vsel %vm3404_vm8, %v10039_v8, %v3464_v23  ;;  %v10262_v3 = vrot.slane %v8686_v6, 1  ;;  %v3458_v1 = vsel %vm3413_vm11, %v10041_v42, %v3456_v10  ;;  %v10045_v8 = vrot.slane %v8651_v17, 5 }
 0x21b   : > { %v3468_v23 = vsel %vm3407_vm9, %v10050_v11, %v3466_v45  ;;  %v10263_v29 = vrot.slane %v8647_v22, 6  ;;  %v10043_v42 = vrot.slane %v8659_v31, 4  ;;  %v3658_v11 = vrot.slane %v8536_v26, 7 }
 0x21c   : > { %v3478_v24 = vsel %vm3401_vm7, %v8690_v44, %v10262_v3  ;;  %v3460_v3 = vsel %vm3416_vm12, %v3459_v27, %v3458_v1  ;;  %v3470_v28 = vsel %vm3410_vm10, %v8692_v55, %v3468_v23  ;;  %v10042_v55 = vrot.slane %v8649_v32, 3  ;;  %6597 = vmatpush3.bf16.msra.mxu1 %v6945_v36  ;;  %v6946_v23 = vld [vmem:[%s9945_s3 + $0x18] sm:$0xff]  }
 0x21d   : > { %v3480_v20 = vsel %vm3404_vm8, %v8655_v51, %v3478_v24  ;;  %v3462_v45 = vsel %vm3419_vm13, %v10048_v57, %v3460_v3  ;;  %v3472_v51 = vsel %vm3413_vm11, %v10049_v50, %v3470_v28  ;;  %v10044_v1 = vrot.slane %v8653_v2, 2  ;;  %6598 = vmatprep.subr.bf16.mxu1 %v10259_v49  ;;  %v10272_v50 = vld [vmem:[#allocation26_spill] sm:$0xff] }
 0x21e   : > { %v3482_v10 = vsel %vm3407_vm9, %v10263_v29, %v3480_v20  ;;  %v3492_v24 = vpack.c.b16 %v3462_v45, %v3448_v41  ;;  %v3474_v29 = vsel %vm3416_vm12, %v10047_v40, %v3472_v51  ;;  %v10264_v28 = vrot.slane %v8284_v56, 4 }
 0x21f   : > { %v3484_v27 = vsel %vm3410_vm10, %v10045_v8, %v3482_v10  ;;  %v3476_v3 = vsel %vm3419_vm13, %v10046_v35, %v3474_v29  ;;  %v3614_v45 = vrot.slane %v8198_v47, 1  ;;  %v10265_v51 = vrot.slane %v8286_v12, 3  ;;  %v10266_v29 = vld [vmem:[#allocation16_spill] sm:$0xff] }
 0x220   : > { %v3486_v20 = vsel %vm3413_vm11, %v10043_v42, %v3484_v27  ;;  %v3609_v10 = vsel %vm3410_vm10, %v10264_v28, %v8322_v9  ;;  %6585 = vmatmul.mubr.bf16.gmra.mrb[4].mxu1 %v3492_v24  ;;  %v3626_v9 = vrot.slane %v8453_v46, 2  ;;  %v10268_v24 = vld [vmem:[#allocation7_spill] sm:$0xff]  ;;  %v3650_v8 = vrot.slane %v8570_v48, 4 }
 0x221   : > { %v3488_v41 = vsel %vm3416_vm12, %v10042_v55, %v3486_v20  ;;  %v3611_v27 = vsel %vm3413_vm11, %v10265_v51, %v3609_v10  ;;  %v10267_v20 = vrot.slane %v8451_v18, 3  ;;  %6588 = vmatprep.mubr.msk.bf16.mxu1 %vm7048_vm6, %v10259_v49  ;;  %6599 = vmatpush3.bf16.msra.mxu1 %v6946_v23  ;;  %v10269_v23 = vld [vmem:[#allocation19_spill] sm:$0xff]  ;;  %v3652_v35 = vrot.slane %v8572_v53, 3 }
 0x222   : > { %v3490_v36 = vsel %vm3419_vm13, %v10044_v1, %v3488_v41  ;;  %v3613_v42 = vsel %vm3416_vm12, %v10268_v24, %v3611_v27  ;;  %v3628_v41 = vrot.slane %v8462_v38, 1  ;;  %v3630_v1 = vrot.slane %v8458_v34, 7  ;;  %6600 = vmatprep.subr.bf16.mxu1 %v10259_v49 }
 0x223   : > { %v3625_v55 = vsel %vm3413_vm11, %v10267_v20, %v10266_v29  ;;  %v3493_v28 = vpack.c.b16 %v3490_v36, %v3476_v3  ;;  %v8900_v10 = vsel %vm3419_vm13, %v3614_v45, %v3613_v42  ;;  %v3636_v29 = vrot.slane %v8419_v52, 4  ;;  %v6947_v3 = vld [vmem:[%s9945_s3 + $0x20] sm:$0xff]  }
 0x224   : > { %v3627_v51 = vsel %vm3416_vm12, %v3626_v9, %v3625_v55  ;;  %v3638_v20 = vrot.slane %v8427_v39, 3  ;;  %v3631_v27 = vsel %vm3401_vm7, %v3630_v1, %v8455_v61  ;;  %v3640_v42 = vrot.slane %v8421_v0, 2 }
 0x225   : > { %v8909_v36 = vsel %vm3419_vm13, %v3628_v41, %v3627_v51  ;;  %v3642_v45 = vrot.slane %v8423_v54, 1  ;;  %v3633_v9 = vsel %vm3404_vm8, %v10269_v23, %v3631_v27  ;;  %v3646_v24 = vrot.slane %v8566_v13, 6  ;;  %6601 = vmatpush3.bf16.msra.mxu1 %v6947_v3 }
 0x226   : > { %v3648_v41 = vrot.slane %v8568_v58, 5  ;;  %v10270_v51 = vrot.slane %v8414_v60, 5  ;;  %v10271_v40 = vunpack.c.l.b16 %v8509_v37  ;;  %v3656_v23 = vrot.slane %v8530_v43, 1  ;;  %6602 = vmatprep.subr.bf16.mxu1 %v10259_v49 }
 0x227   : > { %v3647_v27 = vsel %vm3404_vm8, %v3646_v24, %v10272_v50  ;;  %v3660_v37 = vrot.slane %v8532_v63, 6  ;;  %v3659_v3 = vsel %vm3401_vm7, %v3658_v11, %v8527_v4  ;;  %v3666_v24 = vrot.slane %v8682_v25, 3 }
 0x228   : > { %v3635_v1 = vsel %vm3407_vm9, %v10270_v51, %v3633_v9  ;;  %v3654_v57 = vrot.slane %v10271_v40, 2  ;;  %v6948_v9 = vld [vmem:[%s9945_s3 + $0x28] sm:$0xff]   ;;  %v3649_v46 = vsel %vm3407_vm9, %v3648_v41, %v3647_v27  ;;  %v3662_v40 = vrot.slane %v8538_v59, 5  ;;  %6589 = vmatmul.mubr.bf16.gmra.mrb[8].mxu1 %v3493_v28 }
 0x229   : > { %v3637_v55 = vsel %vm3410_vm10, %v3636_v29, %v3635_v1  ;;  %v3651_v29 = vsel %vm3410_vm10, %v3650_v8, %v3649_v46  ;;  %6608 = vmatprep.mubr.msk.bf16.mxu1 %vm7048_vm6, %v10259_v49  ;;  %v3661_v41 = vsel %vm3404_vm8, %v3660_v37, %v3659_v3  ;;  %v3668_v28 = vrot.slane %v8684_v33, 2  ;;  %6603 = vmatpush3.bf16.msra.mxu1 %v6948_v9  ;;  %v10274_v3 = vld [vmem:[#allocation21_spill] sm:$0xff] }
 0x22a   : > { %v3639_v51 = vsel %vm3413_vm11, %v3638_v20, %v3637_v55  ;;  %v3653_v55 = vsel %vm3413_vm11, %v3652_v35, %v3651_v29  ;;  %v3663_v46 = vsel %vm3407_vm9, %v3662_v40, %v3661_v41  ;;  %v3670_v11 = vrot.slane %v8688_v14, 1  ;;  %6604 = vmatprep.subr.bf16.mxu1 %v10259_v49 }
 0x22b   : > { %v3641_v50 = vsel %vm3416_vm12, %v3640_v42, %v3639_v51  ;;  %v3655_v42 = vsel %vm3416_vm12, %v3654_v57, %v3653_v55  ;;  %v3672_v8 = vrot.slane %v8690_v44, 7  ;;  %v3665_v35 = vsel %vm3410_vm10, %v8696_v16, %v3663_v46 }
 0x22c   : > { %v8950_v20 = vsel %vm3419_vm13, %v3642_v45, %v3641_v50  ;;  %v6949_v45 = vld [vmem:[%s9945_s3 + $0x30] sm:$0xff]   ;;  %v8963_v1 = vsel %vm3419_vm13, %v3656_v23, %v3655_v42  ;;  %v3678_v27 = vrot.slane %v8651_v17, 4  ;;  %v3680_v57 = vrot.slane %v8659_v31, 3 }
 0x22d   : > { %v3667_v9 = vsel %vm3413_vm11, %v3666_v24, %v3665_v35  ;;  %v3673_v37 = vsel %vm3401_vm7, %v3672_v8, %v8686_v6  ;;  %v3682_v23 = vrot.slane %v8649_v32, 2  ;;  %v10273_v50 = vld [vmem:[#allocation28_spill] sm:$0xff]  ;;  %v3684_v29 = vrot.slane %v8653_v2, 1  ;;  %v10281_v35 = vld [vmem:[#allocation14_spill] sm:$0xff]  ;;  %6605 = vmatpush3.bf16.msra.mxu1 %v6949_v45 }
 0x22e   : > { %v3669_v40 = vsel %vm3416_vm12, %v3668_v28, %v3667_v9  ;;  %v3675_v16 = vsel %vm3404_vm8, %v10273_v50, %v3673_v37  ;;  %v10275_v55 = vrot.slane %v10274_v3, 1  ;;  %v10278_v42 = vrot.slane %v8647_v22, 5  ;;  %6606 = vmatprep.subr.bf16.mxu1 %v10259_v49 }
 0x22f   : > { %v8987_v24 = vsel %vm3419_vm13, %v3670_v11, %v3669_v40  ;;  %v10279_v28 = vrot.slane %v8455_v61, 1  ;;  %v10282_v9 = vrot.slane %v10281_v35, 7  ;;  %v10283_v50 = vrot.slane %v8414_v60, 6  ;;  %v10288_v40 = vld [vmem:[#allocation2_spill] sm:$0xff] }
 0x230   : > { %v8984_v41 = vsel %vm3419_vm13, %v10275_v55, %v8770_v15  ;;  %10277 = vst [vmem:[#allocation7_spill] sm:$0xff] %v8987_v24  ;;  %v3677_v46 = vsel %vm3407_vm9, %v10278_v42, %v3675_v16  ;;  %v6950_v15 = vld [vmem:[%s9945_s3 + $0x38] sm:$0xff]   ;;  %v10284_v16 = vld [vmem:[#allocation12_spill] sm:$0xff]  ;;  %v10285_v45 = vrot.slane %v8419_v52, 5  ;;  %v3963_v51 = vrot.slane %v10288_v40, 3 }
 0x231   : > { %10276 = vst [vmem:[#allocation16_spill] sm:$0xff] %v8984_v41  ;;  %v8996_v8 = vsel %vm3419_vm13, %v10279_v28, %v8775_v5  ;;  %v3951_v37 = vsel %vm3401_vm7, %v10282_v9, %v8458_v34  ;;  %v3679_v11 = vsel %vm3410_vm10, %v3678_v27, %v3677_v46  ;;  %v3957_v55 = vrot.slane %v10284_v16, 1  ;;  %v10286_v9 = vld [vmem:[#allocation25_spill] sm:$0xff]  ;;  %6607 = vmatpush3.bf16.msra.mxu1 %v6950_v15 }
 0x232   : > { %10280 = vst [vmem:[#allocation19_spill] sm:$0xff] %v8996_v8  ;;  %v3952_v5 = vsel %vm3404_vm8, %v10283_v50, %v3951_v37  ;;  %v3681_v42 = vsel %vm3413_vm11, %v3680_v57, %v3679_v11  ;;  %v10287_v27 = vrot.slane %v8566_v13, 7  ;;  %v10289_v37 = vrot.slane %v8427_v39, 4  ;;  %6620 = vmatprep.subr.bf16.mxu1 %v10259_v49 }
 0x233   : > { %v3953_v28 = vsel %vm3407_vm9, %v10285_v45, %v3952_v5  ;;  %v3683_v41 = vsel %vm3416_vm12, %v3682_v23, %v3681_v42  ;;  %v10290_v8 = vrot.slane %v8568_v58, 6  ;;  %v10291_v11 = vrot.slane %v8532_v63, 7 }
 0x234   : > { %v3959_v46 = vsel %vm3401_vm7, %v10287_v27, %v10286_v9  ;;  %v3954_v50 = vsel %vm3410_vm10, %v10289_v37, %v3953_v28  ;;  %v9034_v45 = vsel %vm3419_vm13, %v3684_v29, %v3683_v41  ;;  %v10292_v27 = vrot.slane %v8421_v0, 3 }
 0x235   : > { %v3960_v57 = vsel %vm3404_vm8, %v10290_v8, %v3959_v46  ;;  %v3967_v5 = vsel %vm3401_vm7, %v10291_v11, %v8536_v26  ;;  %v10293_v42 = vrot.slane %v8570_v48, 5  ;;  %v10294_v37 = vrot.slane %v8538_v59, 6  ;;  %v6951_v46 = vld [vmem:[%s9945_s3 + $0x80] sm:$0xff]  }
 0x236   : > { %v3955_v23 = vsel %vm3413_vm11, %v10292_v27, %v3954_v50  ;;  %v10295_v41 = vrot.slane %v8423_v54, 2  ;;  %v10296_v11 = vrot.slane %v8572_v53, 4  ;;  %v10297_v27 = vld [vmem:[#allocation23_spill] sm:$0xff]  ;;  %v10299_v29 = vrot.slane %v8682_v25, 4 }
 0x237   : > { %v3961_v28 = vsel %vm3407_vm9, %v10293_v42, %v3960_v57  ;;  %v3968_v8 = vsel %vm3404_vm8, %v10294_v37, %v3967_v5  ;;  %v10298_v42 = vrot.slane %v10297_v27, 5 }
 0x238   : > { %v3956_v50 = vsel %vm3416_vm12, %v10295_v41, %v3955_v23  ;;  %v3962_v57 = vsel %vm3410_vm10, %v10296_v11, %v3961_v28  ;;  %v10300_v23 = vrot.slane %v8694_v62, 7  ;;  %v10301_v41 = vrot.slane %v8530_v43, 2 }
 0x239   : > { %v3970_v5 = vsel %vm3407_vm9, %v10298_v42, %v3968_v8  ;;  %v9061_v15 = vsel %vm3419_vm13, %v3957_v55, %v3956_v50  ;;  %v3964_v37 = vsel %vm3413_vm11, %v3963_v51, %v3962_v57  ;;  %v10302_v11 = vrot.slane %v8684_v33, 3  ;;  %v10304_v57 = vld [vmem:[#allocation29_spill] sm:$0xff] }
 0x23a   : > { %v3971_v24 = vsel %vm3410_vm10, %v10299_v29, %v3970_v5  ;;  %v3976_v28 = vsel %vm3401_vm7, %v10300_v23, %v8690_v44  ;;  %v3965_v8 = vsel %vm3416_vm12, %v10301_v41, %v3964_v37  ;;  %v10303_v50 = vrot.slane %v8647_v22, 6 }
 0x23b   : > { %v3972_v55 = vsel %vm3413_vm11, %v10302_v11, %v3971_v24  ;;  %v3982_v42 = vrot.slane %v10304_v57, 1  ;;  %v10305_v29 = vpack.c.b16 %v8909_v36, %v8900_v10  ;;  %v10306_v5 = vrot.slane %v8527_v4, 1  ;;  %v6952_v10 = vld [vmem:[%s9945_s3 + $0x88] sm:$0xff]  }
 0x23c   : > { %v3977_v51 = vsel %vm3404_vm8, %v10303_v50, %v3976_v28  ;;  %v10307_v37 = vrot.slane %v8688_v14, 2  ;;  %v10308_v24 = vrot.slane %v8651_v17, 5  ;;  %v10309_v28 = vld [vmem:[#allocation17_spill] sm:$0xff]  ;;  %v10310_v50 = vrot.slane %v8282_v19, 7 }
 0x23d   : > { %6609 = vmatmul.mubr.bf16.vlgmr.msra.gmra.mrb[12].mxu1 %v10305_v29  ;;  %v9087_v23 = vsel %vm3419_vm13, %v10306_v5, %v3965_v8  ;;  %v10311_v8 = vrot.slane %v8686_v6, 1  ;;  %v10312_v19 = vrot.slane %v8659_v31, 4  ;;  %v10313_v29 = vrot.slane %v8649_v32, 3 }
 0x23e   : > { %v3973_v41 = vsel %vm3416_vm12, %v10307_v37, %v3972_v55  ;;  %v3978_v11 = vsel %vm3407_vm9, %v10308_v24, %v3977_v51  ;;  %v4121_v57 = vsel %vm3404_vm8, %v10310_v50, %v10309_v28  ;;  %6621 = vmatpush3.bf16.msra.mxu1 %v6951_v46  ;;  %6612 = vmatprep.mubr.msk.bf16.mxu1 %vm7048_vm6, %v10259_v49  ;;  %v10314_v37 = vrot.slane %v8284_v56, 6  ;;  %v10315_v28 = vld [vmem:[#allocation11_spill] sm:$0xff] }
 0x23f   : > { %v9109_v55 = vsel %vm3419_vm13, %v10311_v8, %v3973_v41  ;;  %v3979_v51 = vsel %vm3410_vm10, %v10312_v19, %v3978_v11  ;;  %6622 = vmatprep.subr.bf16.mxu1 %v10259_v49  ;;  %v10316_v41 = vrot.slane %v8205_v30, 7  ;;  %v4142_v8 = vrot.slane %v8462_v38, 3 }
 0x240   : > { %v3980_v5 = vsel %vm3413_vm11, %v10313_v29, %v3979_v51  ;;  %v4123_v24 = vsel %vm3407_vm9, %v10314_v37, %v4121_v57  ;;  %v10317_v11 = vrot.slane %v8653_v2, 2  ;;  %v10318_v36 = vrot.slane %v8286_v12, 5 }
 0x241   : > { %v4135_v50 = vsel %vm3404_vm8, %v10316_v41, %v10315_v28  ;;  %v10319_v51 = vrot.slane %v8207_v21, 6  ;;  %v4144_v57 = vrot.slane %v8455_v61, 2  ;;  %v10320_v29 = vrot.slane %v8289_v7, 4  ;;  %v6953_v21 = vld [vmem:[%s9945_s3 + $0x90] sm:$0xff]  }
 0x242   : > { %v3981_v19 = vsel %vm3416_vm12, %v10317_v11, %v3980_v5  ;;  %v4125_v46 = vsel %vm3410_vm10, %v10318_v36, %v4123_v24  ;;  %v10321_v28 = vrot.slane %v8451_v18, 5  ;;  %v10065_v41 = vrot.slane %v8458_v34, 1  ;;  %6623 = vmatpush3.bf16.msra.mxu1 %v6952_v10 }
 0x243   : > { %v4137_v56 = vsel %vm3407_vm9, %v10319_v51, %v4135_v50  ;;  %v9138_v30 = vsel %vm3419_vm13, %v3982_v42, %v3981_v19  ;;  %v4127_v37 = vsel %vm3413_vm11, %v10320_v29, %v4125_v46  ;;  %v10322_v42 = vrot.slane %v8198_v47, 3  ;;  %v10323_v50 = vld [vmem:[#allocation15_spill] sm:$0xff]  ;;  %6624 = vmatprep.subr.bf16.mxu1 %v10259_v49 }
 0x244   : > { %v4139_v5 = vsel %vm3410_vm10, %v10321_v28, %v4137_v56  ;;  %v10324_v46 = vrot.slane %v10323_v50, 4  ;;  %v10064_v11 = vrot.slane %v8419_v52, 6  ;;  %v10325_v10 = vrot.slane %v10274_v3, 2 }
 0x245   : > { %v4129_v24 = vsel %vm3416_vm12, %v10322_v42, %v4127_v37  ;;  %v4147_v47 = vsel %vm3401_vm7, %v10281_v35, %v10065_v41  ;;  %v10056_v56 = vrot.slane %v8427_v39, 5  ;;  %v10327_v37 = vrot.slane %v8414_v60, 7 }
 0x246   : > { %v4141_v18 = vsel %vm3413_vm11, %v10324_v46, %v4139_v5  ;;  %v9163_v19 = vsel %vm3419_vm13, %v10325_v10, %v4129_v24  ;;  %v10057_v5 = vrot.slane %v8421_v0, 4  ;;  %v10058_v42 = vrot.slane %v8423_v54, 3  ;;  %6625 = vmatpush3.bf16.msra.mxu1 %v6953_v21 }
 0x247   : > { %10326 = vst [vmem:[#allocation26_spill] sm:$0xff] %v9163_v19  ;;  %v4143_v51 = vsel %vm3416_vm12, %v4142_v8, %v4141_v18  ;;  %v4149_v28 = vsel %vm3404_vm8, %v10327_v37, %v4147_v47  ;;  %v10328_v24 = vpack.c.b16 %v8963_v1, %v8950_v20  ;;  %v10059_v10 = vrot.slane %v10284_v16, 2  ;;  %v6954_v20 = vld [vmem:[%s9945_s3 + $0x98] sm:$0xff]   ;;  %6626 = vmatprep.subr.bf16.mxu1 %v10259_v49 }
 0x248   : > { %v9176_v29 = vsel %vm3419_vm13, %v4144_v57, %v4143_v51  ;;  %v4151_v18 = vsel %vm3407_vm9, %v10064_v11, %v4149_v28  ;;  %v10329_v60 = vrot.slane %v10286_v9, 1  ;;  %v10063_v47 = vrot.slane %v8568_v58, 7 }
 0x249   : > { %6613 = vmatmul.mubr.bf16.gmra.mrb[16].mxu1 %v10328_v24  ;;  %v4153_v1 = vsel %vm3410_vm10, %v10056_v56, %v4151_v18  ;;  %v10062_v37 = vrot.slane %v8570_v48, 6  ;;  %v10060_v9 = vrot.slane %v8572_v53, 5  ;;  %v10066_v28 = vrot.slane %v10288_v40, 4 }
 0x24a   : > { %v4161_v51 = vsel %vm3401_vm7, %v8566_v13, %v10329_v60  ;;  %6616 = vmatprep.mubr.msk.bf16.mxu1 %vm7048_vm6, %v10259_v49  ;;  %v4155_v21 = vsel %vm3413_vm11, %v10057_v5, %v4153_v1  ;;  %v4170_v24 = vrot.slane %v8530_v43, 3  ;;  %v10077_v60 = vrot.slane %v8527_v4, 2  ;;  %6627 = vmatpush3.bf16.msra.mxu1 %v6954_v20 }
 0x24b   : > { %v4157_v18 = vsel %vm3416_vm12, %v10058_v42, %v4155_v21  ;;  %v4163_v46 = vsel %vm3404_vm8, %v10063_v47, %v4161_v51  ;;  %v10061_v36 = vrot.slane %v8536_v26, 1  ;;  %v10067_v56 = vrot.slane %v8538_v59, 7  ;;  %v6955_v51 = vld [vmem:[%s9945_s3 + $0xa0] sm:$0xff]   ;;  %6628 = vmatprep.subr.bf16.mxu1 %v10259_v49 }
 0x24c   : > { %v9225_v1 = vsel %vm3419_vm13, %v10059_v10, %v4157_v18  ;;  %v4165_v43 = vsel %vm3407_vm9, %v10062_v37, %v4163_v46  ;;  %v4180_v5 = vrot.slane %v8682_v25, 5  ;;  %v10069_v21 = vrot.slane %v8684_v33, 4 }
 0x24d   : > { %10330 = vst [vmem:[#allocation28_spill] sm:$0xff] %v9225_v1  ;;  %v4167_v42 = vsel %vm3410_vm10, %v10060_v9, %v4165_v43  ;;  %v4175_v18 = vsel %vm3401_vm7, %v8532_v63, %v10061_v36  ;;  %v10070_v46 = vrot.slane %v8688_v14, 3  ;;  %v10071_v25 = vrot.slane %v8686_v6, 2 }
 0x24e   : > { %v4169_v20 = vsel %vm3413_vm11, %v10066_v28, %v4167_v42  ;;  %v4177_v10 = vsel %vm3404_vm8, %v10067_v56, %v4175_v18  ;;  %v10068_v43 = vrot.slane %v8690_v44, 1  ;;  %v10073_v9 = vrot.slane %v8651_v17, 6  ;;  %v10332_v42 = vld [vmem:[#allocation7_spill] sm:$0xff]  ;;  %6629 = vmatpush3.bf16.msra.mxu1 %v6955_v51 }
 0x24f   : > { %v4171_v36 = vsel %vm3416_vm12, %v4170_v24, %v4169_v20  ;;  %v10331_v37 = vrot.slane %v10297_v27, 6  ;;  %v10072_v11 = vrot.slane %v8659_v31, 5  ;;  %v10076_v41 = vrot.slane %v8649_v32, 4  ;;  %v10336_v24 = vld [vmem:[#allocation29_spill] sm:$0xff]  ;;  %6630 = vmatprep.subr.bf16.mxu1 %v10259_v49 }
 0x250   : > { %v10333_v28 = vpack.c.b16 %v9034_v45, %v10332_v42  ;;  %v9265_v18 = vsel %vm3419_vm13, %v10077_v60, %v4171_v36  ;;  %v6956_v45 = vld [vmem:[%s9945_s3 + $0xa8] sm:$0xff]   ;;  %v10075_v51 = vrot.slane %v10336_v24, 2  ;;  %v10337_v36 = vld [vmem:[#allocation18_spill] sm:$0xff] }
 0x251   : > { %v4179_v47 = vsel %vm3407_vm9, %v10331_v37, %v4177_v10  ;;  %10334 = vst [vmem:[#allocation21_spill] sm:$0xff] %v9265_v18  ;;  %v4189_v10 = vsel %vm3401_vm7, %v8694_v62, %v10068_v43  ;;  %v10074_v37 = vrot.slane %v8653_v2, 3  ;;  %v10338_v43 = vrot.slane %v8286_v12, 5 }
 0x252   : > { %6617 = vmatmul.mubr.bf16.gmra.mrb[20].mxu1 %v10333_v28  ;;  %v4181_v56 = vsel %vm3410_vm10, %v4180_v5, %v4179_v47  ;;  %v10335_v47 = vrot.slane %v8647_v22, 7  ;;  %v10339_v22 = vld [vmem:[#allocation9_spill] sm:$0xff] }
 0x253   : > { %6636 = vmatprep.mubr.msk.bf16.mxu1 %vm7048_vm6, %v10259_v49  ;;  %v4183_v5 = vsel %vm3413_vm11, %v10069_v21, %v4181_v56  ;;  %v4458_v56 = vsel %vm3407_vm9, %v10338_v43, %v10337_v36  ;;  %6631 = vmatpush3.bf16.msra.mxu1 %v6956_v45 }
 0x254   : > { %v4191_v28 = vsel %vm3404_vm8, %v10335_v47, %v4189_v10  ;;  %v4185_v20 = vsel %vm3416_vm12, %v10070_v46, %v4183_v5  ;;  %v10340_v10 = vrot.slane %v10323_v50, 4  ;;  %6632 = vmatprep.subr.bf16.mxu1 %v10259_v49 }
 0x255   : > { %v4193_v42 = vsel %vm3407_vm9, %v10073_v9, %v4191_v28  ;;  %v9305_v21 = vsel %vm3419_vm13, %v10071_v25, %v4185_v20  ;;  %v10342_v28 = vrot.slane %v8289_v7, 4  ;;  %v10345_v25 = vld [vmem:[#allocation3_spill] sm:$0xff] }
 0x256   : > { %v4468_v47 = vsel %vm3410_vm10, %v10340_v10, %v10339_v22  ;;  %10341 = vst [vmem:[#allocation14_spill] sm:$0xff] %v9305_v21  ;;  %v4195_v5 = vsel %vm3410_vm10, %v10072_v11, %v4193_v42  ;;  %v10343_v22 = vld [vmem:[#allocation8_spill] sm:$0xff]  ;;  %v10346_v11 = vld [vmem:[#allocation10_spill] sm:$0xff] }
 0x257   : > { %v4459_v46 = vsel %vm3410_vm10, %v10342_v28, %v4458_v56  ;;  %v4469_v43 = vsel %vm3413_vm11, %v4142_v8, %v4468_v47  ;;  %v4197_v36 = vsel %vm3413_vm11, %v10076_v41, %v4195_v5  ;;  %v10344_v10 = vrot.slane %v10343_v22, 3  ;;  %v6957_v8 = vld [vmem:[%s9945_s3 + $0xb0] sm:$0xff]  }
 0x258   : > { %v4470_v42 = vsel %vm3416_vm12, %v4144_v57, %v4469_v43  ;;  %v4391_v9 = vrot.slane %v10346_v11, %v10345_v25  ;;  %v4199_v56 = vsel %vm3416_vm12, %v10074_v37, %v4197_v36  ;;  %v10347_v47 = vrot.slane %v10274_v3, 2  ;;  %v10350_v11 = vld [vmem:[#allocation22_spill] sm:$0xff]  ;;  %v10353_v36 = vld [vmem:[#allocation5_spill] sm:$0xff]  ;;  %v10361_v37 = vld [vmem:[#allocation20_spill] sm:$0xff]  ;;  %6633 = vmatpush3.bf16.msra.mxu1 %v6957_v8 }
 0x259   : > { %v4461_v20 = vsel %vm3413_vm11, %v10344_v10, %v4459_v46  ;;  %v10348_v5 = vrot.slane %v8458_v34, 1  ;;  %v10351_v45 = vrot.slane %v10350_v11, 7  ;;  %v9349_v43 = vsel %vm3419_vm13, %v10075_v51, %v4199_v56  ;;  %6634 = vmatprep.subr.bf16.mxu1 %v10259_v49 }
 0x25a   : > { %v4462_v46 = vsel %vm3416_vm12, %v10347_v47, %v4461_v20  ;;  %10352 = vst [vmem:[#allocation25_spill] sm:$0xff] %v9349_v43  ;;  %v10354_v10 = vrot.slane %v10353_v36, 1  ;;  %v9356_v47 = vunpack.c.l.b16 %v4391_v9  ;;  %v10357_v56 = vrot.slane %v8427_v39, 5 }
 0x25b   : > { %v9339_v57 = vsel %vm3419_vm13, %v10348_v5, %v4470_v42  ;;  %v4473_v28 = vsel %vm3401_vm7, %v10351_v45, %v10281_v35  ;;  %v10356_v42 = vrot.slane %v8419_v52, 6  ;;  %v4485_v60 = vrot.slane %v10361_v37, 3 }
 0x25c   : > { %10349 = vst [vmem:[#allocation12_spill] sm:$0xff] %v9339_v57  ;;  %v9354_v20 = vsel %vm3419_vm13, %v10354_v10, %v4462_v46  ;;  %v10358_v46 = vrot.slane %v8568_v58, 7  ;;  %v10359_v10 = vrot.slane %v8421_v0, 4 }
 0x25d   : > { %10355 = vst [vmem:[#allocation2_spill] sm:$0xff] %v9354_v20  ;;  %v4474_v5 = vsel %vm3404_vm8, %v10356_v42, %v4473_v28  ;;  %v4479_v28 = vrot.slane %v9356_v47, 1  ;;  %v10360_v42 = vrot.slane %v8570_v48, 6  ;;  %v10363_v20 = vrot.slane %v8572_v53, 5 }
 0x25e   : > { %v4475_v51 = vsel %vm3407_vm9, %v10357_v56, %v4474_v5  ;;  %v4481_v9 = vsel %vm3401_vm7, %v10358_v46, %v8566_v13  ;;  %v6958_v5 = vld [vmem:[%s9945_s3 + $0xb8] sm:$0xff]   ;;  %v10362_v56 = vrot.slane %v8423_v54, 3 }
 0x25f   : > { %v4476_v41 = vsel %vm3410_vm10, %v10359_v10, %v4475_v51  ;;  %v4482_v45 = vsel %vm3404_vm8, %v10360_v42, %v4481_v9  ;;  %v10364_v10 = vld [vmem:[#allocation27_spill] sm:$0xff]  ;;  %v10365_v9 = vrot.slane %v8538_v59, 7  ;;  %v10366_v42 = vrot.slane %v10284_v16, 2  ;;  %6635 = vmatpush3.bf16.msra.mxu1 %v6958_v5 }
 0x260   : > { %v4477_v46 = vsel %vm3413_vm11, %v10362_v56, %v4476_v41  ;;  %v4483_v51 = vsel %vm3407_vm9, %v10363_v20, %v4482_v45  ;;  %v4447_v57 = vrot.slane %v10364_v10, %v10345_v25  ;;  %v10367_v41 = vrot.slane %v10288_v40, 4  ;;  %v10369_v25 = vld [vmem:[#allocation30_spill] sm:$0xff]  ;;  %6648 = vmatprep.subr.bf16.mxu1 %v10259_v49 }
 0x261   : > { %v4489_v8 = vsel %vm3401_vm7, %v10365_v9, %v8532_v63  ;;  %v4478_v21 = vsel %vm3416_vm12, %v10366_v42, %v4477_v46  ;;  %v10368_v20 = vrot.slane %v10297_v27, 6  ;;  %v10370_v10 = vrot.slane %v10369_v25, 7  ;;  %v10372_v46 = vld [vmem:[#allocation24_spill] sm:$0xff] }
 0x262   : > { %v4484_v56 = vsel %vm3410_vm10, %v10367_v41, %v4483_v51  ;;  %v9410_v9 = vsel %vm3419_vm13, %v4479_v28, %v4478_v21  ;;  %v9413_v18 = vunpack.c.l.b16 %v4447_v57  ;;  %v10373_v42 = vrot.slane %v10372_v46, 5  ;;  %v10377_v28 = vld [vmem:[#allocation13_spill] sm:$0xff] }
 0x263   : > { %v4490_v45 = vsel %vm3404_vm8, %v10368_v20, %v4489_v8  ;;  %v4498_v43 = vsel %vm3401_vm7, %v10370_v10, %v8694_v62  ;;  %10371 = vst [vmem:[#allocation23_spill] sm:$0xff] %v9410_v9  ;;  %v4486_v1 = vsel %vm3413_vm11, %v4485_v60, %v4484_v56  ;;  %v10374_v41 = vrot.slane %v8527_v4, 2 }
 0x264   : > { %v4492_v51 = vsel %vm3407_vm9, %v10373_v42, %v4490_v45  ;;  %v10375_v20 = vrot.slane %v8684_v33, 4  ;;  %v10376_v10 = vrot.slane %v8651_v17, 6  ;;  %v10378_v60 = vrot.slane %v8286_v12, 6 }
 0x265   : > { %v4487_v8 = vsel %vm3416_vm12, %v10374_v41, %v4486_v1  ;;  %v4684_v56 = vrot.slane %v8570_v48, 7  ;;  %v6959_v1 = vld [vmem:[%s9945_s3 + $0xc0] sm:$0xff]   ;;  %v10379_v45 = vrot.slane %v8536_v26, 1  ;;  %v10381_v12 = vrot.slane %v8659_v31, 5  ;;  %v10388_v48 = vld [vmem:[#allocation16_spill] sm:$0xff] }
 0x266   : > { %v4493_v19 = vsel %vm3410_vm10, %v10375_v20, %v4492_v51  ;;  %v4499_v21 = vsel %vm3404_vm8, %v10376_v10, %v4498_v43  ;;  %v4645_v57 = vsel %vm3407_vm9, %v10378_v60, %v10377_v28  ;;  %v10380_v51 = vrot.slane %v8688_v14, 3 }
 0x267   : > { %v9438_v42 = vsel %vm3419_vm13, %v10379_v45, %v4487_v8  ;;  %v4500_v41 = vsel %vm3407_vm9, %v10381_v12, %v4499_v21  ;;  %v10382_v5 = vrot.slane %v8686_v6, 2  ;;  %v10383_v8 = vrot.slane %v8649_v32, 4 }
 0x268   : > { %v4494_v43 = vsel %vm3413_vm11, %v10380_v51, %v4493_v19  ;;  %v10384_v28 = vrot.slane %v8289_v7, 5  ;;  %v10385_v60 = vrot.slane %v8653_v2, 3  ;;  %v4504_v45 = vrot.slane %v9413_v18, 1 }
 0x269   : > { %v4495_v20 = vsel %vm3416_vm12, %v10382_v5, %v4494_v43  ;;  %v4501_v10 = vsel %vm3410_vm10, %v10383_v8, %v4500_v41  ;;  %v10386_v51 = vrot.slane %v10343_v22, 4  ;;  %v4650_v43 = vrot.slane %v10274_v3, 3  ;;  %v10387_v5 = vld [vmem:[#allocation19_spill] sm:$0xff] }
 0x26a   : > { %v4647_v19 = vsel %vm3410_vm10, %v10384_v28, %v4645_v57  ;;  %v4502_v21 = vsel %vm3413_vm11, %v10385_v60, %v4501_v10  ;;  %v10389_v9 = vpack.c.b16 %v10387_v5, %v10388_v48  ;;  %v10390_v7 = vrot.slane %v8690_v44, 1  ;;  %v10392_v10 = vld [vmem:[#allocation6_spill] sm:$0xff] }
 0x26b   : > { %v4649_v12 = vsel %vm3413_vm11, %v10386_v51, %v4647_v19  ;;  %v10391_v41 = vrot.slane %v10336_v24, 2  ;;  %v10393_v22 = vrot.slane %v10323_v50, 5  ;;  %v4662_v3 = vrot.slane %v8462_v38, 4 }
 0x26c   : > { %6637 = vmatmul.mubr.bf16.vlgmr.msra.gmra.mrb[24].mxu1 %v10389_v9  ;;  %v9472_v57 = vsel %vm3419_vm13, %v10390_v7, %v4495_v20  ;;  %v6960_v9 = vld [vmem:[%s9945_s3 + $0xc8] sm:$0xff]   ;;  %v4651_v20 = vsel %vm3416_vm12, %v4650_v43, %v4649_v12  ;;  %v4652_v19 = vrot.slane %v10353_v36, 2  ;;  %v10394_v50 = vrot.slane %v10281_v35, 1 }
 0x26d   : > { %v4503_v8 = vsel %vm3416_vm12, %v10391_v41, %v4502_v21  ;;  %v4661_v28 = vsel %vm3410_vm10, %v10393_v22, %v10392_v10  ;;  %6649 = vmatpush3.bf16.msra.mxu1 %v6959_v1  ;;  %6640 = vmatprep.mubr.msk.bf16.mxu1 %vm7048_vm6, %v10259_v49  ;;  %v4666_v21 = vrot.slane %v8458_v34, 2  ;;  %v4710_v51 = vrot.slane %v8694_v62, 1  ;;  %v6961_v62 = vld [vmem:[%s9945_s3 + $0xd0] sm:$0xff]  }
 0x26e   : > { %v9488_v48 = vsel %vm3419_vm13, %v4504_v45, %v4503_v8  ;;  %v4669_v38 = vsel %vm3401_vm7, %v10350_v11, %v10394_v50  ;;  %6650 = vmatprep.subr.bf16.mxu1 %v10259_v49  ;;  %v4663_v60 = vsel %vm3413_vm11, %v4662_v3, %v4661_v28  ;;  %v4670_v45 = vrot.slane %v8419_v52, 7 }
 0x26f   : > { %v4508_v1 = vpack.c.b16 %v9488_v48, %v9472_v57  ;;  %v9504_v36 = vsel %vm3419_vm13, %v4652_v19, %v4651_v20  ;;  %v10395_v35 = vrot.slane %v8455_v61, 3  ;;  %v4672_v12 = vrot.slane %v8427_v39, 6  ;;  %v6982_v57 = vld [vmem:[%s9945_s3 + $0x178] sm:$0xff]  }
 0x270   : > { %v4671_v5 = vsel %vm3404_vm8, %v4670_v45, %v4669_v38  ;;  %v4674_v34 = vrot.slane %v8421_v0, 5  ;;  %v4676_v52 = vrot.slane %v8423_v54, 4  ;;  %v4678_v39 = vrot.slane %v10284_v16, 3 }
 0x271   : > { %v4665_v11 = vsel %vm3416_vm12, %v10395_v35, %v4663_v60  ;;  %6651 = vmatpush3.bf16.msra.mxu1 %v6960_v9  ;;  %v4673_v7 = vsel %vm3407_vm9, %v4672_v12, %v4671_v5  ;;  %v4682_v41 = vrot.slane %v8566_v13, 1  ;;  %v4680_v54 = vrot.slane %v9356_v47, 2 }
 0x272   : > { %v9511_v43 = vsel %vm3419_vm13, %v4666_v21, %v4665_v11  ;;  %6652 = vmatprep.subr.bf16.mxu1 %v10259_v49  ;;  %v4675_v0 = vsel %vm3410_vm10, %v4674_v34, %v4673_v7  ;;  %v4686_v8 = vrot.slane %v8572_v53, 6  ;;  %v4688_v10 = vrot.slane %v10288_v40, 5  ;;  %v6966_v7 = vld [vmem:[%s9945_s3 + $0xf8] sm:$0xff]  }
 0x273   : > { %v4724_v61 = vpack.c.b16 %v9511_v43, %v9504_v36  ;;  %v4677_v22 = vsel %vm3413_vm11, %v4676_v52, %v4675_v0  ;;  %v4683_v28 = vsel %vm3401_vm7, %v8568_v58, %v4682_v41  ;;  %v4690_v3 = vrot.slane %v10361_v37, 4  ;;  %v6962_v58 = vld [vmem:[%s9945_s3 + $0xd8] sm:$0xff]   ;;  %v10400_v41 = vld [vmem:[#allocation26_spill] sm:$0xff] }
 0x274   : > { %v4696_v16 = vrot.slane %v8532_v63, 1  ;;  %v10396_v13 = vpack.c.b16 %v9087_v23, %v9061_v15  ;;  %v4679_v9 = vsel %vm3416_vm12, %v4678_v39, %v4677_v22  ;;  %v4685_v47 = vsel %vm3404_vm8, %v4684_v56, %v4683_v28  ;;  %v6967_v39 = vld [vmem:[%s9945_s3 + $0x100] sm:$0xff]   ;;  %v6970_v28 = vld [vmem:[%s9945_s3 + $0x118] sm:$0xff]  }
 0x275   : > { %v4692_v53 = vrot.slane %v8527_v4, 3  ;;  %v4702_v40 = vrot.slane %v8684_v33, 5  ;;  %6653 = vmatpush3.bf16.msra.mxu1 %v6961_v62  ;;  %v9547_v63 = vsel %vm3419_vm13, %v4680_v54, %v4679_v9  ;;  %v4687_v15 = vsel %vm3407_vm9, %v4686_v8, %v4685_v47  ;;  %v6968_v54 = vld [vmem:[%s9945_s3 + $0x108] sm:$0xff]   ;;  %v6969_v8 = vld [vmem:[%s9945_s3 + $0x110] sm:$0xff]  }
 0x276   : > { %6641 = vmatmul.mubr.bf16.gmra.mrb[28].mxu1 %v10396_v13  ;;  %v4697_v23 = vsel %vm3401_vm7, %v8538_v59, %v4696_v16  ;;  %v4704_v4 = vrot.slane %v8688_v14, 4  ;;  %6654 = vmatprep.subr.bf16.mxu1 %v10259_v49  ;;  %v4689_v33 = vsel %vm3410_vm10, %v4688_v10, %v4687_v15  ;;  %v4694_v37 = vrot.slane %v8536_v26, 2  ;;  %v10402_v10 = vld [vmem:[#allocation21_spill] sm:$0xff]  ;;  %v10406_v13 = vld [vmem:[#allocation14_spill] sm:$0xff]  ;;  %v6972_v47 = vld [vmem:[%s9945_s3 + $0x128] sm:$0xff]  }
 0x277   : > { %6644 = vmatprep.mubr.msk.bf16.mxu1 %vm7048_vm6, %v10259_v49  ;;  %v10397_v56 = vrot.slane %v10297_v27, 7  ;;  %v4711_v19 = vsel %vm3401_vm7, %v10369_v25, %v4710_v51  ;;  %v4691_v50 = vsel %vm3413_vm11, %v4690_v3, %v4689_v33  ;;  %v10398_v38 = vrot.slane %v10372_v46, 6  ;;  %v6963_v25 = vld [vmem:[%s9945_s3 + $0xe0] sm:$0xff]   ;;  %v10405_v16 = vld [vmem:[#allocation25_spill] sm:$0xff]  ;;  %v10408_v15 = vld [vmem:[#allocation12_spill] sm:$0xff] }
 0x278   : > { %v4712_v14 = vrot.slane %v8651_v17, 7  ;;  %v4714_v60 = vrot.slane %v8659_v31, 6  ;;  %v4693_v21 = vsel %vm3416_vm12, %v4692_v53, %v4691_v50  ;;  %v4706_v27 = vrot.slane %v8686_v6, 3  ;;  %v6971_v3 = vld [vmem:[%s9945_s3 + $0x120] sm:$0xff]   ;;  %v6973_v53 = vld [vmem:[%s9945_s3 + $0x130] sm:$0xff]   ;;  %v6976_v33 = vld [vmem:[%s9945_s3 + $0x148] sm:$0xff]  }
 0x279   : > { %v4699_v20 = vsel %vm3404_vm8, %v10397_v56, %v4697_v23  ;;  %6655 = vmatpush3.bf16.msra.mxu1 %v6962_v58  ;;  %v9574_v45 = vsel %vm3419_vm13, %v4694_v37, %v4693_v21  ;;  %v4716_v31 = vrot.slane %v8649_v32, 5  ;;  %v4718_v35 = vrot.slane %v8653_v2, 4  ;;  %v6964_v2 = vld [vmem:[%s9945_s3 + $0xe8] sm:$0xff]   ;;  %v6975_v58 = vld [vmem:[%s9945_s3 + $0x140] sm:$0xff]   ;;  %v6977_v37 = vld [vmem:[%s9945_s3 + $0x150] sm:$0xff]  }
 0x27a   : > { %v4701_v59 = vsel %vm3407_vm9, %v10398_v38, %v4699_v20  ;;  %v4713_v17 = vsel %vm3404_vm8, %v4712_v14, %v4711_v19  ;;  %6656 = vmatprep.subr.bf16.mxu1 %v10259_v49  ;;  %v4725_v51 = vpack.c.b16 %v9574_v45, %v9547_v63  ;;  %v4720_v5 = vrot.slane %v10336_v24, 3  ;;  %v10409_v23 = vld [vmem:[#allocation2_spill] sm:$0xff]  ;;  %v10411_v56 = vld [vmem:[#allocation23_spill] sm:$0xff]  ;;  %v6978_v19 = vld [vmem:[%s9945_s3 + $0x158] sm:$0xff]  }
 0x27b   : > { %v4703_v26 = vsel %vm3410_vm10, %v4702_v40, %v4701_v59  ;;  %v4715_v6 = vsel %vm3407_vm9, %v4714_v60, %v4713_v17  ;;  %v10399_v34 = vpack.c.b16 %v9138_v30, %v9109_v55  ;;  %v4708_v32 = vrot.slane %v8690_v44, 2  ;;  %v6974_v40 = vld [vmem:[%s9945_s3 + $0x138] sm:$0xff]   ;;  %v6979_v50 = vld [vmem:[%s9945_s3 + $0x160] sm:$0xff]   ;;  %v6981_v38 = vld [vmem:[%s9945_s3 + $0x170] sm:$0xff]  }
 0x27c   : > { %v4705_v46 = vsel %vm3413_vm11, %v4704_v4, %v4703_v26  ;;  %v4717_v12 = vsel %vm3410_vm10, %v4716_v31, %v4715_v6  ;;  %v4722_v62 = vrot.slane %v9413_v18, 2  ;;  %v6965_v18 = vld [vmem:[%s9945_s3 + $0xf0] sm:$0xff]   ;;  %v10401_v0 = vpack.c.b16 %v9176_v29, %v10400_v41 }
 0x27d   : > { %v4707_v11 = vsel %vm3416_vm12, %v4706_v27, %v4705_v46  ;;  %v4719_v52 = vsel %vm3413_vm11, %v4718_v35, %v4717_v12  ;;  %6657 = vmatpush3.bf16.msra.mxu1 %v6963_v25  ;;  %v10403_v29 = vld [vmem:[#allocation28_spill] sm:$0xff]  ;;  %v10407_v9 = vpack.c.b16 %v10405_v16, %v10406_v13  ;;  %v10410_v4 = vpack.c.b16 %v10408_v15, %v10409_v23  ;;  %v6985_v15 = vld [vmem:[%s9947_s5] sm:$0xff]   ;;  %v6987_v23 = vld [vmem:[%s9947_s5 + $0x48] sm:$0xff]  }
 0x27e   : > { %6645 = vmatmul.mubr.bf16.gmra.mrb[32].mxu1 %v10399_v34  ;;  %v4721_v24 = vsel %vm3416_vm12, %v4720_v5, %v4719_v52  ;;  %6658 = vmatprep.subr.bf16.mxu1 %v10259_v49  ;;  %v9601_v55 = vsel %vm3419_vm13, %v4708_v32, %v4707_v11  ;;  %v10404_v22 = vpack.c.b16 %v10402_v10, %v10403_v29 }
 0x27f   : > { %6664 = vmatprep.mubr.msk.bf16.mxu1 %vm7048_vm6, %v10259_v49  ;;  %v9604_v44 = vsel %vm3419_vm13, %v4722_v62, %v4721_v24  ;;  %v10412_v20 = vpack.c.b16 %v9438_v42, %v10411_v56  ;;  %v6980_v42 = vld [vmem:[%s9945_s3 + $0x168] sm:$0xff]   ;;  %v6989_v56 = vld [vmem:[%s9947_s5 + $0x90] sm:$0xff]  }
 0x280   : > { %v4726_v30 = vpack.c.b16 %v9604_v44, %v9601_v55 }
 0x281   : > { %6659 = vmatpush3.bf16.msra.mxu1 %v6964_v2 }
 0x282   : > { %6660 = vmatprep.subr.bf16.mxu1 %v10259_v49 }
 0x285   : > { %6661 = vmatpush3.bf16.msra.mxu1 %v6965_v18 }
 0x286   : > { %6662 = vmatprep.subr.bf16.mxu1 %v10259_v49 }
 0x289   : > { %6663 = vmatpush3.bf16.msra.mxu1 %v6966_v7 }
 0x28a   : > { %6676 = vmatprep.subr.bf16.mxu1 %v10259_v49 }
 0x28c   : > { %6665 = vmatmul.mubr.bf16.vlgmr.msra.gmra.mrb[36].mxu1 %v10401_v0 }
 0x28d   : > { %6677 = vmatpush3.bf16.msra.mxu1 %v6967_v39  ;;  %6668 = vmatprep.mubr.msk.bf16.mxu1 %vm7048_vm6, %v10259_v49 }
 0x28e   : > { %6678 = vmatprep.subr.bf16.mxu1 %v10259_v49 }
 0x291   : > { %6679 = vmatpush3.bf16.msra.mxu1 %v6968_v54 }
 0x292   : > { %6680 = vmatprep.subr.bf16.mxu1 %v10259_v49 }
 0x294   : > { %6669 = vmatmul.mubr.bf16.gmra.mrb[40].mxu1 %v10404_v22 }
 0x295   : > { %6681 = vmatpush3.bf16.msra.mxu1 %v6969_v8  ;;  %6672 = vmatprep.mubr.msk.bf16.mxu1 %vm7048_vm6, %v10259_v49 }
 0x296   : > { %6682 = vmatprep.subr.bf16.mxu1 %v10259_v49 }
 0x299   : > { %6683 = vmatpush3.bf16.msra.mxu1 %v6970_v28  ;;  %v7050_v28 = vmov 0  }
 0x29a   : > { %6684 = vmatprep.subr.bf16.mxu1 %v10259_v49 }
 0x29c   : > { %6673 = vmatmul.mubr.bf16.gmra.mrb[44].mxu1 %v10407_v9 }
 0x29d   : > { %6685 = vmatpush3.bf16.msra.mxu1 %v6971_v3  ;;  %6692 = vmatprep.mubr.msk.bf16.mxu1 %vm7048_vm6, %v10259_v49 }
 0x29e   : > { %6686 = vmatprep.subr.bf16.mxu1 %v10259_v49 }
 0x2a1   : > { %6687 = vmatpush3.bf16.msra.mxu1 %v6972_v47 }
 0x2a2   : > { %6688 = vmatprep.subr.bf16.mxu1 %v10259_v49 }
 0x2a5   : > { %6689 = vmatpush3.bf16.msra.mxu1 %v6973_v53 }
 0x2a6   : > { %6690 = vmatprep.subr.bf16.mxu1 %v10259_v49 }
 0x2a9   : > { %6691 = vmatpush3.bf16.msra.mxu1 %v6974_v40  ;;  %v6983_v40 = vld [vmem:[%s9947_s5 + $0x80] sm:$0xff]  }
 0x2aa   : > { %6704 = vmatprep.subr.bf16.mxu1 %v10259_v49 }
 0x2ac   : > { %6693 = vmatmul.mubr.bf16.vlgmr.msra.gmra.mrb[48].mxu1 %v10410_v4  ;;  %v6986_v4 = vld [vmem:[%s9947_s5 + $0x88] sm:$0xff]  }
 0x2ad   : > { %6705 = vmatpush3.bf16.msra.mxu1 %v6975_v58  ;;  %6696 = vmatprep.mubr.msk.bf16.mxu1 %vm7048_vm6, %v10259_v49  ;;  %v6984_v58 = vld [vmem:[%s9947_s5 + $0x40] sm:$0xff]  }
 0x2ae   : > { %6706 = vmatprep.subr.bf16.mxu1 %v10259_v49  ;;  %6332 = vmatprep.subr.bf16.mxu0 %v6984_v58  ;;  %v10413_v58 = vld [vmem:[#allocation4_spill] sm:$0xff] }
 0x2af   : > { %6333 = vmatpush3.bf16.msra.mxu0 %v6985_v15 }
 0x2b0   : > { %6334 = vmatprep.subr.bf16.mxu0 %v6987_v23 }
 0x2b1   : > { %6707 = vmatpush3.bf16.msra.mxu1 %v6976_v33  ;;  %v6988_v33 = vld [vmem:[%s9947_s5 + $0x8] sm:$0xff]  }
 0x2b2   : > { %6708 = vmatprep.subr.bf16.mxu1 %v10259_v49 }
 0x2b3   : > { %6335 = vmatpush3.bf16.msra.mxu0 %v6988_v33 }
 0x2b4   : > { %6697 = vmatmul.mubr.bf16.gmra.mrb[52].mxu1 %v10412_v20  ;;  %v6991_v20 = vld [vmem:[%s9947_s5 + $0x10] sm:$0xff]  }
 0x2b5   : > { %6709 = vmatpush3.bf16.msra.mxu1 %v6977_v37  ;;  %6700 = vmatprep.mubr.msk.bf16.mxu1 %vm7048_vm6, %v10259_v49  ;;  %v6990_v37 = vld [vmem:[%s9947_s5 + $0x50] sm:$0xff]  }
 0x2b6   : > { %6710 = vmatprep.subr.bf16.mxu1 %v10259_v49  ;;  %6336 = vmatprep.subr.bf16.mxu0 %v6990_v37 }
 0x2b7   : > { %6337 = vmatpush3.bf16.msra.mxu0 %v6991_v20 }
 0x2b9   : > { %6711 = vmatpush3.bf16.msra.mxu1 %v6978_v19  ;;  %v6993_v19 = vld [vmem:[%s9947_s5 + $0x58] sm:$0xff]  }
 0x2ba   : > { %6712 = vmatprep.subr.bf16.mxu1 %v10259_v49  ;;  %6338 = vmatprep.subr.bf16.mxu0 %v6993_v19 }
 0x2bc   : > { %6701 = vmatmul.mubr.bf16.gmra.mrb[56].mxu1 %v4508_v1 }
 0x2bd   : > { %6713 = vmatpush3.bf16.msra.mxu1 %v6979_v50  ;;  %6720 = vmatprep.mubr.msk.bf16.mxu1 %vm7048_vm6, %v10259_v49  ;;  %v6992_v50 = vld [vmem:[%s9947_s5 + $0x98] sm:$0xff]  }
 0x2be   : > { %6714 = vmatprep.subr.bf16.mxu1 %v10259_v49 }
 0x2c1   : > { %6715 = vmatpush3.bf16.msra.mxu1 %v6980_v42  ;;  %v6994_v42 = vld [vmem:[%s9947_s5 + $0x18] sm:$0xff]  }
 0x2c2   : > { %6716 = vmatprep.subr.bf16.mxu1 %v10259_v49  ;;  %6339 = vmatpush3.bf16.msra.mxu0 %v6994_v42 }
 0x2c5   : > { %6717 = vmatpush3.bf16.msra.mxu1 %v6981_v38 }
 0x2c6   : > { %6718 = vmatprep.subr.bf16.mxu1 %v10259_v49 }
 0x2c9   : > { %6719 = vmatpush3.bf16.msra.mxu1 %v6982_v57  ;;  %v6996_v57 = vld [vmem:[%s9947_s5 + $0x60] sm:$0xff]  }
 0x2ca   : > { %5461 = vmatprep.subr.bf16.mxu1 %v7050_v28  ;;  %6340 = vmatprep.subr.bf16.mxu0 %v6996_v57 }
 0x2cc   : > { %6721 = vmatmul.mubr.bf16.vlgmr.msra.gmra.mrb[60].mxu1 %v4724_v61 }
 0x2cd   : > { %6724 = vmatprep.mubr.msk.bf16.mxu1 %vm7048_vm6, %v10259_v49  ;;  %5462 = vmatpush1.bf16.msra.mxu1 %v6983_v40 }
 0x2ce   : > { %5463 = vmatprep.subr.bf16.mxu1 %v7050_v28 }
 0x2d1   : > { %5464 = vmatpush1.bf16.msra.mxu1 %v6986_v4 }
 0x2d2   : > { %5465 = vmatprep.subr.bf16.mxu1 %v7050_v28 }
 0x2d4   : > { %6725 = vmatmul.mubr.bf16.gmra.mrb[64].mxu1 %v4725_v51 }
 0x2d5   : > { %6728 = vmatprep.mubr.msk.bf16.mxu1 %vm7048_vm6, %v10259_v49  ;;  %5466 = vmatpush1.bf16.msra.mxu1 %v6989_v56 }
 0x2d6   : > { %5467 = vmatprep.subr.bf16.mxu1 %v7050_v28 }
 0x2d9   : > { %5468 = vmatpush1.bf16.msra.mxu1 %v6992_v50 }
 0x2da   : > { %5469 = vmatprep.subr.bf16.mxu1 %v7050_v28 }
 0x2dc   : > { %6729 = vmatmul.mubr.bf16.gmra.mrb[68].mxu1 %v4726_v30 }
 0x2e6   : > { %v3579_v48 = vpop.f32.mrb[0].mxu1 }
 0x2e7   : > { %v6582_v1 = vpop.f32.mrb[1].mxu1 }
 0x2e8   : > { %v3582_v59 = vpop.f32.mrb[2].mxu1 }
 0x2e9   : > { %v6583_v14 = vpop.f32.mrb[3].mxu1 }
 0x2ea   : > { %v6995_v14 = vld [vmem:[%s9947_s5 + $0xa0] sm:$0xff]  }
 0x2eb   : > { %5470 = vmatpush1.bf16.msra.mxu1 %v6995_v14 }
 0x2ec   : > { %5471 = vmatprep.subr.bf16.mxu1 %v7050_v28 }
 0x2f3   : > { %v3587_v36 = vpop.f32.mrb[4].mxu1 }
 0x2f4   : > { %v6586_v43 = vpop.f32.mrb[5].mxu1 }
 0x2f5   : > { %v3590_v61 = vpop.f32.mrb[6].mxu1 }
 0x2f6   : > { %v6587_v60 = vpop.f32.mrb[7].mxu1 }
 0x2f7   : > { %v6999_v60 = vld [vmem:[%s9947_s5 + $0x68] sm:$0xff]  }
 0x2fb   : > { %v3595_v21 = vpop.f32.mrb[8].mxu1 }
 0x2fc   : > { %v6590_v26 = vpop.f32.mrb[9].mxu1 }
 0x2fd   : > { %v3598_v27 = vpop.f32.mrb[10].mxu1  ;;  %v7000_v26 = vld [vmem:[%s9947_s5 + $0x28] sm:$0xff]  }
 0x2fe   : > { %v6591_v63 = vpop.f32.mrb[11].mxu1 }
 0x2ff   : > { %v7002_v63 = vld [vmem:[%s9947_s5 + $0x70] sm:$0xff]  }
 0x310   : > { %v3774_v25 = vpop.f32.mrb[12].mxu1 }
 0x311   : > { %v3775_v45 = vadd.f32 %v3774_v25, %v3579_v48  ;;  %v6610_v46 = vpop.f32.mrb[13].mxu1 }
 0x312   : > { %v3777_v17 = vpop.f32.mrb[14].mxu1 }
 0x313   : > { %v3778_v31 = vadd.f32 %v3777_v17, %v3582_v59  ;;  %v6611_v51 = vpop.f32.mrb[15].mxu1  ;;  %v7001_v17 = vld [vmem:[%s9947_s5 + $0xb0] sm:$0xff]  }
 0x31c   : > { %v3782_v6 = vpop.f32.mrb[16].mxu1 }
 0x31d   : > { %v3783_v35 = vadd.f32 %v3782_v6, %v3587_v36  ;;  %v6614_v11 = vpop.f32.mrb[17].mxu1 }
 0x31e   : > { %v3785_v12 = vpop.f32.mrb[18].mxu1 }
 0x31f   : > { %v3786_v5 = vadd.f32 %v3785_v12, %v3590_v61  ;;  %v6615_v34 = vpop.f32.mrb[19].mxu1  ;;  %v6997_v61 = vld [vmem:[%s9947_s5 + $0x20] sm:$0xff]  }
 0x320   : > { %6341 = vmatpush3.bf16.msra.mxu0 %v6997_v61 }
 0x321   : > { %6342 = vmatprep.subr.bf16.mxu0 %v6999_v60 }
 0x324   : > { %6343 = vmatpush3.bf16.msra.mxu0 %v7000_v26 }
 0x325   : > { %v3790_v32 = vpop.f32.mrb[20].mxu1  ;;  %6344 = vmatprep.subr.bf16.mxu0 %v7002_v63 }
 0x326   : > { %v3791_v52 = vadd.f32 %v3790_v32, %v3595_v21  ;;  %v6618_v62 = vpop.f32.mrb[21].mxu1  ;;  %v6998_v21 = vld [vmem:[%s9947_s5 + $0xa8] sm:$0xff]  }
 0x327   : > { %v3793_v2 = vpop.f32.mrb[22].mxu1  ;;  %5472 = vmatpush1.bf16.msra.mxu1 %v6998_v21 }
 0x328   : > { %v3794_v24 = vadd.f32 %v3793_v2, %v3598_v27  ;;  %v6619_v55 = vpop.f32.mrb[23].mxu1  ;;  %5473 = vmatprep.subr.bf16.mxu1 %v7050_v28 }
 0x32b   : > { %5474 = vmatpush1.bf16.msra.mxu1 %v7001_v17 }
 0x32c   : > { %5475 = vmatprep.subr.bf16.mxu1 %v7050_v28 }
 0x33f   : > { %v4072_v44 = vpop.f32.mrb[24].mxu1 }
 0x340   : > { %v4095_v30 = vadd.f32 %v4072_v44, %v3775_v45  ;;  %v6638_v18 = vpop.f32.mrb[25].mxu1 }
 0x341   : > { %v4075_v7 = vpop.f32.mrb[26].mxu1 }
 0x342   : > { %v4096_v39 = vadd.f32 %v4075_v7, %v3778_v31  ;;  %v6639_v41 = vpop.f32.mrb[27].mxu1 }
 0x349   : > { %v4080_v0 = vpop.f32.mrb[28].mxu1 }
 0x34a   : > { %v4097_v54 = vadd.f32 %v4080_v0, %v3783_v35  ;;  %v6642_v8 = vpop.f32.mrb[29].mxu1 }
 0x34b   : > { %v4083_v10 = vpop.f32.mrb[30].mxu1 }
 0x34c   : > { %v4098_v29 = vadd.f32 %v4083_v10, %v3786_v5  ;;  %v6643_v22 = vpop.f32.mrb[31].mxu1 }
 0x351   : > { %v4088_v3 = vpop.f32.mrb[32].mxu1 }
 0x352   : > { %v9724_v16 = vadd.f32 %v4088_v3, %v3791_v52  ;;  %v6646_v13 = vpop.f32.mrb[33].mxu1  ;;  %v7051_v3 = vmov 1983009808  }
 0x353   : > { %v4091_v9 = vpop.f32.mrb[34].mxu1 }
 0x354   : > { %v9726_v47 = vadd.f32 %v4091_v9, %v3794_v24  ;;  %v6647_v53 = vpop.f32.mrb[35].mxu1 }
 0x35f   : > { %v4290_v38 = vpop.f32.mrb[36].mxu1 }
 0x360   : > { %v4313_v48 = vadd.f32 %v4290_v38, %v4095_v30  ;;  %v6666_v1 = vpop.f32.mrb[37].mxu1 }
 0x361   : > { %v4293_v59 = vpop.f32.mrb[38].mxu1 }
 0x362   : > { %v4314_v36 = vadd.f32 %v4293_v59, %v4096_v39  ;;  %v6667_v43 = vpop.f32.mrb[39].mxu1 }
 0x367   : > { %v4298_v27 = vpop.f32.mrb[40].mxu1 }
 0x368   : > { %v4315_v25 = vadd.f32 %v4298_v27, %v4097_v54  ;;  %v6670_v45 = vpop.f32.mrb[41].mxu1 }
 0x369   : > { %v4301_v46 = vpop.f32.mrb[42].mxu1 }
 0x36a   : > { %v4316_v31 = vadd.f32 %v4301_v46, %v4098_v29  ;;  %v6671_v51 = vpop.f32.mrb[43].mxu1 }
 0x36f   : > { %v4306_v6 = vpop.f32.mrb[44].mxu1 }
 0x370   : > { %v4317_v35 = vadd.f32 %v4306_v6, %v9724_v16  ;;  %v6674_v11 = vpop.f32.mrb[45].mxu1  ;;  %v4862_v16 = vunpack.c.l.s4 %v7051_v3 }
 0x371   : > { %v4309_v12 = vpop.f32.mrb[46].mxu1 }
 0x372   : > { %v4318_v5 = vadd.f32 %v4309_v12, %v9726_v47  ;;  %v6675_v34 = vpop.f32.mrb[47].mxu1  ;;  %v4863_v13 = vunpack.c.0.s8 %v4862_v16  ;;  %v6118_v47 = vld [vmem:[%s9946_s4] ss:$0 sm:$0xff] }
 0x374   : > { %v9801_v15 = vsub.s32 %v4863_v13, %v10413_v58 }
 0x37f   : > { %v4594_v32 = vpop.f32.mrb[48].mxu1 }
 0x380   : > { %v4617_v52 = vadd.f32 %v4594_v32, %v4313_v48  ;;  %v6694_v62 = vpop.f32.mrb[49].mxu1 }
 0x381   : > { %v4597_v2 = vpop.f32.mrb[50].mxu1 }
 0x382   : > { %v4618_v24 = vadd.f32 %v4597_v2, %v4314_v36  ;;  %v6695_v55 = vpop.f32.mrb[51].mxu1 }
 0x387   : > { %v4602_v44 = vpop.f32.mrb[52].mxu1 }
 0x388   : > { %v4619_v30 = vadd.f32 %v4602_v44, %v4315_v25  ;;  %v6698_v18 = vpop.f32.mrb[53].mxu1 }
 0x389   : > { %v4605_v7 = vpop.f32.mrb[54].mxu1 }
 0x38a   : > { %v4620_v39 = vadd.f32 %v4605_v7, %v4316_v31  ;;  %v6699_v41 = vpop.f32.mrb[55].mxu1 }
 0x38f   : > { %v4610_v0 = vpop.f32.mrb[56].mxu1 }
 0x390   : > { %v4621_v54 = vadd.f32 %v4610_v0, %v4317_v35  ;;  %v6702_v8 = vpop.f32.mrb[57].mxu1 }
 0x391   : > { %v4613_v10 = vpop.f32.mrb[58].mxu1 }
 0x392   : > { %v4622_v29 = vadd.f32 %v4613_v10, %v4318_v5  ;;  %v6703_v22 = vpop.f32.mrb[59].mxu1 }
 0x39f   : > { %v4812_v9 = vpop.f32.mrb[60].mxu1 }
 0x3a0   : > { %v4835_v53 = vadd.f32 %v4812_v9, %v4617_v52  ;;  %v6722_v40 = vpop.f32.mrb[61].mxu1 }
 0x3a1   : > { %v4815_v23 = vpop.f32.mrb[62].mxu1 }
 0x3a2   : > { %v4848_v4 = vadd.f32 %v6118_v47, %v4835_v53  ;;  %v4836_v33 = vadd.f32 %v4815_v23, %v4618_v24  ;;  %v6723_v37 = vpop.f32.mrb[63].mxu1 }
 0x3a4   : > { %v4860_v56 = vcombine.high %v4848_v4, %v4848_v4  ;;  %v4849_v20 = vadd.f32 %v6118_v47, %v4836_v33  ;;  %v4867_v19 = vrot.slane %v4848_v4, %v9801_v15 }
 0x3a6   : > { %v4874_v50 = vrot.slane %v4860_v56, %v9801_v15  ;;  %v4877_v42 = vcombine.high %v4849_v20, %v4849_v20  ;;  %v4884_v38 = vrot.slane %v4849_v20, %v9801_v15  ;;  %v4875_v14 = vcombine.high %v4867_v19, %v4867_v19 }
 0x3a7   : > { %v4820_v57 = vpop.f32.mrb[64].mxu1 }
 0x3a8   : > { %v4876_v48 = vcombine.high %v4874_v50, %v4874_v50  ;;  %v4891_v1 = vrot.slane %v4877_v42, %v9801_v15  ;;  %v6726_v59 = vpop.f32.mrb[65].mxu1  ;;  %v4892_v36 = vcombine.high %v4884_v38, %v4884_v38  ;;  %v4837_v43 = vadd.f32 %v4820_v57, %v4619_v30 }
 0x3a9   : > { %v4823_v61 = vpop.f32.mrb[66].mxu1  ;;  %v4962_v31 = vcombine.low %v4867_v19, %v4875_v14  ;;  %v4976_v18 = vrot.slane %v4874_v50, %v9801_v15  ;;  %v7052_v59 = vmov 1934713408  }
 0x3aa   : > { %v4893_v60 = vcombine.high %v4891_v1, %v4891_v1  ;;  %v4978_v21 = vcombine.low %v4876_v48, %v4884_v38  ;;  %v4838_v26 = vadd.f32 %v4823_v61, %v4620_v39  ;;  %v6727_v27 = vpop.f32.mrb[67].mxu1  ;;  %v4850_v63 = vadd.f32 %v6118_v47, %v4837_v43 }
 0x3ab   : > { %v4992_v45 = vrot.slane %v4892_v36, %v9801_v15  ;;  %v4969_v55 = vrot.slane %v4962_v31, %v9801_v15  ;;  %v5125_v14 = vunpack.c.l.s4 %v7052_v59  ;;  %v7015_v59 = vld [vmem:[%s9949_s7 + $0x38] sm:$0xff]  }
 0x3ac   : > { %v4985_v25 = vrot.slane %v4978_v21, %v9801_v15  ;;  %v4994_v46 = vcombine.low %v4891_v1, %v4893_v60  ;;  %v4851_v17 = vadd.f32 %v6118_v47, %v4838_v26  ;;  %v4901_v51 = vrot.slane %v4850_v63, %v9801_v15 }
 0x3ad   : > { %v4894_v5 = vcombine.high %v4850_v63, %v4850_v63  ;;  %v4977_v9 = vcombine.low %v4969_v55, %v4976_v18  ;;  %v7006_v55 = vld [vmem:[%s9947_s5 + $0x38] sm:$0xff]  }
 0x3ae   : > { %v9810_v6 = vcombine.low %v4985_v25, %v4992_v45  ;;  %v5001_v35 = vrot.slane %v4994_v46, %v9801_v15  ;;  %v4911_v11 = vcombine.high %v4851_v17, %v4851_v17  ;;  %v4918_v12 = vrot.slane %v4851_v17, %v9801_v15 }
 0x3af   : > { %v5008_v34 = vrot.slane %v4901_v51, %v9801_v15  ;;  %v4828_v32 = vpop.f32.mrb[68].mxu1  ;;  %v4908_v0 = vrot.slane %v4894_v5, %v9801_v15  ;;  %v4909_v8 = vcombine.high %v4901_v51, %v4901_v51  ;;  %v5126_v46 = vunpack.c.0.s8 %v5125_v14  ;;  %v7018_v14 = vld [vmem:[%s9951_s9 + $0x10] sm:$0xff]  }
 0x3b0   : > { %v4925_v52 = vrot.slane %v4911_v11, %v9801_v15  ;;  %v4926_v62 = vcombine.high %v4918_v12, %v4918_v12  ;;  %v4839_v2 = vadd.f32 %v4828_v32, %v4621_v54  ;;  %v6730_v24 = vpop.f32.mrb[69].mxu1 }
 0x3b1   : > { %v5009_v44 = vcombine.low %v5001_v35, %v5008_v34  ;;  %v4831_v30 = vpop.f32.mrb[70].mxu1  ;;  %v4910_v37 = vcombine.high %v4908_v0, %v4908_v0  ;;  %v5010_v56 = vcombine.low %v4909_v8, %v4908_v0  ;;  %v7003_v35 = vld [vmem:[%s9947_s5 + $0x30] sm:$0xff]   ;;  %v5129_v32 = vsub.s32 %v5126_v46, %v10413_v58 }
 0x3b2   : > { %v5026_v7 = vcombine.low %v4918_v12, %v4926_v62  ;;  %v4852_v39 = vadd.f32 %v6118_v47, %v4839_v2  ;;  %v6731_v41 = vpop.f32.mrb[71].mxu1  ;;  %v5040_v10 = vrot.slane %v4925_v52, %v9801_v15  ;;  %v4840_v22 = vadd.f32 %v4831_v30, %v4622_v29  ;;  %v7005_v12 = vld [vmem:[%s9947_s5 + $0x78] sm:$0xff]   ;;  %6345 = vmatpush3.bf16.msra.mxu0 %v7003_v35 }
 0x3b3   : > { %v4927_v16 = vcombine.high %v4925_v52, %v4925_v52  ;;  %v5017_v36 = vrot.slane %v5010_v56, %v9801_v15  ;;  %v5024_v43 = vrot.slane %v4910_v37, %v9801_v15  ;;  %6346 = vmatprep.subr.bf16.mxu0 %v7005_v12  ;;  %v7022_v12 = vld [vmem:[%s9951_s9 + $0x30] sm:$0xff]  }
 0x3b4   : > { %v5033_v3 = vrot.slane %v5026_v7, %v9801_v15  ;;  %v4928_v54 = vcombine.high %v4852_v39, %v4852_v39  ;;  %v4935_v13 = vrot.slane %v4852_v39, %v9801_v15  ;;  %v4853_v53 = vadd.f32 %v6118_v47, %v4840_v22 }
 0x3b5   : > { %v5025_v17 = vcombine.low %v5017_v36, %v5024_v43  ;;  %v7019_v36 = vld [vmem:[%s9951_s9 + $0x18] sm:$0xff]   ;;  %v7020_v43 = vld [vmem:[%s9951_s9 + $0x20] sm:$0xff]  }
 0x3b6   : > { %v5041_v40 = vcombine.low %v5033_v3, %v5040_v10  ;;  %v4942_v23 = vrot.slane %v4928_v54, %v9801_v15  ;;  %v4943_v4 = vcombine.high %v4935_v13, %v4935_v13  ;;  %v5042_v33 = vcombine.low %v4927_v16, %v4935_v13  ;;  %6347 = vmatpush3.bf16.msra.mxu0 %v7006_v55 }
 0x3b7   : > { %v4945_v20 = vcombine.high %v4853_v53, %v4853_v53  ;;  %v4952_v19 = vrot.slane %v4853_v53, %v9801_v15  ;;  %6732 = vmatprep.subr.bf16.mxu0 %v10259_v49 }
 0x3b8   : > { %v6119_v50 = vpack.c.bf16 %v5041_v40, %v4977_v9  ;;  %v4944_v29 = vcombine.high %v4942_v23, %v4942_v23  ;;  %v5049_v42 = vrot.slane %v5042_v33, %v9801_v15  ;;  %v5056_v38 = vrot.slane %v4943_v4, %v9801_v15  ;;  %v7008_v33 = vld [vmem:[%s9949_s7] sm:$0xff]  }
 0x3b9   : > { %v4959_v57 = vrot.slane %v4945_v20, %v9801_v15  ;;  %v4960_v48 = vcombine.high %v4952_v19, %v4952_v19  ;;  %v5072_v27 = vrot.slane %v4952_v19, %v9801_v15 }
 0x3ba   : > { %v5057_v47 = vcombine.low %v5049_v42, %v5056_v38  ;;  %v5058_v1 = vcombine.low %v4942_v23, %v4944_v29  ;;  %v5113_v5 = vrot.slane %v6119_v50, %v9801_v15  ;;  %v7009_v50 = vld [vmem:[%s9949_s7 + $0x8] sm:$0xff]   ;;  %v7010_v29 = vld [vmem:[%s9949_s7 + $0x10] sm:$0xff]   ;;  %v7011_v42 = vld [vmem:[%s9949_s7 + $0x18] sm:$0xff]  }
 0x3bb   : > { %v4961_v61 = vcombine.high %v4959_v57, %v4959_v57  ;;  %v5074_v60 = vcombine.low %v4960_v48, %v4959_v57  ;;  %v7012_v38 = vld [vmem:[%s9949_s7 + $0x20] sm:$0xff]   ;;  %v7013_v57 = vld [vmem:[%s9949_s7 + $0x28] sm:$0xff]   ;;  %v7014_v48 = vld [vmem:[%s9949_s7 + $0x30] sm:$0xff]  }
 0x3bc   : > { %v6121_v21 = vpack.c.bf16 %v5057_v47, %v9810_v6  ;;  %v5065_v26 = vrot.slane %v5058_v1, %v9801_v15  ;;  %v7004_v6 = vld [vmem:[%s9947_s5 + $0xb8] sm:$0xff]   ;;  %v7016_v47 = vld [vmem:[%s9951_s9] sm:$0xff]   ;;  %v7017_v1 = vld [vmem:[%s9951_s9 + $0x8] sm:$0xff]  }
 0x3bd   : > { %v5081_v63 = vrot.slane %v5074_v60, %v9801_v15  ;;  %v5088_v25 = vrot.slane %v4961_v61, %v9801_v15  ;;  %5476 = vmatpush1.bf16.msra.mxu1 %v7004_v6  ;;  %v7021_v61 = vld [vmem:[%s9951_s9 + $0x28] sm:$0xff]  }
 0x3be   : > { %v5073_v45 = vcombine.low %v5065_v26, %v5072_v27  ;;  %v5146_v52 = vrot.slane %v6121_v21, %v9801_v15  ;;  %5477 = vmatprep.subr.bf16.mxu1 %v7050_v28  ;;  %v6123_v26 = vld [vmem:[%s9948_s6] ss:$0 sm:$0xff] }
 0x3bf   : > { %v5089_v31 = vcombine.low %v5081_v63, %v5088_v25 }
 0x3c0   : > { %v6120_v51 = vpack.c.bf16 %v5073_v45, %v5009_v44  ;;  %v7007_v44 = vld [vmem:[%s9947_s5 + $0xc0] sm:$0xff]  }
 0x3c1   : > { %v6122_v11 = vpack.c.bf16 %v5089_v31, %v5025_v17  ;;  %5478 = vmatpush1.bf16.msra.mxu1 %v7007_v44 }
 0x3c2   : > { %v5121_v34 = vrot.slane %v6120_v51, %v9801_v15  ;;  %6752 = vmatprep.subr.bf16.mxu1 %v10259_v49 }
 0x3c3   : > { %v5154_v62 = vrot.slane %v6122_v11, %v9801_v15 }
 0x3c4   : > { %v5122_v2 = vcombine.low %v5113_v5, %v5121_v34  ;;  %v5123_v24 = vcombine.high %v5113_v5, %v5121_v34  ;;  %v7023_v5 = vld [vmem:[%s9951_s9 + $0x38] sm:$0xff]   ;;  %v6150_v34 = vld [vmem:[%s9950_s8] ss:$0 sm:$0xff] }
 0x3c5   : > { %v5155_v58 = vcombine.low %v5146_v52, %v5154_v62  ;;  %v5156_v30 = vcombine.high %v5146_v52, %v5154_v62 }
 0x3c6   : > { %v5130_v18 = vrot.slane %v5122_v2, %v5129_v32  ;;  %v5138_v7 = vrot.slane %v5123_v24, %v5129_v32 }
 0x3c7   : > { %v5163_v15 = vrot.slane %v5155_v58, %v5129_v32  ;;  %v5171_v39 = vrot.slane %v5156_v30, %v5129_v32 }
 0x3c8   : > { %v5175_v41 = vshrl.u32 %v5130_v18, 16  ;;  %v5131_v0 = vcombine.high %v5130_v18, %v7050_v28 }
 0x3c9   : > { %v5176_v8 = vshrl.u32 %v5163_v15, 16  ;;  %v5164_v10 = vcombine.high %v5163_v15, %v7050_v28  ;;  %v5186_v22 = vpack.i.b16 %v5171_v39, %v5138_v7  ;;  %v5174_v3 = vpack.i.b16 %v5163_v15, %v5130_v18 }
 0x3ca   : > { %v5181_v16 = vshrl.u32 %v5131_v0, 16 }
 0x3cb   : > { %v5177_v54 = vpack.i.b16 %v5176_v8, %v5175_v41  ;;  %v5182_v13 = vshrl.u32 %v5164_v10, 16  ;;  %v5180_v9 = vpack.i.b16 %v5164_v10, %v5131_v0 }
 0x3cd   : > { %5187 = vrot.lane.b32.xlu0 %v5177_v54, %s7053_s20  ;;  %v5183_v53 = vpack.i.b16 %v5182_v13, %v5181_v16 }
 0x3cf   : > { %5191 = vrot.lane.b32.xlu1 %v5183_v53, %s7054_s21 }
 0x3d1   : > { %5189 = vrot.lane.b32.xlu0 %v5180_v9, %s7055_s22 }
 0x3d3   : > { %5193 = vrot.lane.b32.xlu1 %v5186_v22, %s7056_s23 }
 0x43f   : > { %v5188_v40 = vpop.permute.xlu0 %5187 }
 0x440   : > { %v5198_v20 = vsel %vm5195_vm0, %v5174_v3, %v5188_v40 }
 0x441   : > { %v5192_v23 = vpop.permute.xlu1 %5191 }
 0x443   : > { %v5190_v28 = vpop.permute.xlu0 %5189 }
 0x444   : > { %v5202_v4 = vsel %vm5200_vm14, %v5188_v40, %v5190_v28 }
 0x445   : > { %v5194_v37 = vpop.permute.xlu1 %5193  ;;  %v5205_v56 = vsel %vm5203_vm15, %v5202_v4, %v5192_v23 }
 0x446   : > { %v5209_v19 = vsel %vm5207_vm1, %v5192_v23, %v5194_v37  ;;  %5453 = vmatprep.mubr.bf16.mxu0 %v5205_v56  ;;  %6149 = vmatprep.mubr.msk.bf16.mxu1 %vm5418_vm2, %v5194_v37 }
 0x447   : > { %5454 = vmatmul.mubr.bf16.vlgmr.msra.gmra.mrb[16].mxu0 %v5198_v20  ;;  %5494 = vmatmul.mubr.bf16.vlgmr.msra.gmra.mrb[72].mxu1 %v5209_v19 }
 0x448   : > { %6733 = vmatpush3.bf16.msra.mxu0 %v7008_v33  ;;  %6748 = vmatprep.mubr.msk.bf16.mxu0 %vm7048_vm6, %v10259_v49 }
 0x449   : > { %6734 = vmatprep.subr.bf16.mxu0 %v10259_v49  ;;  %6768 = vmatprep.mubr.msk.bf16.mxu1 %vm7048_vm6, %v10259_v49 }
 0x44a   : > { %6753 = vmatpush3.bf16.msra.mxu1 %v7016_v47 }
 0x44b   : > { %6754 = vmatprep.subr.bf16.mxu1 %v10259_v49 }
 0x44c   : > { %6735 = vmatpush3.bf16.msra.mxu0 %v7009_v50 }
 0x44d   : > { %6736 = vmatprep.subr.bf16.mxu0 %v10259_v49 }
 0x44e   : > { %6755 = vmatpush3.bf16.msra.mxu1 %v7017_v1 }
 0x44f   : > { %6756 = vmatprep.subr.bf16.mxu1 %v10259_v49 }
 0x450   : > { %6737 = vmatpush3.bf16.msra.mxu0 %v7010_v29 }
 0x451   : > { %6738 = vmatprep.subr.bf16.mxu0 %v10259_v49 }
 0x452   : > { %6757 = vmatpush3.bf16.msra.mxu1 %v7018_v14 }
 0x453   : > { %6758 = vmatprep.subr.bf16.mxu1 %v10259_v49 }
 0x454   : > { %6739 = vmatpush3.bf16.msra.mxu0 %v7011_v42 }
 0x455   : > { %6740 = vmatprep.subr.bf16.mxu0 %v10259_v49 }
 0x456   : > { %6759 = vmatpush3.bf16.msra.mxu1 %v7019_v36 }
 0x457   : > { %6760 = vmatprep.subr.bf16.mxu1 %v10259_v49 }
 0x458   : > { %6741 = vmatpush3.bf16.msra.mxu0 %v7012_v38 }
 0x459   : > { %6742 = vmatprep.subr.bf16.mxu0 %v10259_v49 }
 0x45a   : > { %6761 = vmatpush3.bf16.msra.mxu1 %v7020_v43 }
 0x45b   : > { %6762 = vmatprep.subr.bf16.mxu1 %v10259_v49 }
 0x45c   : > { %6743 = vmatpush3.bf16.msra.mxu0 %v7013_v57 }
 0x45d   : > { %6744 = vmatprep.subr.bf16.mxu0 %v10259_v49 }
 0x45e   : > { %6763 = vmatpush3.bf16.msra.mxu1 %v7021_v61 }
 0x45f   : > { %6764 = vmatprep.subr.bf16.mxu1 %v10259_v49 }
 0x460   : > { %6745 = vmatpush3.bf16.msra.mxu0 %v7014_v48 }
 0x461   : > { %6746 = vmatprep.subr.bf16.mxu0 %v10259_v49 }
 0x462   : > { %6765 = vmatpush3.bf16.msra.mxu1 %v7022_v12 }
 0x463   : > { %6766 = vmatprep.subr.bf16.mxu1 %v10259_v49  ;;  %v6159_v49 = vld [vmem:[%s9952_s10] ss:$0 sm:$0xff] }
 0x464   : > { %6747 = vmatpush3.bf16.msra.mxu0 %v7015_v59 }
 0x466   : > { %6767 = vmatpush3.bf16.msra.mxu1 %v7023_v5 }
 0x51a   : > { %v6348_v60 = vpop.f32.mrb[16].mxu0  ;;  %v5495_v21 = vpop.f32.mrb[72].mxu1 }
 0x51b   : > { %v6349_v27 = vpop.f32.mrb[17].mxu0  ;;  %v5497_v63 = vpop.f32.mrb[73].mxu1 }
 0x51c   : > { %v6350_v25 = vadd.f32 %v6349_v27, %v6348_v60  ;;  %v6351_v45 = vpop.f32.mrb[18].mxu0  ;;  %v5498_v46 = vpop.f32.mrb[74].mxu1 }
 0x51d   : > { %v6352_v17 = vpop.f32.mrb[19].mxu0  ;;  %v5499_v31 = vpop.f32.mrb[75].mxu1 }
 0x51e   : > { %v5456_v51 = vadd.f32 %v6350_v25, %v6123_v26 }
 0x520   : > { %v5496_v35 = vadd.f32 %v5495_v21, %v5456_v51 }
 0x522   : > { %v5501_v6 = vmax.f32 %v5496_v35, 0.0 }
 0x524   : > { %v5502_v11 = vpack.c.bf16 %v5501_v6, %v5501_v6 }
 0x526   : > { %6749 = vmatmul.mubr.bf16.vlgmr.msra.gmra.mrb[20].mxu0 %v5502_v11 }
 0x5f9   : > { %v5608_v32 = vpop.f32.mrb[20].mxu0 }
 0x5fa   : > { %v5609_v52 = vadd.f32 %v6150_v34, %v5608_v32  ;;  %v6750_v62 = vpop.f32.mrb[21].mxu0 }
 0x5fb   : > { %v5611_v2 = vpop.f32.mrb[22].mxu0 }
 0x5fc   : > { %v5614_v24 = vmax.f32 %v5609_v52, 0.0  ;;  %v6751_v55 = vpop.f32.mrb[23].mxu0 }
 0x5fe   : > { %v5615_v44 = vpack.c.bf16 %v5614_v24, %v5614_v24 }
 0x600   : > { %6769 = vmatmul.mubr.bf16.vlgmr.msra.gmra.mrb[76].mxu1 %v5615_v44 }
 0x6d3   : > { %v5721_v58 = vpop.f32.mrb[76].mxu1 }
 0x6d4   : > { %v5722_v30 = vadd.f32 %v6159_v49, %v5721_v58  ;;  %v6770_v18 = vpop.f32.mrb[77].mxu1 }
 0x6d5   : > { %v5724_v7 = vpop.f32.mrb[78].mxu1 }
 0x6d6   : > { %5727 = vst [vmem:[%s389_s12] sm:$0xff] %v5722_v30  ;;  %v6771_v15 = vpop.f32.mrb[79].mxu1 }
 0x6d7 PF: > { %s21_s17 = sadd.s32 1, %s7045_s17  }
 0x6d8   : > { %p18_p5 = scmp.ge.s32.totalorder %s21_s17, 4  }
 0x6da   :  { %20 = sbr.rel (!%p18_p5) target bundleno = 1 (0x1), region = 104 }

</bundles_post_ra>
